<compile_context>
chip_gen: v7x
topology: tpu7x:2x2x1
jax: 0.10.0
libtpu: 0.0.40
codegen_flags: <defaults>
</compile_context>

<pallas_src>
import functools

import jax
import jax.numpy as jnp
from jax.experimental import pallas as pl
from jax.experimental.pallas import tpu as pltpu


def _fourier_kernel(x2_ref, b2p_ref, o_ref):
    # x2_ref : (K+1, tile)  rows of x (plus a ones row), N on the lane axis.
    # b2p_ref: (K+1, 2H)    [B | B] with a trailing phase row [0 | pi/2].
    # Transposed-LHS contraction on the MXU: (tile, K+1) . (K+1, 2H) -> (tile, 2H).
    z = jax.lax.dot_general(
        x2_ref[...],
        b2p_ref[...],
        dimension_numbers=(((0,), (0,)), ((), ())),
        preferred_element_type=jnp.float32,
    )
    # Columns [0, H) -> sin(xB); columns [H, 2H) -> sin(xB + pi/2) = cos(xB).
    o_ref[...] = jnp.sin(z).astype(o_ref.dtype)


def _pick_tile(n_rows, k1, enc_dim, tile_n, vmem_budget):
    """Row tile: lane-aligned (multiple of 128) and clamped to the VMEM budget."""
    # 2x double-buffered x2 columns + 2x double-buffered out rows + f32 z temp.
    bytes_per_row = 4 * (2 * k1 + 3 * enc_dim)
    resident = 4 * k1 * enc_dim + (1 << 20)  # B2p (VMEM-resident) + slack
    fit = max(128, ((vmem_budget - resident) // bytes_per_row) // 128 * 128)
    tile = max(128, (min(tile_n, fit) // 128) * 128)
    if tile >= n_rows:
        if n_rows >= 256:
            # Split so grid >= 2: lets ("parallel",) shard rows over v7x's 2 TCs.
            tile = 128 * pl.cdiv(pl.cdiv(n_rows, 2), 128)
        else:
            tile = n_rows  # single block; block dims == full array dims (allowed)
    return tile


@functools.partial(jax.jit, static_argnames=("tile_n",))
def fourier_encoding(x, B, *, tile_n=8192):
    """x: (N, input_dim) f32, B: (input_dim, H) f32 -> (N, 2*H) f32.

    Matches torch.cat([sin(x @ B), cos(x @ B)], dim=1).
    """
    N, input_dim = x.shape
    kb, H = B.shape
    assert kb == input_dim
    encoding_dim = 2 * H
    k1 = input_dim + 1

    # Lane-dense transposed input with a ones row (folds the pi/2 phase into the
    # contraction) and doubled weights with a phase row.
    x2 = jnp.concatenate([x.T, jnp.ones((1, N), x.dtype)], axis=0)  # (K+1, N)
    b2p = jnp.concatenate(
        [
            jnp.concatenate([B, B], axis=1),                         # (K, 2H)
            jnp.concatenate(
                [jnp.zeros((1, H), B.dtype),
                 jnp.full((1, H), jnp.pi / 2, B.dtype)], axis=1),    # (1, 2H)
        ],
        axis=0,
    )                                                                # (K+1, 2H)

    # VMEM budget: ~50% of physical per-core VMEM (v7x: 64 MiB -> 32 MiB cap,
    # v5e/v6e: 128 MiB -> 64 MiB cap).
    try:
        vmem_cap = int(pltpu.get_tpu_info().vmem_capacity_bytes)
    except Exception:
        vmem_cap = 64 << 20
    budget = vmem_cap // 2

    tile = _pick_tile(N, k1, encoding_dim, tile_n, budget)
    grid = (pl.cdiv(N, tile),)

    # Actual need for the chosen tile (tile was clamped to fit, so need <= budget).
    vmem_need = 4 * (2 * k1 * tile + 3 * tile * encoding_dim + k1 * encoding_dim)
    vmem_limit = int(min(budget, max(16 << 20, vmem_need + (4 << 20))))

    cost = pl.CostEstimate(
        flops=2 * N * k1 * encoding_dim,
        transcendentals=N * encoding_dim,
        bytes_accessed=4 * (k1 * N + k1 * encoding_dim + N * encoding_dim),
    )

    return pl.pallas_call(
        _fourier_kernel,
        out_shape=jax.ShapeDtypeStruct((N, encoding_dim), x.dtype),
        grid=grid,
        in_specs=[
            # x2 row-tile: N on the lane axis -> dense 128-lane DMA.
            pl.BlockSpec((k1, tile), lambda i: (0, i)),
            # B2p: whole array, constant index_map -> DMA'd once, VMEM-resident.
            pl.BlockSpec((k1, encoding_dim), lambda i: (0, 0)),
        ],
        # NOTE: if profiling on v6e still shows exposed output writeback, add
        # pipeline_mode=pl.Buffered(3) to the x2/out BlockSpecs.
        out_specs=pl.BlockSpec((tile, encoding_dim), lambda i: (i, 0)),
        compiler_params=pltpu.CompilerParams(
            dimension_semantics=("parallel",),
            vmem_limit_bytes=vmem_limit,
        ),
        cost_estimate=cost,
    )(x2, b2p)


if __name__ == "__main__":
    # Module hyper-parameters (deterministic, in-script init).
    input_dim = 4
    encoding_dim = 128          # must be even; H = 64
    sigma = 2.0

    key = jax.random.PRNGKey(0)
    k_b, k_x = jax.random.split(key)

    # B = Normal(0, 1) * sigma, shape (input_dim, encoding_dim // 2)
    B = jax.random.normal(k_b, (input_dim, encoding_dim // 2), jnp.float32) * sigma

    # N chosen so the run exercises the multi-block path: tile=256, grid=(2,)
    # with a masked 44-row tail block.
    N = 300
    x = jax.random.normal(k_x, (N, input_dim), jnp.float32)

    out = jax.block_until_ready(fourier_encoding(x, B))

    # Reference check in plain JAX (same semantics as the PyTorch forward);
    # HIGHEST precision mirrors torch's full-f32 matmul.
    z = jnp.dot(x, B, precision=jax.lax.Precision.HIGHEST)
    ref = jnp.concatenate([jnp.sin(z), jnp.cos(z)], axis=1)
    assert out.shape == (N, encoding_dim)
    err = float(jnp.max(jnp.abs(out - ref)))
    assert jnp.allclose(out, ref, atol=1e-4, rtol=1e-4), err

    print("KERNEL_OK")
</pallas_src>

<mosaic_0001>
module attributes {stable_mosaic.version = 11 : i64} {
  func.func @_fourier_kernel(%arg0: i32, %arg1: memref<5x256xf32, #tpu.memory_space<vmem>>, %arg2: memref<5x128xf32, #tpu.memory_space<vmem>>, %arg3: memref<256x128xf32, #tpu.memory_space<vmem>>) attributes {dimension_semantics = [#tpu.dimension_semantics<parallel>], iteration_bounds = array<i64: 2>, scalar_prefetch = 0 : i64, scratch_operands = 0 : i64, tpu.core_type = #tpu.core_type<tc>, window_params = [{transform_indices = @transform_0, window_bounds = array<i64: 5, 256>}, {pipeline_mode = #tpu.pipeline_mode<synchronous>, transform_indices = @transform_1, window_bounds = array<i64: 5, 128>}, {transform_indices = @transform_2, window_bounds = array<i64: 256, 128>}]} {
    %c0 = arith.constant 0 : index
    %c0_0 = arith.constant 0 : index
    %0 = vector.load %arg1[%c0, %c0_0] : memref<5x256xf32, #tpu.memory_space<vmem>>, vector<5x256xf32>
    %c0_1 = arith.constant 0 : index
    %c0_2 = arith.constant 0 : index
    %1 = vector.load %arg2[%c0_1, %c0_2] : memref<5x128xf32, #tpu.memory_space<vmem>>, vector<5x128xf32>
    %cst = arith.constant dense<0.000000e+00> : vector<256x128xf32>
    %2 = tpu.matmul %0, %1, %cst {dimension_numbers = #tpu.dot_dimension_numbers<[0], [0], [1], [1], [0, 1, 1, 1], [], []>} : vector<5x256xf32>, vector<5x128xf32>, vector<256x128xf32> -> vector<256x128xf32>
    %3 = math.sin %2 : vector<256x128xf32>
    %c0_3 = arith.constant 0 : index
    %c0_4 = arith.constant 0 : index
    %4 = vector.load %arg3[%c0_3, %c0_4] : memref<256x128xf32, #tpu.memory_space<vmem>>, vector<256x128xf32>
    tpu.vector_store %arg3[%c0_3, %c0_4], %3 {strides = array<i32>} : memref<256x128xf32, #tpu.memory_space<vmem>>, vector<256x128xf32>,
    return
  }
  func.func @transform_0(%arg0: i32) -> (i32, i32) {
    %c0_i32 = arith.constant 0 : i32
    %c0_i32_0 = arith.constant 0 : i32
    return %c0_i32, %arg0 : i32, i32
  }
  func.func @transform_1(%arg0: i32) -> (i32, i32) {
    %c0_i32 = arith.constant 0 : i32
    %c0_i32_0 = arith.constant 0 : i32
    %c0_i32_1 = arith.constant 0 : i32
    return %c0_i32, %c0_i32_0 : i32, i32
  }
  func.func @transform_2(%arg0: i32) -> (i32, i32) {
    %c0_i32 = arith.constant 0 : i32
    %c0_i32_0 = arith.constant 0 : i32
    return %arg0, %c0_i32 : i32, i32
  }
}

</mosaic_0001>

<bundles_post_ra>
// kernel: fourier_encoding.1
= control target key start
LH: loop header
LB: loop body
LE: loop exit
PB: predicated region body
PF: predicated region fallthrough
CT: control target
= control target key end

     0   :  { %7 = vsyncpa [#allocation3], 0  ;;  %s7381_s0 = inlined_call_operand.vmem [shape: f32[5,300], index: 0, kind: input, shape index: {}]   ;;  %s7382_s1 = inlined_call_operand.vmem [shape: f32[5,128], index: 1, kind: input, shape index: {}]   ;;  %s7383_s2 = inlined_call_operand.hbm [shape: f32[300,128], index: 2, kind: output, shape index: {}]  }
   0x1   :  { %9 = vsyncpa [#allocation3 + $0x1], 0  ;;  %s4658_s9 = smov 0   ;;  %s4660_s10 = smov 0  }
   0x2   :  { %s4662_s11 = smov 0   ;;  %s4664_s12 = smov 0  }
   0x3 LB: > { %s4679_s13 = sadd.s32 4294967295, %s4632_s12   ;;  %s4004_s14 = sadd.s32 4294967294, %s4632_s12   ;;  %s4632_s12 = sphi %s4664_s12, %s7449_s12   ;;  %s4628_s11 = sphi %s4662_s11, %s7448_s11   ;;  %s4624_s10 = sphi %s4660_s10, %s7447_s10   ;;  %s4620_s9 = sphi %s4658_s9, %s7446_s9  }
   0x4   : > { %s4683_s15 = sadd.s32 1, %s4632_s12   ;;  %s69_s16 = sadd.s32 1, %s4628_s11 }
   0x5   : > { %s66_s17 = ssub.s32 %s4632_s12, %s4683_s15  ;;  %p79_p0 = scmp.ne.s32.totalorder %s4628_s11, %s4624_s10 }
   0x6   : > { %p67_p1 = scmp.eq.s32.totalorder %s66_s17, 0  ;;  %p80_p2 = scmp.eq.s32.totalorder %s4679_s13, 1 }
   0x7   : > { %p85_p3 = scmp.ne.s32.totalorder %s4624_s10, %s4620_s9  ;;  %p86_p4 = scmp.eq.s32.totalorder %s4004_s14, 1 }
   0x8   : > { %s4694_s18 = scalar_select %p67_p1, %s4628_s11, %s69_s16  }
   0x9   : > { %p4696_p5 = por %p80_p2, %p79_p0  ;;  %p4700_p6 = por %p86_p4, %p85_p3 }
   0xa   : > { %p4007_p7 = scmp.ge.s32.totalorder %s4632_s12, 1  ;;  %p124_p8 = scmp.lt.s32.totalorder %s4632_s12, 3 }
   0xc   : > { %p125_p9 = pnand %p4007_p7, %p124_p8 }
   0xd   : > { %s4009_s21 = sshll.u32 (!%p125_p9), %s4679_s13, 1  ;;  %v171_v1 = vld [vmem:[%s7382_s1] sm:$0x1f] (!%p125_p9)  ;;  %vm333_vm0 = vcmask (!%p125_p9), 1044480   ;;  %vm236_vm1 = vcmask (!%p125_p9), 39936   ;;  %s147_s28 = sand.u32 (!%p125_p9), 1, %s4624_s10  }
   0xe   : > { %128 = sbr.rel (%p125_p9) target bundleno = 1221 (0x4c5), region = 28  ;;  %p155_p10 = scmp.lt.s32.totalorder (!%p125_p9), %s4009_s21, 2  ;;  %4215 = vmatprep.subr.msk.mxu0 (!%p125_p9), %vm333_vm0, %v171_v1  ;;  %4265 = vmatprep.subr.msk.mxu1 (!%p125_p9), %vm333_vm0, %v171_v1  ;;  %v4634_v63 = vmov (!%p125_p9), 683565275  }
   0xf   : > { %4216 = vmatpush3.msk.msra.mxu0 (!%p125_p9), %vm333_vm0, %v171_v1  ;;  %4266 = vmatpush3.msk.msra.mxu1 (!%p125_p9), %vm333_vm0, %v171_v1  ;;  %s4008_s29 = sshll.u32 (!%p125_p9), %s147_s28, 8  ;;  %s7320_s3 = scalar_lea.sflag (!%p125_p9), [#allocation3], %s147_s28 }
  0x10   : > { %s5039_s30 = scalar_lea.vmem (!%p125_p9), [#allocation2], %s4008_s29 }
  0x15   : > { %s7451_s21 = smov (!%p155_p10, %s4009_s21), 2  ;;  %s4173_s4 = sshll.u32 (%p4696_p5), %s4679_s13, 5 }
  0x16   : > { %s4010_s22 = sshll.u32 %s7451_s21, 3  ;;  %s3931_s5 = ssub.s32 (%p4696_p5), 38, %s4173_s4 }
  0x17   : > { %s158_s25 = scalar_lea.vmem %s7381_s0, %s4010_s22  ;;  %p3932_p11 = scmp.lt.s32.totalorder (%p4696_p5), %s3931_s5, 32 }
  0x18   : > { %v169_v0 = vld [vmem:[%s158_s25] sm:$0x1f]  ;;  %v170_v2 = vld [vmem:[%s158_s25 + $0x8] sm:$0x1f] }
  0x19   : > { %172 = vxpose.xlu0.b32.start.end [1/1] (short) %v169_v0, 128 }
  0x56   : > { %204 = vxpose.xlu0.b32.start.end [1/1] (short) %v170_v2, 128 }
  0x99   : > { %v188_v3 = vpop.trf.xlu0 }
  0x9a   : > { %4217 = vmatprep.mubr.msk.f32.mxu0 %vm236_vm1, %v188_v3  ;;  %v4635_v3 = vmov 2475754826  }
  0x9d   : > { %v189_v4 = vpop.trf.xlu0 }
  0x9e   : > { %4218 = vmatmul.mubr.msk.f32.vlgmr.msra.gmra.mrb[0].mxu0 %vm236_vm1, %v189_v4 }
  0xa1   : > { %v190_v5 = vpop.trf.xlu0 }
  0xa2   : > { %4220 = vmatprep.mubr.msk.f32.mxu0 %vm236_vm1, %v190_v5  ;;  %v4636_v5 = vmov 2131351028  }
  0xa5   : > { %v191_v6 = vpop.trf.xlu0 }
  0xa6   : > { %4221 = vmatmul.mubr.msk.f32.gmra.mrb[2].mxu0 %vm236_vm1, %v191_v6 }
  0xa9   : > { %v192_v7 = vpop.trf.xlu0 }
  0xaa   : > { %4223 = vmatprep.mubr.msk.f32.mxu0 %vm236_vm1, %v192_v7  ;;  %v4637_v7 = vmov 2102212464  }
  0xad   : > { %v193_v8 = vpop.trf.xlu0 }
  0xae   : > { %4224 = vmatmul.mubr.msk.f32.gmra.mrb[4].mxu0 %vm236_vm1, %v193_v8 }
  0xb1   : > { %v194_v9 = vpop.trf.xlu0 }
  0xb2   : > { %4226 = vmatprep.mubr.msk.f32.mxu0 %vm236_vm1, %v194_v9  ;;  %v4638_v9 = vmov 920167782  }
  0xb5   : > { %v195_v10 = vpop.trf.xlu0 }
  0xb6   : > { %4227 = vmatmul.mubr.msk.f32.gmra.mrb[6].mxu0 %vm236_vm1, %v195_v10 }
  0xb9   : > { %v196_v11 = vpop.trf.xlu0 }
  0xba   : > { %4229 = vmatprep.mubr.msk.f32.mxu0 %vm236_vm1, %v196_v11 }
  0xbd   : > { %v197_v12 = vpop.trf.xlu0 }
  0xbe   : > { %4230 = vmatmul.mubr.msk.f32.gmra.mrb[8].mxu0 %vm236_vm1, %v197_v12 }
  0xc1   : > { %v198_v13 = vpop.trf.xlu0 }
  0xc2   : > { %4232 = vmatprep.mubr.msk.f32.mxu0 %vm236_vm1, %v198_v13 }
  0xc5   : > { %v199_v14 = vpop.trf.xlu0 }
  0xc6   : > { %4233 = vmatmul.mubr.msk.f32.gmra.mrb[10].mxu0 %vm236_vm1, %v199_v14 }
  0xc9   : > { %v200_v15 = vpop.trf.xlu0 }
  0xca   : > { %4235 = vmatprep.mubr.msk.f32.mxu0 %vm236_vm1, %v200_v15 }
  0xcd   : > { %v201_v16 = vpop.trf.xlu0 }
  0xce   : > { %4236 = vmatmul.mubr.msk.f32.gmra.mrb[12].mxu0 %vm236_vm1, %v201_v16  ;;  %v4639_v16 = vmov 1326507024  }
  0xd1   : > { %v202_v17 = vpop.trf.xlu0 }
  0xd2   : > { %4238 = vmatprep.mubr.msk.f32.mxu0 %vm236_vm1, %v202_v17 }
  0xd5   : > { %v203_v18 = vpop.trf.xlu0 }
  0xd6   : > { %4239 = vmatmul.mubr.msk.f32.gmra.mrb[14].mxu0 %vm236_vm1, %v203_v18 }
  0xd9   : > { %v220_v19 = vpop.trf.xlu0 }
  0xda   : > { %4241 = vmatprep.mubr.msk.f32.mxu1 %vm236_vm1, %v220_v19 }
  0xdd   : > { %v221_v20 = vpop.trf.xlu0 }
  0xde   : > { %4242 = vmatmul.mubr.msk.f32.vlgmr.msra.gmra.mrb[0].mxu1 %vm236_vm1, %v221_v20 }
  0xe1   : > { %v222_v21 = vpop.trf.xlu0 }
  0xe2   : > { %4244 = vmatprep.mubr.msk.f32.mxu1 %vm236_vm1, %v222_v21 }
  0xe5   : > { %v223_v22 = vpop.trf.xlu0 }
  0xe6   : > { %4245 = vmatmul.mubr.msk.f32.gmra.mrb[2].mxu1 %vm236_vm1, %v223_v22 }
  0xe9   : > { %v224_v23 = vpop.trf.xlu0 }
  0xea   : > { %4247 = vmatprep.mubr.msk.f32.mxu1 %vm236_vm1, %v224_v23 }
  0xed   : > { %v225_v24 = vpop.trf.xlu0 }
  0xee   : > { %4248 = vmatmul.mubr.msk.f32.gmra.mrb[4].mxu1 %vm236_vm1, %v225_v24 }
  0xf1   : > { %v226_v25 = vpop.trf.xlu0 }
  0xf2   : > { %4250 = vmatprep.mubr.msk.f32.mxu1 %vm236_vm1, %v226_v25 }
  0xf5   : > { %v227_v26 = vpop.trf.xlu0 }
  0xf6   : > { %4251 = vmatmul.mubr.msk.f32.gmra.mrb[6].mxu1 %vm236_vm1, %v227_v26 }
  0xf9   : > { %v228_v27 = vpop.trf.xlu0 }
  0xfa   : > { %4253 = vmatprep.mubr.msk.f32.mxu1 %vm236_vm1, %v228_v27 }
  0xfd   : > { %v229_v28 = vpop.trf.xlu0 }
  0xfe   : > { %4254 = vmatmul.mubr.msk.f32.gmra.mrb[8].mxu1 %vm236_vm1, %v229_v28 }
 0x101   : > { %v230_v29 = vpop.trf.xlu0 }
 0x102   : > { %4256 = vmatprep.mubr.msk.f32.mxu1 %vm236_vm1, %v230_v29 }
 0x105   : > { %v231_v30 = vpop.trf.xlu0 }
 0x106   : > { %4257 = vmatmul.mubr.msk.f32.gmra.mrb[10].mxu1 %vm236_vm1, %v231_v30 }
 0x109   : > { %v232_v31 = vpop.trf.xlu0 }
 0x10a   : > { %4259 = vmatprep.mubr.msk.f32.mxu1 %vm236_vm1, %v232_v31 }
 0x10d   : > { %v233_v32 = vpop.trf.xlu0 }
 0x10e   : > { %4260 = vmatmul.mubr.msk.f32.gmra.mrb[12].mxu1 %vm236_vm1, %v233_v32 }
 0x111   : > { %v234_v33 = vpop.trf.xlu0 }
 0x112   : > { %4262 = vmatprep.mubr.msk.f32.mxu1 %vm236_vm1, %v234_v33 }
 0x115   : > { %v235_v34 = vpop.trf.xlu0 }
 0x116   : > { %4263 = vmatmul.mubr.msk.f32.gmra.mrb[14].mxu1 %vm236_vm1, %v235_v34 }
 0x171   : > { %v4746_v35 = vpop.f32.mrb[0].mxu0 }
 0x172   : > { %v666_v36 = vand.u32 2147483647, %v4746_v35  ;;  %v669_v37 = vand.u32 2139095040, %v4746_v35  ;;  %v4750_v38 = vpop.f32.mrb[1].mxu0  ;;  %vm668_vm15 = vcmp.lt.s32.totalorder %v4746_v35, 0 }
 0x173   : > { %v562_v39 = vand.u32 2147483647, %v4750_v38  ;;  %v565_v40 = vand.u32 2139095040, %v4750_v38 }
 0x174   : > { %v670_v41 = vshrl.u32 %v669_v37, 23  ;;  %v673_v42 = vand.u32 8388607, %v666_v36  ;;  %vm4859_vm0 = vcmp.le.f32.partialorder %v666_v36, 0.7853982 }
 0x175   : > { %v566_v43 = vshrl.u32 %v565_v40, 23  ;;  %v569_v44 = vand.u32 8388607, %v562_v39 }
 0x176   : > { %v4048_v45 = vadd.s32 4294967169, %v670_v41  ;;  %v674_v48 = vor.u32 8388608, %v673_v42 }
 0x177   : > { %v4044_v46 = vadd.s32 4294967169, %v566_v43  ;;  %v570_v49 = vor.u32 8388608, %v569_v44 }
 0x178   : > { %v676_v47 = vadd.s32 1, %v4048_v45  ;;  %v4763_v58 = vshll.u32 %v674_v48, 8 }
 0x179   : > { %v572_v50 = vadd.s32 1, %v4044_v46  ;;  %v4758_v51 = vpop.f32.mrb[2].mxu0  ;;  %v4767_v60 = vshll.u32 %v570_v49, 8 }
 0x17a   : > { %vm677_vm2 = vcmp.gt.s32.totalorder %v676_v47, 0  ;;  %v877_v52 = vand.u32 2139095040, %v4758_v51  ;;  %v4761_v53 = vpop.f32.mrb[3].mxu0  ;;  %v874_v61 = vand.u32 2147483647, %v4758_v51 }
 0x17b   : > { %v678_v54 = vsel %vm677_vm2, %v676_v47, 0  ;;  %vm573_vm3 = vcmp.gt.s32.totalorder %v572_v50, 0 }
 0x17c   : > { %v679_v55 = vshrl.u32 %v678_v54, 5  ;;  %v680_v56 = vand.u32 31, %v678_v54  ;;  %v574_v57 = vsel %vm573_vm3, %v572_v50, 0  ;;  %v4771_v2 = vshrl.u32 %v877_v52, 23 }
 0x17d   : > { %v4765_v59 = vshrl.u32 %v574_v57, 5  ;;  %v576_v1 = vand.u32 31, %v574_v57 }
 0x17e   : > { %v681_v62 = vsub.s32 32, %v680_v56  ;;  %v683_v0 = vshll.u32 %v4634_v63, %v680_v56  ;;  %v686_v4 = vshll.u32 %v4635_v3, %v680_v56  ;;  %v689_v6 = vshll.u32 %v4636_v5, %v680_v56 }
 0x17f   : > { %v692_v8 = vshll.u32 %v4637_v7, %v680_v56  ;;  %v695_v10 = vshll.u32 %v4638_v9, %v680_v56  ;;  %vm698_vm4 = vcmp.lt.s32.totalorder %v679_v55, 1  ;;  %vm699_vm5 = vcmp.lt.s32.totalorder %v679_v55, 2 }
 0x180   : > { %v684_v11 = vshrl.u32 %v4635_v3, %v681_v62  ;;  %v687_v12 = vshrl.u32 %v4636_v5, %v681_v62  ;;  %v690_v13 = vshrl.u32 %v4637_v7, %v681_v62  ;;  %v682_v14 = vshrl.u32 %v4634_v63, %v681_v62 }
 0x181   : > { %v693_v15 = vshrl.u32 %v4638_v9, %v681_v62  ;;  %v696_v17 = vshrl.u32 %v4639_v16, %v681_v62  ;;  %v4783_v18 = vpop.f32.mrb[4].mxu0  ;;  %v577_v22 = vsub.s32 32, %v576_v1  ;;  %vm700_vm6 = vcmp.lt.s32.totalorder %v679_v55, 3 }
 0x182   : > { %v685_v19 = vor.u32 %v684_v11, %v683_v0  ;;  %v688_v20 = vor.u32 %v687_v12, %v686_v4  ;;  %v691_v21 = vor.u32 %v690_v13, %v689_v6  ;;  %v4785_v23 = vpop.f32.mrb[5].mxu0  ;;  %vm701_vm7 = vcmp.lt.s32.totalorder %v679_v55, 4 }
 0x183   : > { %v694_v24 = vor.u32 %v693_v15, %v692_v8  ;;  %v697_v25 = vor.u32 %v696_v17, %v695_v10  ;;  %v579_v33 = vshll.u32 %v4634_v63, %v576_v1  ;;  %v580_v40 = vshrl.u32 %v4635_v3, %v577_v22 }
 0x184   : > { %v702_v26 = vsel %vm698_vm4, %v682_v14, %v685_v19  ;;  %v703_v27 = vsel %vm701_vm7, %v691_v21, 2102212464  ;;  %v706_v28 = vsel %vm698_vm4, %v685_v19, %v688_v20  ;;  %v710_v29 = vsel %vm698_vm4, %v688_v20, %v691_v21 }
 0x185   : > { %v704_v30 = vsel %vm700_vm6, %v688_v20, %v703_v27  ;;  %v707_v31 = vsel %vm701_vm7, %v694_v24, 920167782  ;;  %v711_v32 = vsel %vm701_vm7, %v697_v25, 1326507024  ;;  %v582_v41 = vshll.u32 %v4635_v3, %v576_v1 }
 0x186   : > { %v708_v34 = vsel %vm700_vm6, %v691_v21, %v707_v31  ;;  %v712_v37 = vsel %vm700_vm6, %v694_v24, %v711_v32  ;;  %v705_v42 = vsel %vm699_vm5, %v702_v26, %v704_v30  ;;  %v583_v45 = vshrl.u32 %v4636_v5, %v577_v22 }
 0x187   : > { %v709_v43 = vsel %vm699_vm5, %v706_v28, %v708_v34  ;;  %v713_v44 = vsel %vm699_vm5, %v710_v29, %v712_v37  ;;  %v581_v50 = vor.u32 %v580_v40, %v579_v33  ;;  %v585_v54 = vshll.u32 %v4636_v5, %v576_v1 }
 0x188   : > { %v4798_v46 = vmul.u32.u64.low %v4763_v58, %v713_v44  ;;  %v4799_v47 = vmul.u32.u64.high %v4763_v58, %v713_v44, %v4798_v46  ;;  %v4802_v48 = vmul.u32.u64.low %v4763_v58, %v709_v43  ;;  %v4803_v49 = vmul.u32.u64.high %v4763_v58, %v709_v43, %v4802_v48 }
 0x189   : > { %v584_v52 = vor.u32 %v583_v45, %v582_v41  ;;  %v586_v56 = vshrl.u32 %v4637_v7, %v577_v22  ;;  %v4808_v57 = vpop.f32.mrb[6].mxu0  ;;  %v578_v55 = vshrl.u32 %v4634_v63, %v577_v22  ;;  %v588_v62 = vshll.u32 %v4637_v7, %v576_v1 }
 0x18a   : > { %v589_v0 = vshrl.u32 %v4638_v9, %v577_v22  ;;  %v592_v4 = vshrl.u32 %v4639_v16, %v577_v22  ;;  %v4814_v6 = vpop.f32.mrb[7].mxu0  ;;  %v721_v8 = vmul.u32 %v4763_v58, %v705_v42  ;;  %v591_v11 = vshll.u32 %v4638_v9, %v576_v1 }
 0x18b   : > { %v587_v10 = vor.u32 %v586_v56, %v585_v54  ;;  %vm594_vm8 = vcmp.lt.s32.totalorder %v4765_v59, 1  ;;  %vm723_vm9 = vc.u32 %v4799_v47, %v4802_v48  ;;  %v724_v12 = vadd.s32 1, %v4803_v49 }
 0x18c   : > { %v590_v13 = vor.u32 %v589_v0, %v588_v62  ;;  %vm595_vm10 = vcmp.lt.s32.totalorder %v4765_v59, 2  ;;  %v593_v14 = vor.u32 %v592_v4, %v591_v11  ;;  %vm596_vm11 = vcmp.lt.s32.totalorder %v4765_v59, 3 }
 0x18d   : > { %vm597_vm12 = vcmp.lt.s32.totalorder %v4765_v59, 4  ;;  %v602_v15 = vsel %vm594_vm8, %v581_v50, %v584_v52  ;;  %v725_v58 = vsel %vm723_vm9, %v724_v12, %v4803_v49  ;;  %v606_v19 = vsel %vm594_vm8, %v584_v52, %v587_v10 }
 0x18e   : > { %v599_v17 = vsel %vm597_vm12, %v587_v10, 2102212464  ;;  %v603_v1 = vsel %vm597_vm12, %v590_v13, 920167782  ;;  %v726_v20 = vadd.s32 %v725_v58, %v721_v8  ;;  %v598_v21 = vsel %vm594_vm8, %v578_v55, %v581_v50 }
 0x18f   : > { %v604_v22 = vsel %vm596_vm11, %v587_v10, %v603_v1  ;;  %v607_v24 = vsel %vm597_vm12, %v593_v14, 1326507024  ;;  %v600_v25 = vsel %vm596_vm11, %v584_v52, %v599_v17  ;;  %v4056_v28 = vadd.s32 4294967169, %v4771_v2 }
 0x190   : > { %v605_v26 = vsel %vm595_vm10, %v602_v15, %v604_v22  ;;  %v608_v27 = vsel %vm596_vm11, %v590_v13, %v607_v24  ;;  %v727_v29 = vadd.s32 536870912, %v726_v20  ;;  %v601_v40 = vsel %vm595_vm10, %v598_v21, %v600_v25 }
 0x191   : > { %v609_v30 = vsel %vm595_vm10, %v606_v19, %v608_v27  ;;  %v4832_v31 = vmul.u32.u64.low %v4767_v60, %v605_v26  ;;  %v4833_v32 = vmul.u32.u64.high %v4767_v60, %v605_v26, %v4832_v31  ;;  %v884_v41 = vadd.s32 1, %v4056_v28  ;;  %v4876_v19 = vpop.f32.mrb[8].mxu0 }
 0x192   : > { %v4837_v33 = vmul.u32.u64.low %v4767_v60, %v609_v30  ;;  %v4838_v34 = vmul.u32.u64.high %v4767_v60, %v609_v30, %v4837_v33  ;;  %v728_v37 = vshrl.u32 %v727_v29, 30  ;;  %v881_v2 = vand.u32 8388607, %v874_v61 }
 0x193   : > { %v620_v43 = vadd.s32 1, %v4833_v32  ;;  %vm885_vm13 = vcmp.gt.s32.totalorder %v884_v41, 0  ;;  %v773_v44 = vand.u32 2139095040, %v4761_v53  ;;  %v617_v46 = vmul.u32 %v4767_v60, %v601_v40 }
 0x194   : > { %v729_v42 = vshll.u32 %v728_v37, 30  ;;  %v752_v45 = vsub.s32 4, %v728_v37  ;;  %vm619_vm14 = vc.u32 %v4838_v34, %v4832_v31  ;;  %v886_v49 = vsel %vm885_vm13, %v884_v41, 0 }
 0x195   : > { %v621_v59 = vsel %vm619_vm14, %v620_v43, %v4833_v32  ;;  %v882_v54 = vor.u32 8388608, %v881_v2  ;;  %v888_v56 = vand.u32 31, %v886_v49  ;;  %v774_v62 = vshrl.u32 %v773_v44, 23 }
 0x196   : > { %v730_v50 = vsub.s32 %v726_v20, %v729_v42  ;;  %v622_v52 = vadd.s32 %v621_v59, %v617_v46  ;;  %v4853_v0 = vsel %vm668_vm15, %v752_v45, %v728_v37  ;;  %v4855_v60 = vshrl.u32 %v886_v49, 5 }
 0x197   : > { %v889_v8 = vsub.s32 32, %v888_v56  ;;  %v722_v12 = vadd.s32 %v4802_v48, %v4799_v47  ;;  %v4867_v14 = vshll.u32 %v882_v54, 8  ;;  %v770_v15 = vand.u32 2147483647, %v4761_v53 }
 0x198   : > { %v732_v55 = vsub.s32 0, %v730_v50  ;;  %v623_v4 = vadd.s32 536870912, %v622_v52  ;;  %v755_v17 = vsel %vm4859_vm0, 0, %v4853_v0  ;;  %v4874_v1 = vadd.s32 4294967169, %v774_v62 }
 0x199   : > { %v892_v36 = vshrl.u32 %v4635_v3, %v889_v8  ;;  %v891_v47 = vshll.u32 %v4634_v63, %v888_v56  ;;  %v895_v48 = vshrl.u32 %v4636_v5, %v889_v8  ;;  %vm906_vm1 = vcmp.lt.s32.totalorder %v4855_v60, 1 }
 0x19a   : > { %v4049_v11 = vmin.u32 %v732_v55, %v730_v50  ;;  %v4865_v13 = vshrl.u32 %v623_v4, 30  ;;  %v897_v22 = vshll.u32 %v4636_v5, %v888_v56  ;;  %v898_v24 = vshrl.u32 %v4637_v7, %v889_v8 }
 0x19b   : > { %v901_v25 = vshrl.u32 %v4638_v9, %v889_v8  ;;  %v894_v27 = vshll.u32 %v4635_v3, %v888_v56  ;;  %v904_v28 = vshrl.u32 %v4639_v16, %v889_v8  ;;  %vm907_vm2 = vcmp.lt.s32.totalorder %v4855_v60, 2 }
 0x19c   : > { %v734_v58 = vclz %v4049_v11  ;;  %v625_v20 = vshll.u32 %v4865_v13, 30  ;;  %v893_v29 = vor.u32 %v892_v36, %v891_v47  ;;  %v899_v30 = vor.u32 %v898_v24, %v897_v22 }
 0x19d   : > { %v900_v32 = vshll.u32 %v4637_v7, %v888_v56  ;;  %v896_v40 = vor.u32 %v895_v48, %v894_v27  ;;  %v903_v41 = vshll.u32 %v4638_v9, %v888_v56  ;;  %vm909_vm4 = vcmp.lt.s32.totalorder %v4855_v60, 4 }
 0x19e   : > { %v4050_v21 = vadd.s32 4294967294, %v734_v58  ;;  %v4885_v26 = vsub.s32 %v622_v52, %v625_v20  ;;  %vm564_vm5 = vcmp.lt.s32.totalorder %v4750_v38, 0  ;;  %v890_v45 = vshrl.u32 %v4634_v63, %v889_v8 }
 0x19f   : > { %v902_v43 = vor.u32 %v901_v25, %v900_v32  ;;  %v905_v46 = vor.u32 %v904_v28, %v903_v41  ;;  %v911_v49 = vsel %vm909_vm4, %v899_v30, 2102212464  ;;  %v648_v56 = vsub.s32 4, %v4865_v13 }
 0x1a0   : > { %vm4051_vm3 = vcmp.lt.s32.totalorder %v4050_v21, 0  ;;  %v628_v37 = vsub.s32 0, %v4885_v26  ;;  %vm908_vm6 = vcmp.lt.s32.totalorder %v4855_v60, 3  ;;  %v910_v62 = vsel %vm906_vm1, %v890_v45, %v893_v29 }
 0x1a1   : > { %v737_v33 = vsel %vm4051_vm3, 0, %v4050_v21  ;;  %v914_v4 = vsel %vm906_vm1, %v893_v29, %v896_v40  ;;  %v912_v58 = vsel %vm908_vm6, %v896_v40, %v911_v49  ;;  %v915_v36 = vsel %vm909_vm4, %v902_v43, 920167782 }
 0x1a2   : > { %v738_v2 = vsub.s32 32, %v737_v33  ;;  %v742_v42 = vsub.s32 4294967266, %v737_v33  ;;  %v4045_v44 = vmin.u32 %v628_v37, %v4885_v26  ;;  %v739_v59 = vshll.u32 %v730_v50, %v737_v33  ;;  %v4924_v37 = vpop.f32.mrb[9].mxu0 }
 0x1a3   : > { %v918_v20 = vsel %vm906_vm1, %v896_v40, %v899_v30  ;;  %v919_v47 = vsel %vm909_vm4, %v905_v46, 1326507024  ;;  %v618_v40 = vadd.s32 %v4832_v31, %v4838_v34  ;;  %v649_v45 = vsel %vm564_vm5, %v648_v56, %v4865_v13 }
 0x1a4   : > { %v740_v52 = vshrl.u32 %v722_v12, %v738_v2  ;;  %v743_v54 = vadd.s32 127, %v742_v42  ;;  %v630_v55 = vclz %v4045_v44  ;;  %v916_v12 = vsel %vm908_vm6, %v899_v30, %v915_v36 }
 0x1a5   : > { %v917_v22 = vsel %vm907_vm2, %v914_v4, %v916_v12  ;;  %v920_v24 = vsel %vm908_vm6, %v902_v43, %v919_v47  ;;  %v913_v42 = vsel %vm907_vm2, %v910_v62, %v912_v58  ;;  %v759_v44 = vadd.s32 3, %v755_v17 }
 0x1a6   : > { %v741_v11 = vor.u32 %v740_v52, %v739_v59  ;;  %v744_v8 = vshll.u32 %v743_v54, 23  ;;  %v4046_v50 = vadd.s32 4294967294, %v630_v55  ;;  %v921_v25 = vsel %vm907_vm2, %v918_v20, %v920_v24 }
 0x1a7   : > { %v4916_v27 = vmul.u32.u64.low %v4867_v14, %v917_v22  ;;  %v4917_v28 = vmul.u32.u64.high %v4867_v14, %v917_v22, %v4916_v27  ;;  %v4921_v32 = vmul.u32.u64.low %v4867_v14, %v921_v25  ;;  %v4922_v33 = vmul.u32.u64.high %v4867_v14, %v921_v25, %v4921_v32 }
 0x1a8   : > { %v745_v48 = vor.u32 4788187, %v744_v8  ;;  %v748_v21 = vcvt.s32.f32 %v741_v11  ;;  %vm4047_vm7 = vcmp.lt.s32.totalorder %v4046_v50, 0  ;;  %v780_v46 = vadd.s32 1, %v4874_v1 }
 0x1a9   : > { %v633_v30 = vsel %vm4047_vm7, 0, %v4046_v50  ;;  %v932_v59 = vadd.s32 1, %v4917_v28  ;;  %v929_v52 = vmul.u32 %v4867_v14, %v913_v42  ;;  %vm931_vm8 = vc.u32 %v4922_v33, %v4916_v27 }
 0x1aa   : > { %v746_v29 = vand.u32 2147483647, %v745_v48  ;;  %v634_v41 = vsub.s32 32, %v633_v30  ;;  %v638_v2 = vsub.s32 4294967266, %v633_v30  ;;  %v635_v49 = vshll.u32 %v4885_v26, %v633_v30 }
 0x1ab   : > { %vm781_vm9 = vcmp.gt.s32.totalorder %v780_v46, 0  ;;  %v933_v54 = vsel %vm931_vm8, %v932_v59, %v4917_v28  ;;  %vm4948_vm10 = vcmp.le.f32.partialorder %v562_v39, 0.7853982  ;;  %v777_v11 = vand.u32 8388607, %v770_v15 }
 0x1ac   : > { %v749_v43 = vmul.f32 %v748_v21, %v746_v29  ;;  %v636_v31 = vshrl.u32 %v618_v40, %v634_v41  ;;  %v639_v34 = vadd.s32 127, %v638_v2  ;;  %v782_v13 = vsel %vm781_vm9, %v780_v46, 0 }
 0x1ad   : > { %v934_v56 = vadd.s32 %v933_v54, %v929_v52  ;;  %v784_v14 = vand.u32 31, %v782_v13  ;;  %v651_v4 = vsel %vm4948_vm10, 0, %v649_v45  ;;  %v4959_v8 = vand.u32 3, %v759_v44 }
 0x1ae   : > { %v750_v60 = vxor.u32 2147483648, %v749_v43  ;;  %v637_v0 = vor.u32 %v636_v31, %v635_v49  ;;  %v640_v17 = vshll.u32 %v639_v34, 23  ;;  %v655_v12 = vadd.s32 3, %v651_v4 }
 0x1af   : > { %v935_v39 = vadd.s32 536870912, %v934_v56  ;;  %v785_v58 = vsub.s32 32, %v784_v14  ;;  %vm765_vm11 = vcmp.eq.s32.totalorder %v4959_v8, 2  ;;  %v778_v25 = vor.u32 8388608, %v777_v11 }
 0x1b0   : > { %v751_v1 = vsel %vm668_vm15, %v750_v60, %v749_v43  ;;  %v641_v62 = vor.u32 4788187, %v640_v17  ;;  %v644_v50 = vcvt.s32.f32 %v637_v0  ;;  %v4969_v28 = vshrl.u32 %v782_v13, 5 }
 0x1b1   : > { %v754_v55 = vsel %vm4859_vm0, %v4746_v35, %v751_v1  ;;  %v4961_v20 = vshrl.u32 %v935_v39, 30  ;;  %v788_v10 = vshrl.u32 %v4635_v3, %v785_v58  ;;  %v791_v48 = vshrl.u32 %v4636_v5, %v785_v58 }
 0x1b2   : > { %4442 = vcosq.f32 %v754_v55  ;;  %v642_v36 = vand.u32 2147483647, %v641_v62  ;;  %v794_v21 = vshrl.u32 %v4637_v7, %v785_v58  ;;  %v797_v22 = vshrl.u32 %v4638_v9, %v785_v58 }
 0x1b3   : > { %4444 = vsinq.f32 %v754_v55  ;;  %v937_v24 = vshll.u32 %v4961_v20, 30  ;;  %v793_v29 = vshll.u32 %v4636_v5, %v784_v14  ;;  %vm762_vm12 = vcmp.eq.s32.totalorder %v4959_v8, 0 }
 0x1b4   : > { %v645_v47 = vmul.f32 %v644_v50, %v642_v36  ;;  %v787_v32 = vshll.u32 %v4634_v63, %v784_v14  ;;  %v790_v40 = vshll.u32 %v4635_v3, %v784_v14  ;;  %v796_v41 = vshll.u32 %v4637_v7, %v784_v14 }
 0x1b5   : > { %vm761_vm13 = vcmp.lt.s32.totalorder %v4959_v8, 2  ;;  %v4977_v2 = vand.u32 3, %v655_v12  ;;  %v4979_v42 = vsub.s32 %v934_v56, %v937_v24  ;;  %v795_v43 = vor.u32 %v794_v21, %v793_v29 }
 0x1b6   : > { %v646_v30 = vxor.u32 2147483648, %v645_v47  ;;  %v800_v44 = vshrl.u32 %v4639_v16, %v785_v58  ;;  %vm758_vm14 = vweird.f32 %v4746_v35  ;;  %v789_v46 = vor.u32 %v788_v10, %v787_v32 }
 0x1b7   : > { %v792_v49 = vor.u32 %v791_v48, %v790_v40  ;;  %v798_v31 = vor.u32 %v797_v22, %v796_v41  ;;  %v940_v59 = vsub.s32 0, %v4979_v42  ;;  %v799_v60 = vshll.u32 %v4638_v9, %v784_v14 }
 0x1b8   : > { %v647_v45 = vsel %vm564_vm5, %v646_v30, %v645_v47  ;;  %v4990_v52 = vshll.u32 %v778_v25, 8  ;;  %v786_v0 = vshrl.u32 %v4634_v63, %v785_v58  ;;  %vm802_vm15 = vcmp.lt.s32.totalorder %v4969_v28, 1 }
 0x1b9   : > { %v650_v34 = vsel %vm4948_vm10, %v4750_v38, %v647_v45  ;;  %vm805_vm0 = vcmp.lt.s32.totalorder %v4969_v28, 4  ;;  %v4057_v54 = vmin.u32 %v940_v59, %v4979_v42  ;;  %v801_v13 = vor.u32 %v800_v44, %v799_v60 }
 0x1ba   : > { %4446 = vcosq.f32 %v650_v34  ;;  %v807_v1 = vsel %vm805_vm0, %v795_v43, 2102212464  ;;  %vm803_vm1 = vcmp.lt.s32.totalorder %v4969_v28, 2  ;;  %v810_v14 = vsel %vm802_vm15, %v789_v46, %v792_v49 }
 0x1bb   : > { %4448 = vsinq.f32 %v650_v34  ;;  %v811_v55 = vsel %vm805_vm0, %v798_v31, 920167782  ;;  %vm876_vm2 = vcmp.lt.s32.totalorder %v4758_v51, 0  ;;  %v942_v4 = vclz %v4057_v54 }
 0x1bc   : > { %v4443_v17 = vpop.eup %4442  ;;  %vm804_vm3 = vcmp.lt.s32.totalorder %v4969_v28, 3  ;;  %v806_v11 = vsel %vm802_vm15, %v786_v0, %v789_v46  ;;  %v814_v50 = vsel %vm802_vm15, %v792_v49, %v795_v43  ;;  %v815_v48 = vsel %vm805_vm0, %v801_v13, 1326507024 }
 0x1bd   : > { %v4445_v26 = vpop.eup %4444  ;;  %v766_v56 = vxor.u32 2147483648, %v4443_v17  ;;  %v808_v58 = vsel %vm804_vm3, %v792_v49, %v807_v1  ;;  %v812_v36 = vsel %vm804_vm3, %v795_v43, %v811_v55  ;;  %v4058_v10 = vadd.s32 4294967294, %v942_v4 }
 0x1be   : > { %v763_v62 = vxor.u32 2147483648, %v4445_v26  ;;  %v813_v47 = vsel %vm803_vm1, %v810_v14, %v812_v36  ;;  %vm5023_vm4 = vcmp.le.f32.partialorder %v874_v61, 0.7853982  ;;  %v816_v24 = vsel %vm804_vm3, %v798_v31, %v815_v48 }
 0x1bf   : > { %v767_v39 = vsel %vm765_vm11, %v766_v56, %v4445_v26  ;;  %v5028_v25 = vmul.u32.u64.low %v4990_v52, %v813_v47  ;;  %v5029_v29 = vmul.u32.u64.high %v4990_v52, %v813_v47, %v5028_v25  ;;  %vm654_vm5 = vweird.f32 %v4750_v38 }
 0x1c0   : > { %v764_v12 = vsel %vm762_vm12, %v4443_v17, %v763_v62  ;;  %v930_v8 = vadd.s32 %v4916_v27, %v4922_v33  ;;  %vm4059_vm6 = vcmp.lt.s32.totalorder %v4058_v10, 0  ;;  %v817_v61 = vsel %vm803_vm1, %v814_v50, %v816_v24  ;;  %v5064_v62 = vpop.f32.mrb[10].mxu0 }
 0x1c1   : > { %v768_v21 = vsel %vm761_vm13, %v764_v12, %v767_v39  ;;  %v945_v32 = vsel %vm4059_vm6, 0, %v4058_v10  ;;  %v960_v40 = vsub.s32 4, %v4961_v20  ;;  %v809_v27 = vsel %vm803_vm1, %v806_v11, %v808_v58 }
 0x1c2   : > { %v769_v30 = vsel %vm758_vm14, nan, %v768_v21  ;;  %v5044_v41 = vmul.u32.u64.low %v4990_v52, %v817_v61  ;;  %v5045_v35 = vmul.u32.u64.high %v4990_v52, %v817_v61, %v5044_v41  ;;  %v946_v43 = vsub.s32 32, %v945_v32 }
 0x1c3   : > { %3891 = vst [vmem:[%s5039_s30 + $0x8] sm:$0xff] %v769_v30  ;;  %v950_v44 = vsub.s32 4294967266, %v945_v32  ;;  %v1085_v33 = vand.u32 2139095040, %v4783_v18  ;;  %vm658_vm7 = vcmp.eq.s32.totalorder %v4977_v2, 0  ;;  %vm661_vm8 = vcmp.eq.s32.totalorder %v4977_v2, 2 }
 0x1c4   : > { %v4447_v45 = vpop.eup %4446  ;;  %v947_v46 = vshll.u32 %v4979_v42, %v945_v32  ;;  %v828_v49 = vadd.s32 1, %v5029_v29  ;;  %v948_v59 = vshrl.u32 %v930_v8, %v946_v43  ;;  %v961_v28 = vsel %vm876_vm2, %v960_v40, %v4961_v20 }
 0x1c5   : > { %v4449_v31 = vpop.eup %4448  ;;  %v662_v34 = vxor.u32 2147483648, %v4447_v45  ;;  %v951_v60 = vadd.s32 127, %v950_v44  ;;  %v1086_v0 = vshrl.u32 %v1085_v33, 23  ;;  %v825_v54 = vmul.u32 %v4990_v52, %v809_v27 }
 0x1c6   : > { %v659_v17 = vxor.u32 2147483648, %v4449_v31  ;;  %vm827_vm9 = vc.u32 %v5045_v35, %v5028_v25  ;;  %v949_v42 = vor.u32 %v948_v59, %v947_v46  ;;  %vm657_vm10 = vcmp.lt.s32.totalorder %v4977_v2, 2 }
 0x1c7   : > { %v663_v13 = vsel %vm661_vm8, %v662_v34, %v4449_v31  ;;  %v952_v1 = vshll.u32 %v951_v60, 23  ;;  %v829_v26 = vsel %vm827_vm9, %v828_v49, %v5029_v29  ;;  %v4064_v55 = vadd.s32 4294967169, %v1086_v0 }
 0x1c8   : > { %v660_v56 = vsel %vm658_vm7, %v4447_v45, %v659_v17  ;;  %v830_v14 = vadd.s32 %v829_v26, %v825_v54  ;;  %v963_v4 = vsel %vm5023_vm4, 0, %v961_v28  ;;  %v1082_v11 = vand.u32 2147483647, %v4783_v18 }
 0x1c9   : > { %v664_v20 = vsel %vm657_vm10, %v660_v56, %v663_v13  ;;  %v953_v52 = vor.u32 4788187, %v952_v1  ;;  %v1092_v36 = vadd.s32 1, %v4064_v55  ;;  %v956_v2 = vcvt.s32.f32 %v949_v42 }
 0x1ca   : > { %v665_v39 = vsel %vm654_vm5, nan, %v664_v20  ;;  %v831_v58 = vadd.s32 536870912, %v830_v14  ;;  %v967_v12 = vadd.s32 3, %v963_v4  ;;  %v1089_v48 = vand.u32 8388607, %v1082_v11 }
 0x1cb   : > { %3890 = vst [vmem:[%s5039_s30] sm:$0xff] %v665_v39  ;;  %v954_v50 = vand.u32 2147483647, %v953_v52  ;;  %vm1093_vm11 = vcmp.gt.s32.totalorder %v1092_v36, 0  ;;  %v981_v24 = vand.u32 2139095040, %v4785_v23  ;;  %v978_v40 = vand.u32 2147483647, %v4785_v23 }
 0x1cc   : > { %v5072_v10 = vshrl.u32 %v831_v58, 30  ;;  %v1094_v21 = vsel %vm1093_vm11, %v1092_v36, 0  ;;  %v5078_v8 = vand.u32 3, %v967_v12  ;;  %v1090_v43 = vor.u32 8388608, %v1089_v48 }
 0x1cd   : > { %v957_v47 = vmul.f32 %v956_v2, %v954_v50  ;;  %v1096_v38 = vand.u32 31, %v1094_v21  ;;  %v982_v27 = vshrl.u32 %v981_v24, 23  ;;  %v1095_v0 = vshrl.u32 %v1094_v21, 5  ;;  %v5111_v21 = vpop.f32.mrb[11].mxu0 }
 0x1ce   : > { %v833_v29 = vshll.u32 %v5072_v10, 30  ;;  %v826_v42 = vadd.s32 %v5028_v25, %v5045_v35  ;;  %v856_v26 = vsub.s32 4, %v5072_v10  ;;  %v5101_v56 = vshll.u32 %v1090_v43, 8 }
 0x1cf   : > { %v958_v30 = vxor.u32 2147483648, %v957_v47  ;;  %v1097_v32 = vsub.s32 32, %v1096_v38  ;;  %v1099_v44 = vshll.u32 %v4634_v63, %v1096_v38  ;;  %v1102_v46 = vshll.u32 %v4635_v3, %v1096_v38 }
 0x1d0   : > { %v5080_v61 = vsub.s32 %v830_v14, %v833_v29  ;;  %v1105_v49 = vshll.u32 %v4636_v5, %v1096_v38  ;;  %v1108_v22 = vshll.u32 %v4637_v7, %v1096_v38  ;;  %vm973_vm12 = vcmp.eq.s32.totalorder %v5078_v8, 2 }
 0x1d1   : > { %v959_v41 = vsel %vm876_vm2, %v958_v30, %v957_v47  ;;  %v1100_v31 = vshrl.u32 %v4635_v3, %v1097_v32  ;;  %v1103_v34 = vshrl.u32 %v4636_v5, %v1097_v32  ;;  %v1106_v59 = vshrl.u32 %v4637_v7, %v1097_v32 }
 0x1d2   : > { %v962_v33 = vsel %vm5023_vm4, %v4758_v51, %v959_v41  ;;  %v836_v45 = vsub.s32 0, %v5080_v61  ;;  %v1109_v13 = vshrl.u32 %v4638_v9, %v1097_v32  ;;  %v1111_v55 = vshll.u32 %v4638_v9, %v1096_v38 }
 0x1d3   : > { %4450 = vcosq.f32 %v962_v33  ;;  %v1101_v17 = vor.u32 %v1100_v31, %v1099_v44  ;;  %v1104_v28 = vor.u32 %v1103_v34, %v1102_v46  ;;  %v1107_v54 = vor.u32 %v1106_v59, %v1105_v49 }
 0x1d4   : > { %4452 = vsinq.f32 %v962_v33  ;;  %v4053_v60 = vmin.u32 %v836_v45, %v5080_v61  ;;  %v1110_v14 = vor.u32 %v1109_v13, %v1108_v22  ;;  %v1112_v20 = vshrl.u32 %v4639_v16, %v1097_v32 }
 0x1d5   : > { %v4060_v52 = vadd.s32 4294967169, %v982_v27  ;;  %vm970_vm13 = vcmp.eq.s32.totalorder %v5078_v8, 0  ;;  %v1098_v39 = vshrl.u32 %v4634_v63, %v1097_v32  ;;  %vm1114_vm14 = vcmp.lt.s32.totalorder %v1095_v0, 1 }
 0x1d6   : > { %v838_v1 = vclz %v4053_v60  ;;  %vm1117_vm15 = vcmp.lt.s32.totalorder %v1095_v0, 4  ;;  %vm969_vm0 = vcmp.lt.s32.totalorder %v5078_v8, 2  ;;  %vm772_vm1 = vcmp.lt.s32.totalorder %v4761_v53, 0 }
 0x1d7   : > { %v1113_v25 = vor.u32 %v1112_v20, %v1111_v55  ;;  %vm1115_vm2 = vcmp.lt.s32.totalorder %v1095_v0, 2  ;;  %v1119_v35 = vsel %vm1117_vm15, %v1107_v54, 2102212464  ;;  %v1122_v58 = vsel %vm1114_vm14, %v1101_v17, %v1104_v28 }
 0x1d8   : > { %v4054_v4 = vadd.s32 4294967294, %v838_v1  ;;  %vm966_vm3 = vweird.f32 %v4758_v51  ;;  %vm1116_vm5 = vcmp.lt.s32.totalorder %v1095_v0, 3  ;;  %v1118_v36 = vsel %vm1114_vm14, %v1098_v39, %v1101_v17 }
 0x1d9   : > { %v1123_v50 = vsel %vm1117_vm15, %v1110_v14, 920167782  ;;  %v1126_v47 = vsel %vm1114_vm14, %v1104_v28, %v1107_v54  ;;  %v1127_v48 = vsel %vm1117_vm15, %v1113_v25, 1326507024  ;;  %v1120_v38 = vsel %vm1116_vm5, %v1104_v28, %v1119_v35 }
 0x1da   : > { %vm4055_vm4 = vcmp.lt.s32.totalorder %v4054_v4, 0  ;;  %v1124_v12 = vsel %vm1116_vm5, %v1107_v54, %v1123_v50  ;;  %v1128_v43 = vsel %vm1116_vm5, %v1110_v14, %v1127_v48  ;;  %v988_v22 = vadd.s32 1, %v4060_v52 }
 0x1db   : > { %v841_v2 = vsel %vm4055_vm4, 0, %v4054_v4  ;;  %v1125_v30 = vsel %vm1115_vm2, %v1122_v58, %v1124_v12  ;;  %v1129_v31 = vsel %vm1115_vm2, %v1126_v47, %v1128_v43  ;;  %v1121_v54 = vsel %vm1115_vm2, %v1118_v36, %v1120_v38 }
 0x1dc   : > { %v842_v24 = vsub.s32 32, %v841_v2  ;;  %v846_v29 = vsub.s32 4294967266, %v841_v2  ;;  %v843_v41 = vshll.u32 %v5080_v61, %v841_v2  ;;  %v985_v1 = vand.u32 8388607, %v978_v40 }
 0x1dd   : > { %v4451_v32 = vpop.eup %4450  ;;  %v5116_v44 = vmul.u32.u64.low %v5101_v56, %v1125_v30  ;;  %v5117_v27 = vmul.u32.u64.high %v5101_v56, %v1125_v30, %v5116_v44  ;;  %v5122_v59 = vmul.u32.u64.low %v5101_v56, %v1129_v31  ;;  %v5123_v60 = vmul.u32.u64.high %v5101_v56, %v1129_v31, %v5122_v59 }
 0x1de   : > { %v4453_v33 = vpop.eup %4452  ;;  %v974_v45 = vxor.u32 2147483648, %v4451_v32  ;;  %v844_v46 = vshrl.u32 %v826_v42, %v842_v24  ;;  %v847_v49 = vadd.s32 127, %v846_v29  ;;  %vm989_vm6 = vcmp.gt.s32.totalorder %v988_v22, 0 }
 0x1df   : > { %v971_v34 = vxor.u32 2147483648, %v4453_v33  ;;  %v1140_v42 = vadd.s32 1, %v5117_v27  ;;  %v857_v20 = vsel %vm772_vm1, %v856_v26, %v5072_v10  ;;  %v990_v52 = vsel %vm989_vm6, %v988_v22, 0 }
 0x1e0   : > { %v975_v61 = vsel %vm973_vm12, %v974_v45, %v4453_v33  ;;  %v845_v17 = vor.u32 %v844_v46, %v843_v41  ;;  %v848_v28 = vshll.u32 %v847_v49, 23  ;;  %vm5142_vm7 = vcmp.le.f32.partialorder %v770_v15, 0.7853982 }
 0x1e1   : > { %v972_v13 = vsel %vm970_vm13, %v4451_v32, %v971_v34  ;;  %v1137_v39 = vmul.u32 %v5101_v56, %v1121_v54  ;;  %vm1139_vm8 = vc.u32 %v5123_v60, %v5116_v44  ;;  %v992_v26 = vand.u32 31, %v990_v52 }
 0x1e2   : > { %v976_v14 = vsel %vm969_vm0, %v972_v13, %v975_v61  ;;  %v849_v55 = vor.u32 4788187, %v848_v28  ;;  %v852_v25 = vcvt.s32.f32 %v845_v17  ;;  %v1141_v10 = vsel %vm1139_vm8, %v1140_v42, %v5117_v27 }
 0x1e3   : > { %v977_v0 = vsel %vm966_vm3, nan, %v976_v14  ;;  %v859_v51 = vsel %vm5142_vm7, 0, %v857_v20  ;;  %v1142_v35 = vadd.s32 %v1141_v10, %v1137_v39  ;;  %v986_v58 = vor.u32 8388608, %v985_v1 }
 0x1e4   : > { %3893 = vst [vmem:[%s5039_s30 + $0x18] sm:$0xff] %v977_v0  ;;  %v850_v8 = vand.u32 2147483647, %v849_v55  ;;  %v5153_v36 = vshrl.u32 %v990_v52, 5  ;;  %v993_v50 = vsub.s32 32, %v992_v26  ;;  %v1293_v56 = vand.u32 2139095040, %v4808_v57 }
 0x1e5   : > { %v1143_v2 = vadd.s32 536870912, %v1142_v35  ;;  %v995_v12 = vshll.u32 %v4634_v63, %v992_v26  ;;  %v998_v47 = vshll.u32 %v4635_v3, %v992_v26  ;;  %v1001_v48 = vshll.u32 %v4636_v5, %v992_v26 }
 0x1e6   : > { %v853_v15 = vmul.f32 %v852_v25, %v850_v8  ;;  %v996_v29 = vshrl.u32 %v4635_v3, %v993_v50  ;;  %v999_v38 = vshrl.u32 %v4636_v5, %v993_v50  ;;  %v1004_v30 = vshll.u32 %v4637_v7, %v992_v26 }
 0x1e7   : > { %v5162_v32 = vshrl.u32 %v1143_v2, 30  ;;  %v1002_v41 = vshrl.u32 %v4637_v7, %v993_v50  ;;  %v1005_v43 = vshrl.u32 %v4638_v9, %v993_v50  ;;  %v1008_v27 = vshrl.u32 %v4639_v16, %v993_v50 }
 0x1e8   : > { %v854_v24 = vxor.u32 2147483648, %v853_v15  ;;  %v997_v45 = vor.u32 %v996_v29, %v995_v12  ;;  %v1000_v46 = vor.u32 %v999_v38, %v998_v47  ;;  %v1007_v49 = vshll.u32 %v4638_v9, %v992_v26 }
 0x1e9   : > { %v863_v34 = vadd.s32 3, %v859_v51  ;;  %v1145_v59 = vshll.u32 %v5162_v32, 30  ;;  %v1003_v22 = vor.u32 %v1002_v41, %v1001_v48  ;;  %v1006_v61 = vor.u32 %v1005_v43, %v1004_v30 }
 0x1ea   : > { %v855_v33 = vsel %vm772_vm1, %v854_v24, %v853_v15  ;;  %v1009_v17 = vor.u32 %v1008_v27, %v1007_v49  ;;  %v1294_v28 = vshrl.u32 %v1293_v56, 23  ;;  %vm1010_vm9 = vcmp.lt.s32.totalorder %v5153_v36, 1 }
 0x1eb   : > { %v858_v31 = vsel %vm5142_vm7, %v4761_v53, %v855_v33  ;;  %v5174_v54 = vsub.s32 %v1142_v35, %v1145_v59  ;;  %vm1013_vm10 = vcmp.lt.s32.totalorder %v5153_v36, 4  ;;  %vm1012_vm11 = vcmp.lt.s32.totalorder %v5153_v36, 3 }
 0x1ec   : > { %4454 = vcosq.f32 %v858_v31  ;;  %v1018_v13 = vsel %vm1010_vm9, %v997_v45, %v1000_v46  ;;  %v1019_v42 = vsel %vm1013_vm10, %v1006_v61, 920167782  ;;  %v1026_v1 = vshll.u32 %v986_v58, 8 }
 0x1ed   : > { %4456 = vsinq.f32 %v858_v31  ;;  %v864_v14 = vand.u32 3, %v863_v34  ;;  %v1148_v55 = vsub.s32 0, %v5174_v54  ;;  %vm1011_vm12 = vcmp.lt.s32.totalorder %v5153_v36, 2 }
 0x1ee   : > { %v1020_v20 = vsel %vm1012_vm11, %v1003_v22, %v1019_v42  ;;  %v1015_v52 = vsel %vm1013_vm10, %v1003_v22, 2102212464  ;;  %v1022_v4 = vsel %vm1010_vm9, %v1000_v46, %v1003_v22  ;;  %v1023_v39 = vsel %vm1013_vm10, %v1009_v17, 1326507024 }
 0x1ef   : > { %v1021_v0 = vsel %vm1011_vm12, %v1018_v13, %v1020_v20  ;;  %v4065_v8 = vmin.u32 %v1148_v55, %v5174_v54  ;;  %v994_v25 = vshrl.u32 %v4634_v63, %v993_v50  ;;  %v1024_v10 = vsel %vm1012_vm11, %v1006_v61, %v1023_v39  ;;  %v5227_v20 = vpop.f32.mrb[12].mxu0 }
 0x1f0   : > { %v4072_v26 = vadd.s32 4294967169, %v1294_v28  ;;  %v1025_v51 = vsel %vm1011_vm12, %v1022_v4, %v1024_v10  ;;  %v5195_v35 = vmul.u32.u64.low %v1026_v1, %v1021_v0  ;;  %v5196_v58 = vmul.u32.u64.high %v1026_v1, %v1021_v0, %v5195_v35 }
 0x1f1   : > { %v1290_v15 = vand.u32 2147483647, %v4808_v57  ;;  %vm862_vm13 = vweird.f32 %v4761_v53  ;;  %vm1084_vm14 = vcmp.lt.s32.totalorder %v4783_v18, 0  ;;  %v1150_v56 = vclz %v4065_v8 }
 0x1f2   : > { %v1014_v50 = vsel %vm1010_vm9, %v994_v25, %v997_v45  ;;  %v1016_v2 = vsel %vm1012_vm11, %v1000_v46, %v1015_v52  ;;  %v1168_v12 = vsub.s32 4, %v5162_v32  ;;  %v1300_v24 = vadd.s32 1, %v4072_v26 }
 0x1f3   : > { %v5207_v47 = vmul.u32.u64.low %v1026_v1, %v1025_v51  ;;  %v5208_v48 = vmul.u32.u64.high %v1026_v1, %v1025_v51, %v5207_v47  ;;  %vm865_vm15 = vcmp.lt.s32.totalorder %v864_v14, 2  ;;  %vm866_vm0 = vcmp.eq.s32.totalorder %v864_v14, 0 }
 0x1f4   : > { %vm869_vm1 = vcmp.eq.s32.totalorder %v864_v14, 2  ;;  %v4066_v29 = vadd.s32 4294967294, %v1150_v56  ;;  %v1017_v30 = vsel %vm1011_vm12, %v1014_v50, %v1016_v2  ;;  %v1036_v41 = vadd.s32 1, %v5196_v58 }
 0x1f5   : > { %v1297_v43 = vand.u32 8388607, %v1290_v15  ;;  %vm1301_vm2 = vcmp.gt.s32.totalorder %v1300_v24, 0  ;;  %v1138_v45 = vadd.s32 %v5116_v44, %v5123_v60  ;;  %v1169_v36 = vsel %vm1084_vm14, %v1168_v12, %v5162_v32 }
 0x1f6   : > { %v4455_v38 = vpop.eup %4454  ;;  %vm4067_vm3 = vcmp.lt.s32.totalorder %v4066_v29, 0  ;;  %v1302_v46 = vsel %vm1301_vm2, %v1300_v24, 0  ;;  %vm1035_vm4 = vc.u32 %v5208_v48, %v5195_v35  ;;  %v1033_v61 = vmul.u32 %v1026_v1, %v1017_v30 }
 0x1f7   : > { %v4457_v27 = vpop.eup %4456  ;;  %v870_v33 = vxor.u32 2147483648, %v4455_v38  ;;  %v1153_v31 = vsel %vm4067_vm3, 0, %v4066_v29  ;;  %v1037_v60 = vsel %vm1035_vm4, %v1036_v41, %v5196_v58  ;;  %v1304_v28 = vand.u32 31, %v1302_v46 }
 0x1f8   : > { %v867_v49 = vxor.u32 2147483648, %v4457_v27  ;;  %v1154_v59 = vsub.s32 32, %v1153_v31  ;;  %v1158_v22 = vsub.s32 4294967266, %v1153_v31  ;;  %v1155_v44 = vshll.u32 %v5174_v54, %v1153_v31 }
 0x1f9   : > { %v871_v34 = vsel %vm869_vm1, %v870_v33, %v4457_v27  ;;  %v1038_v55 = vadd.s32 %v1037_v60, %v1033_v61  ;;  %v1305_v0 = vsub.s32 32, %v1304_v28  ;;  %vm5234_vm5 = vcmp.le.f32.partialorder %v1082_v11, 0.7853982 }
 0x1fa   : > { %v868_v17 = vsel %vm866_vm0, %v4455_v38, %v867_v49  ;;  %v1156_v42 = vshrl.u32 %v1138_v45, %v1154_v59  ;;  %v1159_v32 = vadd.s32 127, %v1158_v22  ;;  %v1171_v39 = vsel %vm5234_vm5, 0, %v1169_v36 }
 0x1fb   : > { %v872_v13 = vsel %vm865_vm15, %v868_v17, %v871_v34  ;;  %v1039_v14 = vadd.s32 536870912, %v1038_v55  ;;  %v1298_v8 = vor.u32 8388608, %v1297_v43  ;;  %v1303_v25 = vshrl.u32 %v1302_v46, 5 }
 0x1fc   : > { %v873_v52 = vsel %vm862_vm13, nan, %v872_v13  ;;  %v1157_v54 = vor.u32 %v1156_v42, %v1155_v44  ;;  %v1160_v4 = vshll.u32 %v1159_v32, 23  ;;  %v1308_v10 = vshrl.u32 %v4635_v3, %v1305_v0 }
 0x1fd   : > { %3892 = vst [vmem:[%s5039_s30 + $0x10] sm:$0xff] %v873_v52  ;;  %v1040_v26 = vshrl.u32 %v1039_v14, 30  ;;  %v1311_v51 = vshrl.u32 %v4636_v5, %v1305_v0  ;;  %v1314_v58 = vshrl.u32 %v4637_v7, %v1305_v0  ;;  %v1307_v11 = vshll.u32 %v4634_v63, %v1304_v28 }
 0x1fe   : > { %v1161_v53 = vor.u32 4788187, %v1160_v4  ;;  %v1310_v56 = vshll.u32 %v4635_v3, %v1304_v28  ;;  %v1316_v50 = vshll.u32 %v4637_v7, %v1304_v28  ;;  %v1317_v2 = vshrl.u32 %v4638_v9, %v1305_v0 }
 0x1ff   : > { %v1164_v47 = vcvt.s32.f32 %v1157_v54  ;;  %v1041_v24 = vshll.u32 %v1040_v26, 30  ;;  %v1313_v29 = vshll.u32 %v4636_v5, %v1304_v28  ;;  %v1309_v38 = vor.u32 %v1308_v10, %v1307_v11  ;;  %v5265_v10 = vpop.f32.mrb[13].mxu0 }
 0x200   : > { %v1162_v12 = vand.u32 2147483647, %v1161_v53  ;;  %v1318_v30 = vor.u32 %v1317_v2, %v1316_v50  ;;  %v1319_v41 = vshll.u32 %v4638_v9, %v1304_v28  ;;  %v1320_v43 = vshrl.u32 %v4639_v16, %v1305_v0 }
 0x201   : > { %v5250_v33 = vsub.s32 %v1038_v55, %v1041_v24  ;;  %v1312_v45 = vor.u32 %v1311_v51, %v1310_v56  ;;  %v1315_v46 = vor.u32 %v1314_v58, %v1313_v29  ;;  %v1175_v49 = vadd.s32 3, %v1171_v39 }
 0x202   : > { %v1165_v27 = vmul.f32 %v1164_v47, %v1162_v12  ;;  %v1321_v31 = vor.u32 %v1320_v43, %v1319_v41  ;;  %v1338_v36 = vshll.u32 %v1298_v8, 8  ;;  %v1189_v34 = vand.u32 2139095040, %v4814_v6 }
 0x203   : > { %v1044_v22 = vsub.s32 0, %v5250_v33  ;;  %v1306_v61 = vshrl.u32 %v4634_v63, %v1305_v0  ;;  %vm1325_vm6 = vcmp.lt.s32.totalorder %v1303_v25, 4  ;;  %v1064_v17 = vsub.s32 4, %v1040_v26 }
 0x204   : > { %v1166_v59 = vxor.u32 2147483648, %v1165_v27  ;;  %vm1322_vm7 = vcmp.lt.s32.totalorder %v1303_v25, 1  ;;  %vm1324_vm8 = vcmp.lt.s32.totalorder %v1303_v25, 3  ;;  %v1331_v44 = vsel %vm1325_vm6, %v1318_v30, 920167782 }
 0x205   : > { %v4061_v28 = vmin.u32 %v1044_v22, %v5250_v33  ;;  %v1327_v13 = vsel %vm1325_vm6, %v1315_v46, 2102212464  ;;  %v1330_v42 = vsel %vm1322_vm7, %v1309_v38, %v1312_v45  ;;  %v1332_v55 = vsel %vm1324_vm8, %v1315_v46, %v1331_v44 }
 0x206   : > { %v1167_v60 = vsel %vm1084_vm14, %v1166_v59, %v1165_v27  ;;  %v1334_v52 = vsel %vm1322_vm7, %v1312_v45, %v1315_v46  ;;  %v1335_v0 = vsel %vm1325_vm6, %v1321_v31, 1326507024  ;;  %vm1323_vm9 = vcmp.lt.s32.totalorder %v1303_v25, 2 }
 0x207   : > { %v1170_v32 = vsel %vm5234_vm5, %v4783_v18, %v1167_v60  ;;  %v1046_v54 = vclz %v4061_v28  ;;  %v1326_v4 = vsel %vm1322_vm7, %v1306_v61, %v1309_v38  ;;  %v1328_v14 = vsel %vm1324_vm8, %v1312_v45, %v1327_v13 }
 0x208   : > { %4458 = vcosq.f32 %v1170_v32  ;;  %v1333_v39 = vsel %vm1323_vm9, %v1330_v42, %v1332_v55  ;;  %v1336_v8 = vsel %vm1324_vm8, %v1318_v30, %v1335_v0  ;;  %vm980_vm10 = vcmp.lt.s32.totalorder %v4785_v23, 0 }
 0x209   : > { %4460 = vsinq.f32 %v1170_v32  ;;  %v4062_v53 = vadd.s32 4294967294, %v1046_v54  ;;  %v1337_v1 = vsel %vm1323_vm9, %v1334_v52, %v1336_v8  ;;  %v1190_v50 = vshrl.u32 %v1189_v34, 23 }
 0x20a   : > { %v5268_v51 = vmul.u32.u64.low %v1338_v36, %v1333_v39  ;;  %v5269_v58 = vmul.u32.u64.high %v1338_v36, %v1333_v39, %v5268_v51  ;;  %v5273_v11 = vmul.u32.u64.low %v1338_v36, %v1337_v1  ;;  %v5274_v56 = vmul.u32.u64.high %v1338_v36, %v1337_v1, %v5273_v11 }
 0x20b   : > { %vm5278_vm11 = vcmp.le.f32.partialorder %v978_v40, 0.7853982  ;;  %vm4063_vm12 = vcmp.lt.s32.totalorder %v4062_v53, 0  ;;  %v1065_v12 = vsel %vm980_vm10, %v1064_v17, %v1040_v26  ;;  %v1329_v47 = vsel %vm1323_vm9, %v1326_v4, %v1328_v14 }
 0x20c   : > { %v1176_v24 = vand.u32 3, %v1175_v49  ;;  %v1049_v29 = vsel %vm4063_vm12, 0, %v4062_v53  ;;  %v1186_v38 = vand.u32 2147483647, %v4814_v6  ;;  %v4068_v30 = vadd.s32 4294967169, %v1190_v50 }
 0x20d   : > { %v1034_v41 = vadd.s32 %v5195_v35, %v5208_v48  ;;  %v1050_v43 = vsub.s32 32, %v1049_v29  ;;  %v1054_v27 = vsub.s32 4294967266, %v1049_v29  ;;  %v1348_v40 = vadd.s32 1, %v5269_v58 }
 0x20e   : > { %v1067_v45 = vsel %vm5278_vm11, 0, %v1065_v12  ;;  %v1345_v46 = vmul.u32 %v1338_v36, %v1329_v47  ;;  %vm1347_vm13 = vc.u32 %v5274_v56, %v5268_v51  ;;  %v1196_v25 = vadd.s32 1, %v4068_v30 }
 0x20f   : > { %v1051_v26 = vshll.u32 %v5250_v33, %v1049_v29  ;;  %v1052_v49 = vshrl.u32 %v1034_v41, %v1050_v43  ;;  %v1055_v31 = vadd.s32 127, %v1054_v27  ;;  %v1349_v34 = vsel %vm1347_vm13, %v1348_v40, %v5269_v58 }
 0x210   : > { %vm1174_vm14 = vweird.f32 %v4783_v18  ;;  %vm1177_vm15 = vcmp.lt.s32.totalorder %v1176_v24, 2  ;;  %v1350_v35 = vadd.s32 %v1349_v34, %v1345_v46  ;;  %vm1197_vm0 = vcmp.gt.s32.totalorder %v1196_v25, 0 }
 0x211   : > { %v1053_v59 = vor.u32 %v1052_v49, %v1051_v26  ;;  %v1056_v22 = vshll.u32 %v1055_v31, 23  ;;  %v1071_v61 = vadd.s32 3, %v1067_v45  ;;  %v1198_v36 = vsel %vm1197_vm0, %v1196_v25, 0 }
 0x212   : > { %v4459_v48 = vpop.eup %4458  ;;  %v1351_v60 = vadd.s32 536870912, %v1350_v35  ;;  %v1193_v33 = vand.u32 8388607, %v1186_v38  ;;  %v1200_v28 = vand.u32 31, %v1198_v36  ;;  %vm1178_vm1 = vcmp.eq.s32.totalorder %v1176_v24, 0 }
 0x213   : > { %v4461_v17 = vpop.eup %4460  ;;  %v1182_v44 = vxor.u32 2147483648, %v4459_v48  ;;  %vm1181_vm2 = vcmp.eq.s32.totalorder %v1176_v24, 2  ;;  %v1057_v42 = vor.u32 4788187, %v1056_v22  ;;  %v1501_v0 = vand.u32 2139095040, %v4876_v19 }
 0x214   : > { %v1179_v13 = vxor.u32 2147483648, %v4461_v17  ;;  %v5298_v55 = vshrl.u32 %v1351_v60, 30  ;;  %v1201_v52 = vsub.s32 32, %v1200_v28  ;;  %v1060_v14 = vcvt.s32.f32 %v1053_v59 }
 0x215   : > { %v1183_v32 = vsel %vm1181_vm2, %v1182_v44, %v4461_v17  ;;  %v1058_v4 = vand.u32 2147483647, %v1057_v42  ;;  %v5301_v39 = vand.u32 3, %v1071_v61  ;;  %v1194_v1 = vor.u32 8388608, %v1193_v33 }
 0x216   : > { %v1180_v54 = vsel %vm1178_vm1, %v4459_v48, %v1179_v13  ;;  %v1353_v53 = vshll.u32 %v5298_v55, 30  ;;  %v1498_v58 = vand.u32 2147483647, %v4876_v19  ;;  %v1204_v12 = vshrl.u32 %v4635_v3, %v1201_v52 }
 0x217   : > { %v1184_v8 = vsel %vm1177_vm15, %v1180_v54, %v1183_v32  ;;  %v1061_v50 = vmul.f32 %v1060_v14, %v1058_v4  ;;  %v1207_v47 = vshrl.u32 %v4636_v5, %v1201_v52  ;;  %v1203_v30 = vshll.u32 %v4634_v63, %v1200_v28 }
 0x218   : > { %v1185_v11 = vsel %vm1174_vm14, nan, %v1184_v8  ;;  %v5311_v29 = vsub.s32 %v1350_v35, %v1353_v53  ;;  %v1210_v24 = vshrl.u32 %v4637_v7, %v1201_v52  ;;  %v1502_v41 = vshrl.u32 %v1501_v0, 23 }
 0x219   : > { %3895 = vst [vmem:[%s5039_s30 + $0x28] sm:$0xff] %v1185_v11  ;;  %v1062_v43 = vxor.u32 2147483648, %v1061_v50  ;;  %v1199_v27 = vshrl.u32 %v1198_v36, 5  ;;  %v1206_v40 = vshll.u32 %v4635_v3, %v1200_v28  ;;  %v1209_v18 = vshll.u32 %v4636_v5, %v1200_v28 }
 0x21a   : > { %v1356_v45 = vsub.s32 0, %v5311_v29  ;;  %v1205_v46 = vor.u32 %v1204_v12, %v1203_v30  ;;  %v1212_v25 = vshll.u32 %v4637_v7, %v1200_v28  ;;  %v1213_v26 = vshrl.u32 %v4638_v9, %v1201_v52 }
 0x21b   : > { %v1063_v49 = vsel %vm980_vm10, %v1062_v43, %v1061_v50  ;;  %v1208_v31 = vor.u32 %v1207_v47, %v1206_v40  ;;  %v1215_v34 = vshll.u32 %v4638_v9, %v1200_v28  ;;  %v1216_v35 = vshrl.u32 %v4639_v16, %v1201_v52 }
 0x21c   : > { %v1066_v48 = vsel %vm5278_vm11, %v4785_v23, %v1063_v49  ;;  %vm1292_vm3 = vcmp.lt.s32.totalorder %v4808_v57, 0  ;;  %v4073_v59 = vmin.u32 %v1356_v45, %v5311_v29  ;;  %v1211_v22 = vor.u32 %v1210_v24, %v1209_v18 }
 0x21d   : > { %v1214_v61 = vor.u32 %v1213_v26, %v1212_v25  ;;  %4462 = vcosq.f32 %v1066_v48  ;;  %v1217_v36 = vor.u32 %v1216_v35, %v1215_v34  ;;  %v1234_v17 = vshll.u32 %v1194_v1, 8 }
 0x21e   : > { %v4080_v44 = vadd.s32 4294967169, %v1502_v41  ;;  %4464 = vsinq.f32 %v1066_v48  ;;  %v1358_v60 = vclz %v4073_v59  ;;  %v1376_v33 = vsub.s32 4, %v5298_v55 }
 0x21f   : > { %vm1218_vm4 = vcmp.lt.s32.totalorder %v1199_v27, 1  ;;  %v1202_v28 = vshrl.u32 %v4634_v63, %v1201_v52  ;;  %vm1220_vm5 = vcmp.lt.s32.totalorder %v1199_v27, 3  ;;  %vm1221_vm6 = vcmp.lt.s32.totalorder %v1199_v27, 4 }
 0x220   : > { %v1226_v2 = vsel %vm1218_vm4, %v1205_v46, %v1208_v31  ;;  %v4074_v13 = vadd.s32 4294967294, %v1358_v60  ;;  %v1223_v42 = vsel %vm1221_vm6, %v1211_v22, 2102212464  ;;  %v1227_v32 = vsel %vm1221_vm6, %v1214_v61, 920167782 }
 0x221   : > { %v1230_v0 = vsel %vm1218_vm4, %v1208_v31, %v1211_v22  ;;  %vm1219_vm7 = vcmp.lt.s32.totalorder %v1199_v27, 2  ;;  %v1222_v54 = vsel %vm1218_vm4, %v1202_v28, %v1205_v46  ;;  %v1228_v4 = vsel %vm1220_vm5, %v1211_v22, %v1227_v32 }
 0x222   : > { %v1231_v14 = vsel %vm1221_vm6, %v1217_v36, 1326507024  ;;  %vm4075_vm8 = vcmp.lt.s32.totalorder %v4074_v13, 0  ;;  %v1224_v8 = vsel %vm1220_vm5, %v1208_v31, %v1223_v42  ;;  %v1229_v53 = vsel %vm1219_vm7, %v1226_v2, %v1228_v4  ;;  %v5367_v4 = vpop.f32.mrb[14].mxu0 }
 0x223   : > { %v1232_v1 = vsel %vm1220_vm5, %v1214_v61, %v1231_v14  ;;  %v1361_v11 = vsel %vm4075_vm8, 0, %v4074_v13  ;;  %v5333_v52 = vmul.u32.u64.low %v1234_v17, %v1229_v53  ;;  %v5334_v12 = vmul.u32.u64.high %v1234_v17, %v1229_v53, %v5333_v52 }
 0x224   : > { %v1233_v50 = vsel %vm1219_vm7, %v1230_v0, %v1232_v1  ;;  %vm1070_vm9 = vweird.f32 %v4785_v23  ;;  %vm5340_vm10 = vcmp.le.f32.partialorder %v1290_v15, 0.7853982  ;;  %v1346_v30 = vadd.s32 %v5268_v51, %v5274_v56 }
 0x225   : > { %v1362_v24 = vsub.s32 32, %v1361_v11  ;;  %v1366_v41 = vsub.s32 4294967266, %v1361_v11  ;;  %v1377_v43 = vsel %vm1292_vm3, %v1376_v33, %v5298_v55  ;;  %v1508_v45 = vadd.s32 1, %v4080_v44 }
 0x226   : > { %v5349_v40 = vmul.u32.u64.low %v1234_v17, %v1233_v50  ;;  %v5350_v18 = vmul.u32.u64.high %v1234_v17, %v1233_v50, %v5349_v40  ;;  %v1363_v46 = vshll.u32 %v5311_v29, %v1361_v11  ;;  %v1225_v26 = vsel %vm1219_vm7, %v1222_v54, %v1224_v8 }
 0x227   : > { %v1364_v25 = vshrl.u32 %v1346_v30, %v1362_v24  ;;  %v1367_v15 = vadd.s32 127, %v1366_v41  ;;  %v4463_v49 = vpop.eup %4462  ;;  %vm1077_vm11 = vcmp.eq.s32.totalorder %v5301_v39, 2  ;;  %v1244_v51 = vadd.s32 1, %v5334_v12 }
 0x228   : > { %v1505_v56 = vand.u32 8388607, %v1498_v58  ;;  %vm1509_vm12 = vcmp.gt.s32.totalorder %v1508_v45, 0  ;;  %v4465_v55 = vpop.eup %4464  ;;  %v1078_v31 = vxor.u32 2147483648, %v4463_v49  ;;  %v1379_v29 = vsel %vm5340_vm10, 0, %v1377_v43 }
 0x229   : > { %v1365_v34 = vor.u32 %v1364_v25, %v1363_v46  ;;  %v1368_v35 = vshll.u32 %v1367_v15, 23  ;;  %v1510_v48 = vsel %vm1509_vm12, %v1508_v45, 0  ;;  %v1075_v59 = vxor.u32 2147483648, %v4465_v55 }
 0x22a   : > { %v1241_v27 = vmul.u32 %v1234_v17, %v1225_v26  ;;  %vm1243_vm13 = vc.u32 %v5350_v18, %v5333_v52  ;;  %vm1074_vm14 = vcmp.eq.s32.totalorder %v5301_v39, 0  ;;  %v1079_v22 = vsel %vm1077_vm11, %v1078_v31, %v4465_v55 }
 0x22b   : > { %v1369_v61 = vor.u32 4788187, %v1368_v35  ;;  %v1245_v36 = vsel %vm1243_vm13, %v1244_v51, %v5334_v12  ;;  %vm1073_vm15 = vcmp.lt.s32.totalorder %v5301_v39, 2  ;;  %v1076_v44 = vsel %vm1074_vm14, %v4463_v49, %v1075_v59 }
 0x22c   : > { %v1246_v60 = vadd.s32 %v1245_v36, %v1241_v27  ;;  %v1512_v33 = vand.u32 31, %v1510_v48  ;;  %v1080_v28 = vsel %vm1073_vm15, %v1076_v44, %v1079_v22  ;;  %v1372_v13 = vcvt.s32.f32 %v1365_v34 }
 0x22d   : > { %v1370_v2 = vand.u32 2147483647, %v1369_v61  ;;  %v1383_v42 = vadd.s32 3, %v1379_v29  ;;  %v1081_v17 = vsel %vm1070_vm9, nan, %v1080_v28  ;;  %v1506_v0 = vor.u32 8388608, %v1505_v56 }
 0x22e   : > { %v1247_v32 = vadd.s32 536870912, %v1246_v60  ;;  %v1513_v54 = vsub.s32 32, %v1512_v33  ;;  %3894 = vst [vmem:[%s5039_s30 + $0x20] sm:$0xff] %v1081_v17  ;;  %v1511_v8 = vshrl.u32 %v1510_v48, 5  ;;  %v1515_v39 = vshll.u32 %v4634_v63, %v1512_v33 }
 0x22f   : > { %v1373_v14 = vmul.f32 %v1372_v13, %v1370_v2  ;;  %v1518_v53 = vshll.u32 %v4635_v3, %v1512_v33  ;;  %v1521_v23 = vshll.u32 %v4636_v5, %v1512_v33  ;;  %v1524_v24 = vshll.u32 %v4637_v7, %v1512_v33 }
 0x230   : > { %v5372_v1 = vshrl.u32 %v1247_v32, 30  ;;  %v1516_v11 = vshrl.u32 %v4635_v3, %v1513_v54  ;;  %v1519_v50 = vshrl.u32 %v4636_v5, %v1513_v54  ;;  %v1522_v30 = vshrl.u32 %v4637_v7, %v1513_v54 }
 0x231   : > { %v1374_v12 = vxor.u32 2147483648, %v1373_v14  ;;  %v1525_v41 = vshrl.u32 %v4638_v9, %v1513_v54  ;;  %v1527_v46 = vshll.u32 %v4638_v9, %v1512_v33  ;;  %v1528_v49 = vshrl.u32 %v4639_v16, %v1513_v54 }
 0x232   : > { %v1249_v43 = vshll.u32 %v5372_v1, 30  ;;  %v1517_v40 = vor.u32 %v1516_v11, %v1515_v39  ;;  %v1520_v45 = vor.u32 %v1519_v50, %v1518_v53  ;;  %v1523_v15 = vor.u32 %v1522_v30, %v1521_v23 }
 0x233   : > { %v1375_v25 = vsel %vm1292_vm3, %v1374_v12, %v1373_v14  ;;  %v1526_v26 = vor.u32 %v1525_v41, %v1524_v24  ;;  %v5388_v56 = vand.u32 3, %v1383_v42  ;;  %v1529_v31 = vor.u32 %v1528_v49, %v1527_v46  ;;  %v5409_v14 = vpop.f32.mrb[15].mxu0 }
 0x234   : > { %v1378_v51 = vsel %vm5340_vm10, %v4808_v57, %v1375_v25  ;;  %v5390_v55 = vsub.s32 %v1246_v60, %v1249_v43  ;;  %v1546_v34 = vshll.u32 %v1506_v0, 8  ;;  %v1397_v35 = vand.u32 2139095040, %v4924_v37 }
 0x235   : > { %4466 = vcosq.f32 %v1378_v51  ;;  %vm1530_vm0 = vcmp.lt.s32.totalorder %v1511_v8, 1  ;;  %vm1533_vm1 = vcmp.lt.s32.totalorder %v1511_v8, 4  ;;  %vm1532_vm2 = vcmp.lt.s32.totalorder %v1511_v8, 3 }
 0x236   : > { %4468 = vsinq.f32 %v1378_v51  ;;  %v1252_v48 = vsub.s32 0, %v5390_v55  ;;  %v1535_v59 = vsel %vm1533_vm1, %v1523_v15, 2102212464  ;;  %v1538_v29 = vsel %vm1530_vm0, %v1517_v40, %v1520_v45 }
 0x237   : > { %v1539_v47 = vsel %vm1533_vm1, %v1526_v26, 920167782  ;;  %v1514_v22 = vshrl.u32 %v4634_v63, %v1513_v54  ;;  %vm1531_vm3 = vcmp.lt.s32.totalorder %v1511_v8, 2  ;;  %v1542_v44 = vsel %vm1530_vm0, %v1520_v45, %v1523_v15 }
 0x238   : > { %v4069_v27 = vmin.u32 %v1252_v48, %v5390_v55  ;;  %v1540_v61 = vsel %vm1532_vm2, %v1523_v15, %v1539_v47  ;;  %v1543_v60 = vsel %vm1533_vm1, %v1529_v31, 1326507024  ;;  %v1398_v33 = vshrl.u32 %v1397_v35, 23 }
 0x239   : > { %v1541_v36 = vsel %vm1531_vm3, %v1538_v29, %v1540_v61  ;;  %vm1188_vm4 = vcmp.lt.s32.totalorder %v4814_v6, 0  ;;  %v1534_v2 = vsel %vm1530_vm0, %v1514_v22, %v1517_v40  ;;  %v1536_v13 = vsel %vm1532_vm2, %v1520_v45, %v1535_v59 }
 0x23a   : > { %v1254_v28 = vclz %v4069_v27  ;;  %v1394_v42 = vand.u32 2147483647, %v4924_v37  ;;  %v1544_v17 = vsel %vm1532_vm2, %v1526_v26, %v1543_v60  ;;  %v4076_v54 = vadd.s32 4294967169, %v1398_v33 }
 0x23b   : > { %v5405_v32 = vmul.u32.u64.low %v1546_v34, %v1541_v36  ;;  %v5406_v0 = vmul.u32.u64.high %v1546_v34, %v1541_v36, %v5405_v32  ;;  %vm1385_vm5 = vcmp.lt.s32.totalorder %v5388_v56, 2  ;;  %vm1386_vm6 = vcmp.eq.s32.totalorder %v5388_v56, 0 }
 0x23c   : > { %v4070_v39 = vadd.s32 4294967294, %v1254_v28  ;;  %v1545_v53 = vsel %vm1531_vm3, %v1542_v44, %v1544_v17  ;;  %v1537_v11 = vsel %vm1531_vm3, %v1534_v2, %v1536_v13  ;;  %v1404_v12 = vadd.s32 1, %v4076_v54 }
 0x23d   : > { %v5415_v50 = vmul.u32.u64.low %v1546_v34, %v1545_v53  ;;  %v5416_v23 = vmul.u32.u64.high %v1546_v34, %v1545_v53, %v5415_v50  ;;  %vm1389_vm7 = vcmp.eq.s32.totalorder %v5388_v56, 2  ;;  %v1242_v30 = vadd.s32 %v5333_v52, %v5350_v18 }
 0x23e   : > { %vm4071_vm8 = vcmp.lt.s32.totalorder %v4070_v39, 0  ;;  %v1401_v24 = vand.u32 8388607, %v1394_v42  ;;  %v1272_v40 = vsub.s32 4, %v5372_v1  ;;  %v1556_v8 = vadd.s32 1, %v5406_v0 }
 0x23f   : > { %v4467_v41 = vpop.eup %4466  ;;  %v1257_v43 = vsel %vm4071_vm8, 0, %v4070_v39  ;;  %vm1405_vm9 = vcmp.gt.s32.totalorder %v1404_v12, 0  ;;  %v1553_v26 = vmul.u32 %v1546_v34, %v1537_v11  ;;  %vm1555_vm10 = vc.u32 %v5416_v23, %v5405_v32 }
 0x240   : > { %v4469_v45 = vpop.eup %4468  ;;  %v1390_v46 = vxor.u32 2147483648, %v4467_v41  ;;  %v1258_v25 = vsub.s32 32, %v1257_v43  ;;  %v1262_v15 = vsub.s32 4294967266, %v1257_v43  ;;  %v1259_v51 = vshll.u32 %v5390_v55, %v1257_v43 }
 0x241   : > { %v1387_v49 = vxor.u32 2147483648, %v4469_v45  ;;  %v1406_v52 = vsel %vm1405_vm9, %v1404_v12, 0  ;;  %v1557_v48 = vsel %vm1555_vm10, %v1556_v8, %v5406_v0  ;;  %v1273_v34 = vsel %vm1188_vm4, %v1272_v40, %v5372_v1 }
 0x242   : > { %v1391_v18 = vsel %vm1389_vm7, %v1390_v46, %v4469_v45  ;;  %v1260_v31 = vshrl.u32 %v1242_v30, %v1258_v25  ;;  %v1263_v35 = vadd.s32 127, %v1262_v15  ;;  %v1558_v55 = vadd.s32 %v1557_v48, %v1553_v26 }
 0x243   : > { %v1388_v59 = vsel %vm1386_vm6, %v4467_v41, %v1387_v49  ;;  %v1408_v29 = vand.u32 31, %v1406_v52  ;;  %vm1382_vm11 = vweird.f32 %v4808_v57  ;;  %vm5441_vm12 = vcmp.le.f32.partialorder %v1186_v38, 0.7853982 }
 0x244   : > { %v1392_v47 = vsel %vm1385_vm5, %v1388_v59, %v1391_v18  ;;  %v1261_v27 = vor.u32 %v1260_v31, %v1259_v51  ;;  %v1264_v22 = vshll.u32 %v1263_v35, 23  ;;  %v1559_v44 = vadd.s32 536870912, %v1558_v55 }
 0x245   : > { %v1393_v61 = vsel %vm1382_vm11, nan, %v1392_v47  ;;  %v1409_v60 = vsub.s32 32, %v1408_v29  ;;  %v1275_v33 = vsel %vm5441_vm12, 0, %v1273_v34  ;;  %v1402_v57 = vor.u32 8388608, %v1401_v24 }
 0x246   : > { %3897 = vst [vmem:[%s5039_s30 + $0x38] sm:$0xff] %v1393_v61  ;;  %v1265_v1 = vor.u32 4788187, %v1264_v22  ;;  %v1268_v28 = vcvt.s32.f32 %v1261_v27  ;;  %v5448_v56 = vshrl.u32 %v1559_v44, 30  ;;  %v1417_v13 = vshll.u32 %v4636_v5, %v1408_v29 }
 0x247   : > { %v1412_v2 = vshrl.u32 %v4635_v3, %v1409_v60  ;;  %v1415_v38 = vshrl.u32 %v4636_v5, %v1409_v60  ;;  %v1418_v0 = vshrl.u32 %v4637_v7, %v1409_v60  ;;  %v1421_v54 = vshrl.u32 %v4638_v9, %v1409_v60 }
 0x248   : > { %v1266_v17 = vand.u32 2147483647, %v1265_v1  ;;  %v1561_v39 = vshll.u32 %v5448_v56, 30  ;;  %v1407_v53 = vshrl.u32 %v1406_v52, 5  ;;  %v1411_v11 = vshll.u32 %v4634_v63, %v1408_v29 }
 0x249   : > { %v1709_v50 = vand.u32 2139095040, %v5064_v62  ;;  %v1414_v30 = vshll.u32 %v4635_v3, %v1408_v29  ;;  %v1419_v24 = vor.u32 %v1418_v0, %v1417_v13  ;;  %v1420_v41 = vshll.u32 %v4637_v7, %v1408_v29 }
 0x24a   : > { %v1269_v12 = vmul.f32 %v1268_v28, %v1266_v17  ;;  %v1279_v43 = vadd.s32 3, %v1275_v33  ;;  %v5460_v40 = vsub.s32 %v1558_v55, %v1561_v39  ;;  %v1413_v8 = vor.u32 %v1412_v2, %v1411_v11 }
 0x24b   : > { %v1424_v45 = vshrl.u32 %v4639_v16, %v1409_v60  ;;  %v1416_v25 = vor.u32 %v1415_v38, %v1414_v30  ;;  %v1422_v15 = vor.u32 %v1421_v54, %v1420_v41  ;;  %v1423_v26 = vshll.u32 %v4638_v9, %v1408_v29 }
 0x24c   : > { %v1270_v46 = vxor.u32 2147483648, %v1269_v12  ;;  %v1564_v49 = vsub.s32 0, %v5460_v40  ;;  %vm1429_vm13 = vcmp.lt.s32.totalorder %v1407_v53, 4  ;;  %v1442_v51 = vshll.u32 %v1402_v57, 8 }
 0x24d   : > { %v1710_v52 = vshrl.u32 %v1709_v50, 23  ;;  %vm1500_vm14 = vcmp.lt.s32.totalorder %v4876_v19, 0  ;;  %v1410_v31 = vshrl.u32 %v4634_v63, %v1409_v60  ;;  %v1425_v35 = vor.u32 %v1424_v45, %v1423_v26 }
 0x24e   : > { %v1271_v18 = vsel %vm1188_vm4, %v1270_v46, %v1269_v12  ;;  %v1431_v48 = vsel %vm1429_vm13, %v1419_v24, 2102212464  ;;  %v4081_v34 = vmin.u32 %v1564_v49, %v5460_v40  ;;  %vm1426_vm15 = vcmp.lt.s32.totalorder %v1407_v53, 1 }
 0x24f   : > { %v1274_v59 = vsel %vm5441_vm12, %v4814_v6, %v1271_v18  ;;  %vm1428_vm0 = vcmp.lt.s32.totalorder %v1407_v53, 3  ;;  %v1430_v55 = vsel %vm1426_vm15, %v1410_v31, %v1413_v8  ;;  %v1434_v29 = vsel %vm1426_vm15, %v1413_v8, %v1416_v25 }
 0x250   : > { %4470 = vcosq.f32 %v1274_v59  ;;  %v1435_v47 = vsel %vm1429_vm13, %v1422_v15, 920167782  ;;  %v1566_v27 = vclz %v4081_v34  ;;  %v1432_v22 = vsel %vm1428_vm0, %v1416_v25, %v1431_v48 }
 0x251   : > { %4472 = vsinq.f32 %v1274_v59  ;;  %v1438_v61 = vsel %vm1426_vm15, %v1416_v25, %v1419_v24  ;;  %v1584_v44 = vsub.s32 4, %v5448_v56  ;;  %vm1427_vm1 = vcmp.lt.s32.totalorder %v1407_v53, 2 }
 0x252   : > { %v1436_v60 = vsel %vm1428_vm0, %v1419_v24, %v1435_v47  ;;  %v1439_v36 = vsel %vm1429_vm13, %v1425_v35, 1326507024  ;;  %v4082_v1 = vadd.s32 4294967294, %v1566_v27  ;;  %v4088_v28 = vadd.s32 4294967169, %v1710_v52 }
 0x253   : > { %v1437_v33 = vsel %vm1427_vm1, %v1434_v29, %v1436_v60  ;;  %v1440_v57 = vsel %vm1428_vm0, %v1422_v15, %v1439_v36  ;;  %v1433_v2 = vsel %vm1427_vm1, %v1430_v55, %v1432_v22  ;;  %vm5486_vm3 = vcmp.le.f32.partialorder %v1498_v58, 0.7853982  ;;  %v5506_v29 = vpop.f32.mrb[0].mxu1 }
 0x254   : > { %v1441_v13 = vsel %vm1427_vm1, %v1438_v61, %v1440_v57  ;;  %v5477_v17 = vmul.u32.u64.low %v1442_v51, %v1437_v33  ;;  %v5478_v38 = vmul.u32.u64.high %v1442_v51, %v1437_v33, %v5477_v17  ;;  %vm4083_vm2 = vcmp.lt.s32.totalorder %v4082_v1, 0 }
 0x255   : > { %v5481_v0 = vmul.u32.u64.low %v1442_v51, %v1441_v13  ;;  %v5482_v54 = vmul.u32.u64.high %v1442_v51, %v1441_v13, %v5481_v0  ;;  %v1716_v39 = vadd.s32 1, %v4088_v28  ;;  %v1554_v11 = vadd.s32 %v5405_v32, %v5416_v23 }
 0x256   : > { %v1569_v50 = vsel %vm4083_vm2, 0, %v4082_v1  ;;  %v1706_v12 = vand.u32 2147483647, %v5064_v62  ;;  %vm1278_vm4 = vweird.f32 %v4814_v6  ;;  %v1585_v41 = vsel %vm1500_vm14, %v1584_v44, %v5448_v56 }
 0x257   : > { %v1570_v30 = vsub.s32 32, %v1569_v50  ;;  %v1574_v24 = vsub.s32 4294967266, %v1569_v50  ;;  %vm1717_vm5 = vcmp.gt.s32.totalorder %v1716_v39, 0  ;;  %v1280_v8 = vand.u32 3, %v1279_v43 }
 0x258   : > { %v1449_v58 = vmul.u32 %v1442_v51, %v1433_v2  ;;  %v1452_v45 = vadd.s32 1, %v5478_v38  ;;  %v1718_v46 = vsel %vm1717_vm5, %v1716_v39, 0  ;;  %v1571_v25 = vshll.u32 %v5460_v40, %v1569_v50 }
 0x259   : > { %v1572_v32 = vshrl.u32 %v1554_v11, %v1570_v30  ;;  %v1575_v23 = vadd.s32 127, %v1574_v24  ;;  %vm1451_vm6 = vc.u32 %v5482_v54, %v5477_v17  ;;  %v1587_v26 = vsel %vm5486_vm3, 0, %v1585_v41 }
 0x25a   : > { %v4471_v15 = vpop.eup %4470  ;;  %v1453_v49 = vsel %vm1451_vm6, %v1452_v45, %v5478_v38  ;;  %v1713_v56 = vand.u32 8388607, %v1706_v12  ;;  %v1720_v43 = vand.u32 31, %v1718_v46  ;;  %vm1281_vm7 = vcmp.lt.s32.totalorder %v1280_v8, 2 }
 0x25b   : > { %v4473_v51 = vpop.eup %4472  ;;  %v1286_v52 = vxor.u32 2147483648, %v4471_v15  ;;  %v1573_v18 = vor.u32 %v1572_v32, %v1571_v25  ;;  %v1576_v31 = vshll.u32 %v1575_v23, 23  ;;  %v1454_v40 = vadd.s32 %v1453_v49, %v1449_v58 }
 0x25c   : > { %v1283_v35 = vxor.u32 2147483648, %v4473_v51  ;;  %vm1285_vm8 = vcmp.eq.s32.totalorder %v1280_v8, 2  ;;  %v1721_v48 = vsub.s32 32, %v1720_v43  ;;  %vm1282_vm9 = vcmp.eq.s32.totalorder %v1280_v8, 0 }
 0x25d   : > { %v1287_v59 = vsel %vm1285_vm8, %v1286_v52, %v4473_v51  ;;  %v1577_v34 = vor.u32 4788187, %v1576_v31  ;;  %v1455_v55 = vadd.s32 536870912, %v1454_v40  ;;  %v1591_v27 = vadd.s32 3, %v1587_v26 }
 0x25e   : > { %v1284_v47 = vsel %vm1282_vm9, %v4471_v15, %v1283_v35  ;;  %v1714_v22 = vor.u32 8388608, %v1713_v56  ;;  %v1719_v61 = vshrl.u32 %v1718_v46, 5  ;;  %v1580_v36 = vcvt.s32.f32 %v1573_v18 }
 0x25f   : > { %v1288_v44 = vsel %vm1281_vm7, %v1284_v47, %v1287_v59  ;;  %v1578_v60 = vand.u32 2147483647, %v1577_v34  ;;  %v1456_v1 = vshrl.u32 %v1455_v55, 30  ;;  %v1724_v57 = vshrl.u32 %v4635_v3, %v1721_v48 }
 0x260   : > { %v1289_v33 = vsel %vm1278_vm4, nan, %v1288_v44  ;;  %v1727_v28 = vshrl.u32 %v4636_v5, %v1721_v48  ;;  %v1730_v2 = vshrl.u32 %v4637_v7, %v1721_v48  ;;  %v1723_v0 = vshll.u32 %v4634_v63, %v1720_v43 }
 0x261   : > { %3896 = vst [vmem:[%s5039_s30 + $0x30] sm:$0xff] %v1289_v33  ;;  %v1581_v13 = vmul.f32 %v1580_v36, %v1578_v60  ;;  %v1457_v38 = vshll.u32 %v1456_v1, 30  ;;  %v1729_v39 = vshll.u32 %v4636_v5, %v1720_v43  ;;  %vm1396_vm10 = vcmp.lt.s32.totalorder %v4924_v37, 0 }
 0x262   : > { %v1726_v11 = vshll.u32 %v4635_v3, %v1720_v43  ;;  %v1732_v6 = vshll.u32 %v4637_v7, %v1720_v43  ;;  %v1733_v50 = vshrl.u32 %v4638_v9, %v1721_v48  ;;  %v1736_v30 = vshrl.u32 %v4639_v16, %v1721_v48 }
 0x263   : > { %v1582_v24 = vxor.u32 2147483648, %v1581_v13  ;;  %v5521_v41 = vand.u32 3, %v1591_v27  ;;  %v5523_v8 = vsub.s32 %v1454_v40, %v1457_v38  ;;  %v1731_v58 = vor.u32 %v1730_v2, %v1729_v39  ;;  %v5543_v2 = vpop.f32.mrb[1].mxu1 }
 0x264   : > { %v1725_v45 = vor.u32 %v1724_v57, %v1723_v0  ;;  %v1728_v46 = vor.u32 %v1727_v28, %v1726_v11  ;;  %v1734_v25 = vor.u32 %v1733_v50, %v1732_v6  ;;  %v1735_v32 = vshll.u32 %v4638_v9, %v1720_v43 }
 0x265   : > { %v1583_v23 = vsel %vm1500_vm14, %v1582_v24, %v1581_v13  ;;  %v1460_v15 = vsub.s32 0, %v5523_v8  ;;  %v1722_v26 = vshrl.u32 %v4634_v63, %v1721_v48  ;;  %v1754_v49 = vshll.u32 %v1714_v22, 8 }
 0x266   : > { %v1586_v56 = vsel %vm5486_vm3, %v4876_v19, %v1583_v23  ;;  %v1480_v51 = vsub.s32 4, %v1456_v1  ;;  %v1737_v52 = vor.u32 %v1736_v30, %v1735_v32  ;;  %vm1741_vm11 = vcmp.lt.s32.totalorder %v1719_v61, 4 }
 0x267   : > { %4474 = vcosq.f32 %v1586_v56  ;;  %v4077_v18 = vmin.u32 %v1460_v15, %v5523_v8  ;;  %vm1738_vm12 = vcmp.lt.s32.totalorder %v1719_v61, 1  ;;  %v1743_v43 = vsel %vm1741_vm11, %v1731_v58, 2102212464 }
 0x268   : > { %4476 = vsinq.f32 %v1586_v56  ;;  %vm1739_vm13 = vcmp.lt.s32.totalorder %v1719_v61, 2  ;;  %v1746_v31 = vsel %vm1738_vm12, %v1725_v45, %v1728_v46  ;;  %v1747_v40 = vsel %vm1741_vm11, %v1734_v25, 920167782 }
 0x269   : > { %v1462_v35 = vclz %v4077_v18  ;;  %vm1740_vm14 = vcmp.lt.s32.totalorder %v1719_v61, 3  ;;  %v1742_v48 = vsel %vm1738_vm12, %v1722_v26, %v1725_v45  ;;  %v1750_v59 = vsel %vm1738_vm12, %v1728_v46, %v1731_v58 }
 0x26a   : > { %v1744_v34 = vsel %vm1740_vm14, %v1728_v46, %v1743_v43  ;;  %v1748_v55 = vsel %vm1740_vm14, %v1731_v58, %v1747_v40  ;;  %v1751_v53 = vsel %vm1741_vm11, %v1737_v52, 1326507024  ;;  %v1605_v47 = vand.u32 2139095040, %v5111_v21 }
 0x26b   : > { %v4078_v27 = vadd.s32 4294967294, %v1462_v35  ;;  %v1481_v22 = vsel %vm1396_vm10, %v1480_v51, %v1456_v1  ;;  %v1749_v44 = vsel %vm1739_vm13, %v1746_v31, %v1748_v55  ;;  %v1752_v60 = vsel %vm1740_vm14, %v1734_v25, %v1751_v53 }
 0x26c   : > { %v1753_v36 = vsel %vm1739_vm13, %v1750_v59, %v1752_v60  ;;  %v5539_v33 = vmul.u32.u64.low %v1754_v49, %v1749_v44  ;;  %v5540_v57 = vmul.u32.u64.high %v1754_v49, %v1749_v44, %v5539_v33  ;;  %v1606_v28 = vshrl.u32 %v1605_v47, 23 }
 0x26d   : > { %vm4079_vm15 = vcmp.lt.s32.totalorder %v4078_v27, 0  ;;  %v1745_v13 = vsel %vm1739_vm13, %v1742_v48, %v1744_v34  ;;  %v5546_v38 = vmul.u32.u64.low %v1754_v49, %v1753_v36  ;;  %v5547_v0 = vmul.u32.u64.high %v1754_v49, %v1753_v36, %v5546_v38 }
 0x26e   : > { %vm1594_vm0 = vcmp.eq.s32.totalorder %v5521_v41, 0  ;;  %vm5552_vm1 = vcmp.le.f32.partialorder %v1394_v42, 0.7853982  ;;  %v1465_v39 = vsel %vm4079_vm15, 0, %v4078_v27  ;;  %v4084_v11 = vadd.s32 4294967169, %v1606_v28 }
 0x26f   : > { %v1450_v6 = vadd.s32 %v5477_v17, %v5482_v54  ;;  %v1466_v50 = vsub.s32 32, %v1465_v39  ;;  %v1470_v30 = vsub.s32 4294967266, %v1465_v39  ;;  %v1602_v61 = vand.u32 2147483647, %v5111_v21 }
 0x270   : > { %v1483_v24 = vsel %vm5552_vm1, 0, %v1481_v22  ;;  %v1761_v58 = vmul.u32 %v1754_v49, %v1745_v13  ;;  %v1764_v45 = vadd.s32 1, %v5540_v57  ;;  %v1612_v46 = vadd.s32 1, %v4084_v11 }
 0x271   : > { %v4475_v42 = vpop.eup %4474  ;;  %v1467_v25 = vshll.u32 %v5523_v8, %v1465_v39  ;;  %v1468_v32 = vshrl.u32 %v1450_v6, %v1466_v50  ;;  %v1471_v23 = vadd.s32 127, %v1470_v30  ;;  %vm1763_vm2 = vc.u32 %v5547_v0, %v5539_v33 }
 0x272   : > { %v4477_v17 = vpop.eup %4476  ;;  %vm1597_vm3 = vcmp.eq.s32.totalorder %v5521_v41, 2  ;;  %v1598_v54 = vxor.u32 2147483648, %v4475_v42  ;;  %v1765_v15 = vsel %vm1763_vm2, %v1764_v45, %v5540_v57  ;;  %vm1613_vm4 = vcmp.gt.s32.totalorder %v1612_v46, 0 }
 0x273   : > { %v1595_v26 = vxor.u32 2147483648, %v4477_v17  ;;  %v1469_v49 = vor.u32 %v1468_v32, %v1467_v25  ;;  %v1472_v56 = vshll.u32 %v1471_v23, 23  ;;  %v1766_v51 = vadd.s32 %v1765_v15, %v1761_v58 }
 0x274   : > { %v1599_v52 = vsel %vm1597_vm3, %v1598_v54, %v4477_v17  ;;  %v1487_v18 = vadd.s32 3, %v1483_v24  ;;  %v1609_v8 = vand.u32 8388607, %v1602_v61  ;;  %v1614_v43 = vsel %vm1613_vm4, %v1612_v46, 0 }
 0x275   : > { %vm1593_vm5 = vcmp.lt.s32.totalorder %v5521_v41, 2  ;;  %v1596_v31 = vsel %vm1594_vm0, %v4475_v42, %v1595_v26  ;;  %v1473_v40 = vor.u32 4788187, %v1472_v56  ;;  %v1767_v35 = vadd.s32 536870912, %v1766_v51 }
 0x276   : > { %vm1590_vm6 = vweird.f32 %v4876_v19  ;;  %v1600_v48 = vsel %vm1593_vm5, %v1596_v31, %v1599_v52  ;;  %v1616_v59 = vand.u32 31, %v1614_v43  ;;  %v1476_v53 = vcvt.s32.f32 %v1469_v49 }
 0x277   : > { %v1601_v34 = vsel %vm1590_vm6, nan, %v1600_v48  ;;  %v1474_v55 = vand.u32 2147483647, %v1473_v40  ;;  %v5573_v47 = vshrl.u32 %v1767_v35, 30  ;;  %v5576_v27 = vand.u32 3, %v1487_v18 }
 0x278   : > { %3899 = vst [vmem:[%s5039_s30 + $0x48] sm:$0xff] %v1601_v34  ;;  %v1610_v22 = vor.u32 8388608, %v1609_v8  ;;  %v1617_v44 = vsub.s32 32, %v1616_v59  ;;  %v1619_v36 = vshll.u32 %v4634_v63, %v1616_v59  ;;  %v1917_v57 = vand.u32 2139095040, %v5227_v20 }
 0x279   : > { %v1477_v60 = vmul.f32 %v1476_v53, %v1474_v55  ;;  %v1769_v41 = vshll.u32 %v5573_v47, 30  ;;  %v1622_v28 = vshll.u32 %v4635_v3, %v1616_v59  ;;  %v1625_v6 = vshll.u32 %v4636_v5, %v1616_v59 }
 0x27a   : > { %v1620_v19 = vshrl.u32 %v4635_v3, %v1617_v44  ;;  %v1623_v13 = vshrl.u32 %v4636_v5, %v1617_v44  ;;  %v1626_v38 = vshrl.u32 %v4637_v7, %v1617_v44  ;;  %v1629_v50 = vshrl.u32 %v4638_v9, %v1617_v44 }
 0x27b   : > { %v1478_v39 = vxor.u32 2147483648, %v1477_v60  ;;  %v5585_v11 = vsub.s32 %v1766_v51, %v1769_v41  ;;  %v1615_v30 = vshrl.u32 %v1614_v43, 5  ;;  %v1628_v58 = vshll.u32 %v4637_v7, %v1616_v59 }
 0x27c   : > { %v1621_v24 = vor.u32 %v1620_v19, %v1619_v36  ;;  %v1914_v45 = vand.u32 2147483647, %v5227_v20  ;;  %v1624_v25 = vor.u32 %v1623_v13, %v1622_v28  ;;  %v1627_v32 = vor.u32 %v1626_v38, %v1625_v6 }
 0x27d   : > { %v1479_v46 = vsel %vm1396_vm10, %v1478_v39, %v1477_v60  ;;  %v1772_v42 = vsub.s32 0, %v5585_v11  ;;  %vm1708_vm7 = vcmp.lt.s32.totalorder %v5064_v62, 0  ;;  %v1630_v17 = vor.u32 %v1629_v50, %v1628_v58 }
 0x27e   : > { %v1482_v23 = vsel %vm5552_vm1, %v4924_v37, %v1479_v46  ;;  %v1631_v54 = vshll.u32 %v4638_v9, %v1616_v59  ;;  %v1632_v15 = vshrl.u32 %v4639_v16, %v1617_v44  ;;  %v5601_v49 = vshll.u32 %v1610_v22, 8 }
 0x27f   : > { %4478 = vcosq.f32 %v1482_v23  ;;  %v4089_v26 = vmin.u32 %v1772_v42, %v5585_v11  ;;  %v1918_v56 = vshrl.u32 %v1917_v57, 23  ;;  %v1792_v51 = vsub.s32 4, %v5573_v47 }
 0x280   : > { %4480 = vsinq.f32 %v1482_v23  ;;  %v1618_v52 = vshrl.u32 %v4634_v63, %v1617_v44  ;;  %v1633_v1 = vor.u32 %v1632_v15, %v1631_v54  ;;  %vm1634_vm8 = vcmp.lt.s32.totalorder %v1615_v30, 1 }
 0x281   : > { %v1774_v18 = vclz %v4089_v26  ;;  %vm1635_vm9 = vcmp.lt.s32.totalorder %v1615_v30, 2  ;;  %vm1637_vm10 = vcmp.lt.s32.totalorder %v1615_v30, 4  ;;  %vm5607_vm11 = vcmp.le.f32.partialorder %v1706_v12, 0.7853982 }
 0x282   : > { %vm1636_vm12 = vcmp.lt.s32.totalorder %v1615_v30, 3  ;;  %v1639_v43 = vsel %vm1637_vm10, %v1627_v32, 2102212464  ;;  %v1642_v31 = vsel %vm1634_vm8, %v1621_v24, %v1624_v25  ;;  %v1643_v40 = vsel %vm1637_vm10, %v1630_v17, 920167782 }
 0x283   : > { %v4090_v35 = vadd.s32 4294967294, %v1774_v18  ;;  %v1638_v48 = vsel %vm1634_vm8, %v1618_v52, %v1621_v24  ;;  %v1644_v59 = vsel %vm1636_vm12, %v1627_v32, %v1643_v40  ;;  %v1646_v34 = vsel %vm1634_vm8, %v1624_v25, %v1627_v32 }
 0x284   : > { %v1640_v55 = vsel %vm1636_vm12, %v1624_v25, %v1639_v43  ;;  %v1645_v53 = vsel %vm1635_vm9, %v1642_v31, %v1644_v59  ;;  %v1647_v22 = vsel %vm1637_vm10, %v1633_v1, 1326507024  ;;  %v4096_v44 = vadd.s32 4294967169, %v1918_v56 }
 0x285   : > { %vm1489_vm13 = vcmp.lt.s32.totalorder %v5576_v27, 2  ;;  %vm4091_vm14 = vcmp.lt.s32.totalorder %v4090_v35, 0  ;;  %v1648_v12 = vsel %vm1636_vm12, %v1630_v17, %v1647_v22  ;;  %v1762_v36 = vadd.s32 %v5539_v33, %v5547_v0 }
 0x286   : > { %v5614_v60 = vmul.u32.u64.low %v5601_v49, %v1645_v53  ;;  %v5615_v41 = vmul.u32.u64.high %v5601_v49, %v1645_v53, %v5614_v60  ;;  %v1777_v57 = vsel %vm4091_vm14, 0, %v4090_v35  ;;  %v1649_v19 = vsel %vm1635_vm9, %v1646_v34, %v1648_v12 }
 0x287   : > { %v1924_v28 = vadd.s32 1, %v4096_v44  ;;  %v1778_v13 = vsub.s32 32, %v1777_v57  ;;  %v1782_v38 = vsub.s32 4294967266, %v1777_v57  ;;  %v1793_v39 = vsel %vm1708_vm7, %v1792_v51, %v5573_v47 }
 0x288   : > { %v1641_v6 = vsel %vm1635_vm9, %v1638_v48, %v1640_v55  ;;  %v1779_v50 = vshll.u32 %v5585_v11, %v1777_v57  ;;  %v5627_v24 = vmul.u32.u64.low %v5601_v49, %v1649_v19  ;;  %v5628_v58 = vmul.u32.u64.high %v5601_v49, %v1649_v19, %v5627_v24 }
 0x289   : > { %vm1925_vm15 = vcmp.gt.s32.totalorder %v1924_v28, 0  ;;  %v4479_v33 = vpop.eup %4478  ;;  %v1780_v0 = vshrl.u32 %v1762_v36, %v1778_v13  ;;  %v1783_v46 = vadd.s32 127, %v1782_v38  ;;  %v1660_v42 = vadd.s32 1, %v5615_v41 }
 0x28a   : > { %v1926_v25 = vsel %vm1925_vm15, %v1924_v28, 0  ;;  %v4481_v32 = vpop.eup %4480  ;;  %vm1490_vm0 = vcmp.eq.s32.totalorder %v5576_v27, 0  ;;  %vm1493_vm1 = vcmp.eq.s32.totalorder %v5576_v27, 2  ;;  %v1494_v47 = vxor.u32 2147483648, %v4479_v33 }
 0x28b   : > { %v1928_v30 = vand.u32 31, %v1926_v25  ;;  %v1491_v23 = vxor.u32 2147483648, %v4481_v32  ;;  %v1781_v11 = vor.u32 %v1780_v0, %v1779_v50  ;;  %v1784_v17 = vshll.u32 %v1783_v46, 23 }
 0x28c   : > { %v1795_v54 = vsel %vm5607_vm11, 0, %v1793_v39  ;;  %v1495_v15 = vsel %vm1493_vm1, %v1494_v47, %v4481_v32  ;;  %v1657_v26 = vmul.u32 %v5601_v49, %v1641_v6  ;;  %vm1659_vm2 = vc.u32 %v5628_v58, %v5614_v60  ;;  %v5644_v49 = vpop.f32.mrb[2].mxu1 }
 0x28d   : > { %v1929_v56 = vsub.s32 32, %v1928_v30  ;;  %v1492_v51 = vsel %vm1490_vm0, %v4479_v33, %v1491_v23  ;;  %v1785_v52 = vor.u32 4788187, %v1784_v17  ;;  %v1661_v1 = vsel %vm1659_vm2, %v1660_v42, %v5615_v41 }
 0x28e   : > { %v1921_v18 = vand.u32 8388607, %v1914_v45  ;;  %vm1486_vm3 = vweird.f32 %v4924_v37  ;;  %v1496_v43 = vsel %vm1489_vm13, %v1492_v51, %v1495_v15  ;;  %v1799_v31 = vadd.s32 3, %v1795_v54 }
 0x28f   : > { %v1662_v40 = vadd.s32 %v1661_v1, %v1657_v26  ;;  %v1497_v35 = vsel %vm1486_vm3, nan, %v1496_v43  ;;  %v1786_v48 = vand.u32 2147483647, %v1785_v52  ;;  %v1788_v59 = vcvt.s32.f32 %v1781_v11 }
 0x290   : > { %v1932_v34 = vshrl.u32 %v4635_v3, %v1929_v56  ;;  %3898 = vst [vmem:[%s5039_s30 + $0x40] sm:$0xff] %v1497_v35  ;;  %v1935_v53 = vshrl.u32 %v4636_v5, %v1929_v56  ;;  %v1937_v22 = vshll.u32 %v4636_v5, %v1928_v30  ;;  %v1938_v37 = vshrl.u32 %v4637_v7, %v1929_v56 }
 0x291   : > { %v1663_v55 = vadd.s32 536870912, %v1662_v40  ;;  %v1789_v44 = vmul.f32 %v1788_v59, %v1786_v48  ;;  %v1922_v27 = vor.u32 8388608, %v1921_v18  ;;  %v1927_v12 = vshrl.u32 %v1926_v25, 5 }
 0x292   : > { %v1941_v41 = vshrl.u32 %v4638_v9, %v1929_v56  ;;  %v1931_v57 = vshll.u32 %v4634_v63, %v1928_v30  ;;  %v1934_v19 = vshll.u32 %v4635_v3, %v1928_v30  ;;  %v1939_v28 = vor.u32 %v1938_v37, %v1937_v22 }
 0x293   : > { %v1664_v36 = vshrl.u32 %v1663_v55, 30  ;;  %v1790_v13 = vxor.u32 2147483648, %v1789_v44  ;;  %vm1604_vm4 = vcmp.lt.s32.totalorder %v5111_v21, 0  ;;  %v1940_v38 = vshll.u32 %v4637_v7, %v1928_v30 }
 0x294   : > { %v1943_v39 = vshll.u32 %v4638_v9, %v1928_v30  ;;  %v1944_v6 = vshrl.u32 %v4639_v16, %v1929_v56  ;;  %v5658_v50 = vand.u32 3, %v1799_v31  ;;  %v1933_v33 = vor.u32 %v1932_v34, %v1931_v57 }
 0x295   : > { %v1665_v24 = vshll.u32 %v1664_v36, 30  ;;  %v1936_v0 = vor.u32 %v1935_v53, %v1934_v19  ;;  %v1791_v46 = vsel %vm1708_vm7, %v1790_v13, %v1789_v44  ;;  %v1942_v42 = vor.u32 %v1941_v41, %v1940_v38 }
 0x296   : > { %v1945_v25 = vor.u32 %v1944_v6, %v1943_v39  ;;  %vm1949_vm5 = vcmp.lt.s32.totalorder %v1927_v12, 4  ;;  %v1794_v32 = vsel %vm5607_vm11, %v5064_v62, %v1791_v46  ;;  %v1930_v30 = vshrl.u32 %v4634_v63, %v1929_v56 }
 0x297   : > { %v5665_v47 = vsub.s32 %v1662_v40, %v1665_v24  ;;  %v1951_v23 = vsel %vm1949_vm5, %v1939_v28, 2102212464  ;;  %4482 = vcosq.f32 %v1794_v32  ;;  %v1688_v11 = vsub.s32 4, %v1664_v36 }
 0x298   : > { %vm1946_vm6 = vcmp.lt.s32.totalorder %v1927_v12, 1  ;;  %vm1948_vm8 = vcmp.lt.s32.totalorder %v1927_v12, 3  ;;  %4484 = vsinq.f32 %v1794_v32  ;;  %v1955_v51 = vsel %vm1949_vm5, %v1942_v42, 920167782 }
 0x299   : > { %v1668_v17 = vsub.s32 0, %v5665_v47  ;;  %v1950_v54 = vsel %vm1946_vm6, %v1930_v30, %v1933_v33  ;;  %v1954_v15 = vsel %vm1946_vm6, %v1933_v33, %v1936_v0  ;;  %v1952_v26 = vsel %vm1948_vm8, %v1936_v0, %v1951_v23 }
 0x29a   : > { %v1958_v8 = vsel %vm1946_vm6, %v1936_v0, %v1939_v28  ;;  %v1959_v52 = vsel %vm1949_vm5, %v1945_v25, 1326507024  ;;  %vm1947_vm7 = vcmp.lt.s32.totalorder %v1927_v12, 2  ;;  %v1956_v56 = vsel %vm1948_vm8, %v1939_v28, %v1955_v51  ;;  %v5683_v12 = vpop.f32.mrb[3].mxu1 }
 0x29b   : > { %v4085_v1 = vmin.u32 %v1668_v17, %v5665_v47  ;;  %v1960_v18 = vsel %vm1948_vm8, %v1942_v42, %v1959_v52  ;;  %v1957_v43 = vsel %vm1947_vm7, %v1954_v15, %v1956_v56  ;;  %v1962_v40 = vshll.u32 %v1922_v27, 8 }
 0x29c   : > { %v1961_v31 = vsel %vm1947_vm7, %v1958_v8, %v1960_v18  ;;  %v1813_v35 = vand.u32 2139095040, %v5265_v10  ;;  %v1689_v59 = vsel %vm1604_vm4, %v1688_v11, %v1664_v36  ;;  %v1953_v34 = vsel %vm1947_vm7, %v1950_v54, %v1952_v26 }
 0x29d   : > { %v1670_v48 = vclz %v4085_v1  ;;  %v1810_v55 = vand.u32 2147483647, %v5265_v10  ;;  %v5677_v53 = vmul.u32.u64.low %v1962_v40, %v1961_v31  ;;  %v5678_v22 = vmul.u32.u64.high %v1962_v40, %v1961_v31, %v5677_v53 }
 0x29e   : > { %v5680_v37 = vmul.u32.u64.low %v1962_v40, %v1957_v43  ;;  %v5681_v44 = vmul.u32.u64.high %v1962_v40, %v1957_v43, %v5680_v37  ;;  %vm1798_vm9 = vweird.f32 %v5064_v62  ;;  %v1814_v41 = vshrl.u32 %v1813_v35, 23 }
 0x29f   : > { %v4086_v27 = vadd.s32 4294967294, %v1670_v48  ;;  %vm1802_vm10 = vcmp.eq.s32.totalorder %v5658_v50, 0  ;;  %vm1805_vm11 = vcmp.eq.s32.totalorder %v5658_v50, 2  ;;  %vm5690_vm12 = vcmp.le.f32.partialorder %v1602_v61, 0.7853982 }
 0x2a0   : > { %v1658_v57 = vadd.s32 %v5614_v60, %v5628_v58  ;;  %v1691_v19 = vsel %vm5690_vm12, 0, %v1689_v59  ;;  %v1969_v28 = vmul.u32 %v1962_v40, %v1953_v34  ;;  %v4092_v13 = vadd.s32 4294967169, %v1814_v41 }
 0x2a1   : > { %vm4087_vm13 = vcmp.lt.s32.totalorder %v4086_v27, 0  ;;  %v4483_v38 = vpop.eup %4482  ;;  %vm1971_vm14 = vc.u32 %v5678_v22, %v5680_v37  ;;  %v1972_v6 = vadd.s32 1, %v5681_v44  ;;  %v1817_v61 = vand.u32 8388607, %v1810_v55 }
 0x2a2   : > { %v1673_v39 = vsel %vm4087_vm13, 0, %v4086_v27  ;;  %v4485_v24 = vpop.eup %4484  ;;  %v1806_v33 = vxor.u32 2147483648, %v4483_v38  ;;  %v2125_v60 = vand.u32 2139095040, %v5367_v4  ;;  %v1820_v32 = vadd.s32 1, %v4092_v13 }
 0x2a3   : > { %v1674_v0 = vsub.s32 32, %v1673_v39  ;;  %v1678_v46 = vsub.s32 4294967266, %v1673_v39  ;;  %v1803_v58 = vxor.u32 2147483648, %v4485_v24  ;;  %v1675_v42 = vshll.u32 %v5665_v47, %v1673_v39 }
 0x2a4   : > { %v1973_v25 = vsel %vm1971_vm14, %v1972_v6, %v5681_v44  ;;  %v1807_v30 = vsel %vm1805_vm11, %v1806_v33, %v4485_v24  ;;  %vm1801_vm15 = vcmp.lt.s32.totalorder %v5658_v50, 2  ;;  %v1695_v15 = vadd.s32 3, %v1691_v19 }
 0x2a5   : > { %v1676_v23 = vshrl.u32 %v1658_v57, %v1674_v0  ;;  %v1679_v11 = vadd.s32 127, %v1678_v46  ;;  %v1974_v17 = vadd.s32 %v1973_v25, %v1969_v28  ;;  %v1804_v54 = vsel %vm1802_vm10, %v4483_v38, %v1803_v58 }
 0x2a6   : > { %vm1821_vm0 = vcmp.gt.s32.totalorder %v1820_v32, 0  ;;  %v1808_v26 = vsel %vm1801_vm15, %v1804_v54, %v1807_v30  ;;  %v1818_v1 = vor.u32 8388608, %v1817_v61  ;;  %v2126_v18 = vshrl.u32 %v2125_v60, 23 }
 0x2a7   : > { %v1677_v51 = vor.u32 %v1676_v23, %v1675_v42  ;;  %v1680_v47 = vshll.u32 %v1679_v11, 23  ;;  %v1975_v8 = vadd.s32 536870912, %v1974_v17  ;;  %v1809_v52 = vsel %vm1798_vm9, nan, %v1808_v26 }
 0x2a8   : > { %v1822_v56 = vsel %vm1821_vm0, %v1820_v32, 0  ;;  %3901 = vst [vmem:[%s5039_s30 + $0x58] sm:$0xff] %v1809_v52  ;;  %v2122_v40 = vand.u32 2147483647, %v5367_v4  ;;  %v5714_v59 = vand.u32 3, %v1695_v15  ;;  %vm1916_vm1 = vcmp.lt.s32.totalorder %v5227_v20, 0 }
 0x2a9   : > { %v1681_v43 = vor.u32 4788187, %v1680_v47  ;;  %v1976_v31 = vshrl.u32 %v1975_v8, 30  ;;  %v1824_v35 = vand.u32 31, %v1822_v56  ;;  %v1684_v48 = vcvt.s32.f32 %v1677_v51 }
 0x2aa   : > { %v5718_v53 = vadd.s32 %v5680_v37, %v5678_v22  ;;  %v5720_v44 = vshll.u32 %v1818_v1, 8  ;;  %v4104_v27 = vadd.s32 4294967169, %v2126_v18  ;;  %v5724_v19 = vshrl.u32 %v1822_v56, 5 }
 0x2ab   : > { %v1682_v50 = vand.u32 2147483647, %v1681_v43  ;;  %v1977_v34 = vshll.u32 %v1976_v31, 30  ;;  %v1825_v62 = vsub.s32 32, %v1824_v35  ;;  %v5728_v28 = vand.u32 8388607, %v2122_v40 }
 0x2ac   : > { %v2000_v13 = vsub.s32 4, %v1976_v31  ;;  %v1827_v38 = vshll.u32 %v4634_v63, %v1824_v35  ;;  %vm5735_vm2 = vcmp.le.f32.partialorder %v1914_v45, 0.7853982  ;;  %v1830_v24 = vshll.u32 %v4635_v3, %v1824_v35 }
 0x2ad   : > { %v1685_v41 = vmul.f32 %v1684_v48, %v1682_v50  ;;  %v5722_v57 = vsub.s32 %v1974_v17, %v1977_v34  ;;  %v1828_v39 = vshrl.u32 %v4635_v3, %v1825_v62  ;;  %v1831_v22 = vshrl.u32 %v4636_v5, %v1825_v62 }
 0x2ae   : > { %v1834_v33 = vshrl.u32 %v4637_v7, %v1825_v62  ;;  %v1833_v46 = vshll.u32 %v4636_v5, %v1824_v35  ;;  %v1836_v60 = vshll.u32 %v4637_v7, %v1824_v35  ;;  %v1837_v58 = vshrl.u32 %v4638_v9, %v1825_v62 }
 0x2af   : > { %v1686_v37 = vxor.u32 2147483648, %v1685_v41  ;;  %v1980_v61 = vsub.s32 0, %v5722_v57  ;;  %v1829_v0 = vor.u32 %v1828_v39, %v1827_v38  ;;  %v1832_v25 = vor.u32 %v1831_v22, %v1830_v24 }
 0x2b0   : > { %v1839_v32 = vshll.u32 %v4638_v9, %v1824_v35  ;;  %v1835_v23 = vor.u32 %v1834_v33, %v1833_v46  ;;  %v1838_v11 = vor.u32 %v1837_v58, %v1836_v60  ;;  %v1840_v17 = vshrl.u32 %v4639_v16, %v1825_v62 }
 0x2b1   : > { %v1687_v42 = vsel %vm1604_vm4, %v1686_v37, %v1685_v41  ;;  %v4097_v45 = vmin.u32 %v1980_v61, %v5722_v57  ;;  %vm1842_vm3 = vcmp.lt.s32.totalorder %v5724_v19, 1  ;;  %v2132_v15 = vadd.s32 1, %v4104_v27 }
 0x2b2   : > { %v1690_v30 = vsel %vm5690_vm12, %v5111_v21, %v1687_v42  ;;  %v2001_v26 = vsel %vm1916_vm1, %v2000_v13, %v1976_v31  ;;  %v1826_v51 = vshrl.u32 %v4634_v63, %v1825_v62  ;;  %v1841_v47 = vor.u32 %v1840_v17, %v1839_v32 }
 0x2b3   : > { %4486 = vcosq.f32 %v1690_v30  ;;  %v1982_v54 = vclz %v4097_v45  ;;  %vm1844_vm4 = vcmp.lt.s32.totalorder %v5724_v19, 3  ;;  %vm1845_vm5 = vcmp.lt.s32.totalorder %v5724_v19, 4 }
 0x2b4   : > { %4488 = vsinq.f32 %v1690_v30  ;;  %v1850_v36 = vsel %vm1842_vm3, %v1829_v0, %v1832_v25  ;;  %v1847_v52 = vsel %vm1845_vm5, %v1835_v23, 2102212464  ;;  %v1851_v1 = vsel %vm1845_vm5, %v1838_v11, 920167782 }
 0x2b5   : > { %v4098_v8 = vadd.s32 4294967294, %v1982_v54  ;;  %v1854_v56 = vsel %vm1842_vm3, %v1832_v25, %v1835_v23  ;;  %v1855_v18 = vsel %vm1845_vm5, %v1841_v47, 1326507024  ;;  %vm1843_vm8 = vcmp.lt.s32.totalorder %v5724_v19, 2  ;;  %v5806_v47 = vpop.f32.mrb[4].mxu1 }
 0x2b6   : > { %v1852_v43 = vsel %vm1844_vm4, %v1835_v23, %v1851_v1  ;;  %v1856_v31 = vsel %vm1844_vm4, %v1838_v11, %v1855_v18  ;;  %vm1698_vm7 = vcmp.eq.s32.totalorder %v5714_v59, 0  ;;  %v2003_v50 = vsel %vm5735_vm2, 0, %v2001_v26 }
 0x2b7   : > { %vm4099_vm6 = vcmp.lt.s32.totalorder %v4098_v8, 0  ;;  %v1853_v48 = vsel %vm1843_vm8, %v1850_v36, %v1852_v43  ;;  %v1857_v34 = vsel %vm1843_vm8, %v1854_v56, %v1856_v31  ;;  %vm1697_vm9 = vcmp.lt.s32.totalorder %v5714_v59, 2 }
 0x2b8   : > { %v1985_v35 = vsel %vm4099_vm6, 0, %v4098_v8  ;;  %v1846_v41 = vsel %vm1842_vm3, %v1826_v51, %v1829_v0  ;;  %v1848_v13 = vsel %vm1844_vm4, %v1832_v25, %v1847_v52  ;;  %vm1694_vm10 = vweird.f32 %v5111_v21 }
 0x2b9   : > { %v1986_v62 = vsub.s32 32, %v1985_v35  ;;  %v1990_v27 = vsub.s32 4294967266, %v1985_v35  ;;  %v5782_v38 = vmul.u32.u64.low %v5720_v44, %v1857_v34  ;;  %v5783_v39 = vmul.u32.u64.high %v5720_v44, %v1857_v34, %v5782_v38 }
 0x2ba   : > { %v5786_v22 = vmul.u32.u64.low %v5720_v44, %v1853_v48  ;;  %v5787_v37 = vmul.u32.u64.high %v5720_v44, %v1853_v48, %v5786_v22  ;;  %v1987_v61 = vshll.u32 %v5722_v57, %v1985_v35  ;;  %vm2133_vm11 = vcmp.gt.s32.totalorder %v2132_v15, 0 }
 0x2bb   : > { %v1988_v24 = vshrl.u32 %v5718_v53, %v1986_v62  ;;  %v1991_v33 = vadd.s32 127, %v1990_v27  ;;  %v2007_v0 = vadd.s32 3, %v2003_v50  ;;  %v1849_v46 = vsel %vm1843_vm8, %v1846_v41, %v1848_v13 }
 0x2bc   : > { %v2130_v60 = vor.u32 8388608, %v5728_v28  ;;  %v2134_v58 = vsel %vm2133_vm11, %v2132_v15, 0  ;;  %vm1701_vm12 = vcmp.eq.s32.totalorder %v5714_v59, 2  ;;  %vm1867_vm13 = vc.u32 %v5783_v39, %v5786_v22 }
 0x2bd   : > { %v4487_v42 = vpop.eup %4486  ;;  %v1989_v45 = vor.u32 %v1988_v24, %v1987_v61  ;;  %v1992_v25 = vshll.u32 %v1991_v33, 23  ;;  %v2136_v32 = vand.u32 31, %v2134_v58  ;;  %v1868_v53 = vadd.s32 1, %v5787_v37 }
 0x2be   : > { %v4489_v30 = vpop.eup %4488  ;;  %v1702_v23 = vxor.u32 2147483648, %v4487_v42  ;;  %v2018_v57 = vand.u32 2147483647, %v5409_v14  ;;  %v1865_v28 = vmul.u32 %v5720_v44, %v1849_v46  ;;  %v5801_v15 = vand.u32 3, %v2007_v0 }
 0x2bf   : > { %v1699_v19 = vxor.u32 2147483648, %v4489_v30  ;;  %v1993_v11 = vor.u32 4788187, %v1992_v25  ;;  %v2137_v17 = vsub.s32 32, %v2136_v32  ;;  %v1869_v26 = vsel %vm1867_vm13, %v1868_v53, %v5787_v37 }
 0x2c0   : > { %v1703_v54 = vsel %vm1701_vm12, %v1702_v23, %v4489_v30  ;;  %v5804_v51 = vshll.u32 %v2130_v60, 8  ;;  %v1996_v52 = vcvt.s32.f32 %v1989_v45  ;;  %v1870_v1 = vadd.s32 %v1869_v26, %v1865_v28 }
 0x2c1   : > { %v1700_v8 = vsel %vm1698_vm7, %v4487_v42, %v1699_v19  ;;  %v1994_v36 = vand.u32 2147483647, %v1993_v11  ;;  %v2139_v56 = vshll.u32 %v4634_v63, %v2136_v32  ;;  %v2140_v18 = vshrl.u32 %v4635_v3, %v2137_v17 }
 0x2c2   : > { %v1704_v44 = vsel %vm1697_vm9, %v1700_v8, %v1703_v54  ;;  %v2143_v43 = vshrl.u32 %v4636_v5, %v2137_v17  ;;  %vm1812_vm14 = vcmp.lt.s32.totalorder %v5265_v10, 0  ;;  %v1871_v50 = vadd.s32 536870912, %v1870_v1 }
 0x2c3   : > { %v1705_v31 = vsel %vm1694_vm10, nan, %v1704_v44  ;;  %v1997_v35 = vmul.f32 %v1996_v52, %v1994_v36  ;;  %v2146_v48 = vshrl.u32 %v4637_v7, %v2137_v17  ;;  %v2135_v34 = vshrl.u32 %v2134_v58, 5 }
 0x2c4   : > { %3900 = vst [vmem:[%s5039_s30 + $0x50] sm:$0xff] %v1705_v31  ;;  %v2142_v59 = vshll.u32 %v4635_v3, %v2136_v32  ;;  %v2145_v62 = vshll.u32 %v4636_v5, %v2136_v32  ;;  %v2149_v27 = vshrl.u32 %v4638_v9, %v2137_v17  ;;  %v1872_v13 = vshrl.u32 %v1871_v50, 30  ;;  %v5853_v50 = vpop.f32.mrb[5].mxu1 }
 0x2c5   : > { %v1998_v41 = vxor.u32 2147483648, %v1997_v35  ;;  %v2141_v38 = vor.u32 %v2140_v18, %v2139_v56  ;;  %v2148_v21 = vshll.u32 %v4637_v7, %v2136_v32  ;;  %vm5826_vm15 = vcmp.le.f32.partialorder %v1810_v55, 0.7853982 }
 0x2c6   : > { %v2144_v61 = vor.u32 %v2143_v43, %v2142_v59  ;;  %v2147_v24 = vor.u32 %v2146_v48, %v2145_v62  ;;  %v2151_v33 = vshll.u32 %v4638_v9, %v2136_v32  ;;  %v2152_v0 = vshrl.u32 %v4639_v16, %v2137_v17 }
 0x2c7   : > { %v1999_v46 = vsel %vm1916_vm1, %v1998_v41, %v1997_v35  ;;  %v1873_v60 = vshll.u32 %v1872_v13, 30  ;;  %v2150_v58 = vor.u32 %v2149_v27, %v2148_v21  ;;  %v2021_v42 = vand.u32 2139095040, %v5409_v14 }
 0x2c8   : > { %v2002_v55 = vsel %vm5735_vm2, %v5227_v20, %v1999_v46  ;;  %v1896_v45 = vsub.s32 4, %v1872_v13  ;;  %v2138_v25 = vshrl.u32 %v4634_v63, %v2137_v17  ;;  %v2153_v30 = vor.u32 %v2152_v0, %v2151_v33 }
 0x2c9   : > { %4490 = vcosq.f32 %v2002_v55  ;;  %v5839_v23 = vsub.s32 %v1870_v1, %v1873_v60  ;;  %vm2154_vm0 = vcmp.lt.s32.totalorder %v2135_v34, 1  ;;  %vm2157_vm3 = vcmp.lt.s32.totalorder %v2135_v34, 4 }
 0x2ca   : > { %4492 = vsinq.f32 %v2002_v55  ;;  %vm2155_vm4 = vcmp.lt.s32.totalorder %v2135_v34, 2  ;;  %v2159_v32 = vsel %vm2157_vm3, %v2147_v24, 2102212464  ;;  %v2162_v53 = vsel %vm2154_vm0, %v2141_v38, %v2144_v61 }
 0x2cb   : > { %v1876_v19 = vsub.s32 0, %v5839_v23  ;;  %vm2156_vm1 = vcmp.lt.s32.totalorder %v2135_v34, 3  ;;  %v2158_v11 = vsel %vm2154_vm0, %v2138_v25, %v2141_v38  ;;  %v2163_v28 = vsel %vm2157_vm3, %v2150_v58, 920167782 }
 0x2cc   : > { %v1897_v6 = vsel %vm1812_vm14, %v1896_v45, %v1872_v13  ;;  %v2164_v54 = vsel %vm2156_vm1, %v2147_v24, %v2163_v28  ;;  %v2166_v17 = vsel %vm2154_vm0, %v2144_v61, %v2147_v24  ;;  %v2167_v26 = vsel %vm2157_vm3, %v2153_v30, 1326507024 }
 0x2cd   : > { %v4093_v8 = vmin.u32 %v1876_v19, %v5839_v23  ;;  %v2160_v36 = vsel %vm2156_vm1, %v2144_v61, %v2159_v32  ;;  %v2165_v52 = vsel %vm2155_vm4, %v2162_v53, %v2164_v54  ;;  %v2168_v1 = vsel %vm2156_vm1, %v2150_v58, %v2167_v26 }
 0x2ce   : > { %v2169_v44 = vsel %vm2155_vm4, %v2166_v17, %v2168_v1  ;;  %v5848_v56 = vmul.u32.u64.low %v5804_v51, %v2165_v52  ;;  %v5849_v18 = vmul.u32.u64.high %v5804_v51, %v2165_v52, %v5848_v56  ;;  %v2022_v43 = vshrl.u32 %v2021_v42, 23 }
 0x2cf   : > { %v1878_v31 = vclz %v4093_v8  ;;  %v1899_v35 = vsel %vm5826_vm15, 0, %v1897_v6  ;;  %v2161_v48 = vsel %vm2155_vm4, %v2158_v11, %v2160_v36  ;;  %vm2006_vm2 = vweird.f32 %v5227_v20 }
 0x2d0   : > { %v5857_v59 = vmul.u32.u64.low %v5804_v51, %v2169_v44  ;;  %v5858_v62 = vmul.u32.u64.high %v5804_v51, %v2169_v44, %v5857_v59  ;;  %v4100_v27 = vadd.s32 4294967169, %v2022_v43  ;;  %vm2009_vm5 = vcmp.lt.s32.totalorder %v5801_v15, 2 }
 0x2d1   : > { %v4094_v41 = vadd.s32 4294967294, %v1878_v31  ;;  %v2025_v13 = vand.u32 8388607, %v2018_v57  ;;  %vm2010_vm6 = vcmp.eq.s32.totalorder %v5801_v15, 0  ;;  %vm2013_vm8 = vcmp.eq.s32.totalorder %v5801_v15, 2 }
 0x2d2   : > { %v2180_v34 = vadd.s32 1, %v5849_v18  ;;  %v2028_v38 = vadd.s32 1, %v4100_v27  ;;  %v1866_v61 = vadd.s32 %v5786_v22, %v5783_v39  ;;  %v1903_v24 = vadd.s32 3, %v1899_v35 }
 0x2d3   : > { %v4491_v21 = vpop.eup %4490  ;;  %vm4095_vm7 = vcmp.lt.s32.totalorder %v4094_v41, 0  ;;  %v2177_v33 = vmul.u32 %v5804_v51, %v2161_v48  ;;  %vm2179_vm9 = vc.u32 %v5858_v62, %v5848_v56  ;;  %v2333_v58 = vand.u32 2139095040, %v5506_v29 }
 0x2d4   : > { %v4493_v0 = vpop.eup %4492  ;;  %v2014_v46 = vxor.u32 2147483648, %v4491_v21  ;;  %v1881_v60 = vsel %vm4095_vm7, 0, %v4094_v41  ;;  %v2026_v25 = vor.u32 8388608, %v2025_v13  ;;  %v2181_v22 = vsel %vm2179_vm9, %v2180_v34, %v5849_v18 }
 0x2d5   : > { %v2011_v42 = vxor.u32 2147483648, %v4493_v0  ;;  %v1882_v55 = vsub.s32 32, %v1881_v60  ;;  %v1886_v45 = vsub.s32 4294967266, %v1881_v60  ;;  %v1883_v39 = vshll.u32 %v5839_v23, %v1881_v60 }
 0x2d6   : > { %v2015_v30 = vsel %vm2013_vm8, %v2014_v46, %v4493_v0  ;;  %vm2029_vm10 = vcmp.gt.s32.totalorder %v2028_v38, 0  ;;  %v2182_v19 = vadd.s32 %v2181_v22, %v2177_v33  ;;  %v2330_v6 = vand.u32 2147483647, %v5506_v29 }
 0x2d7   : > { %v2012_v51 = vsel %vm2010_vm6, %v4491_v21, %v2011_v42  ;;  %v1884_v32 = vshrl.u32 %v1866_v61, %v1882_v55  ;;  %v1887_v53 = vadd.s32 127, %v1886_v45  ;;  %v2030_v28 = vsel %vm2029_vm10, %v2028_v38, 0 }
 0x2d8   : > { %v2016_v11 = vsel %vm2009_vm5, %v2012_v51, %v2015_v30  ;;  %v2334_v54 = vshrl.u32 %v2333_v58, 23  ;;  %v2183_v8 = vadd.s32 536870912, %v2182_v19  ;;  %v2032_v36 = vand.u32 31, %v2030_v28 }
 0x2d9   : > { %v2017_v17 = vsel %vm2006_vm2, nan, %v2016_v11  ;;  %v1885_v23 = vor.u32 %v1884_v32, %v1883_v39  ;;  %v1888_v26 = vshll.u32 %v1887_v53, 23  ;;  %v5884_v1 = vand.u32 3, %v1903_v24 }
 0x2da   : > { %3903 = vst [vmem:[%s5039_s30 + $0x68] sm:$0xff] %v2017_v17  ;;  %vm2124_vm11 = vcmp.lt.s32.totalorder %v5367_v4, 0  ;;  %v2184_v44 = vshrl.u32 %v2183_v8, 30  ;;  %v2033_v15 = vsub.s32 32, %v2032_v36  ;;  %v5887_v18 = vshll.u32 %v2026_v25, 8 }
 0x2db   : > { %v1889_v52 = vor.u32 4788187, %v1888_v26  ;;  %v4112_v43 = vadd.s32 4294967169, %v2334_v54  ;;  %v5891_v31 = vand.u32 8388607, %v2330_v6  ;;  %v1892_v35 = vcvt.s32.f32 %v1885_v23 }
 0x2dc   : > { %v5894_v48 = vadd.s32 %v5848_v56, %v5858_v62  ;;  %v2185_v59 = vshll.u32 %v2184_v44, 30  ;;  %v2031_v27 = vshrl.u32 %v2030_v28, 5  ;;  %v2036_v41 = vshrl.u32 %v4635_v3, %v2033_v15 }
 0x2dd   : > { %v1890_v20 = vand.u32 2147483647, %v1889_v52  ;;  %v2039_v13 = vshrl.u32 %v4636_v5, %v2033_v15  ;;  %v2042_v34 = vshrl.u32 %v4637_v7, %v2033_v15  ;;  %v2035_v61 = vshll.u32 %v4634_v63, %v2032_v36 }
 0x2de   : > { %v5899_v21 = vsub.s32 %v2182_v19, %v2185_v59  ;;  %v2045_v24 = vshrl.u32 %v4638_v9, %v2033_v15  ;;  %vm5905_vm12 = vcmp.le.f32.partialorder %v2122_v40, 0.7853982  ;;  %v2208_v62 = vsub.s32 4, %v2184_v44 }
 0x2df   : > { %v1893_v38 = vmul.f32 %v1892_v35, %v1890_v20  ;;  %v2038_v33 = vshll.u32 %v4635_v3, %v2032_v36  ;;  %v2041_v0 = vshll.u32 %v4636_v5, %v2032_v36  ;;  %v2340_v46 = vadd.s32 1, %v4112_v43 }
 0x2e0   : > { %v2188_v58 = vsub.s32 0, %v5899_v21  ;;  %v2037_v42 = vor.u32 %v2036_v41, %v2035_v61  ;;  %v2044_v55 = vshll.u32 %v4637_v7, %v2032_v36  ;;  %v2047_v30 = vshll.u32 %v4638_v9, %v2032_v36 }
 0x2e1   : > { %v1894_v60 = vxor.u32 2147483648, %v1893_v38  ;;  %v2040_v45 = vor.u32 %v2039_v13, %v2038_v33  ;;  %v2043_v25 = vor.u32 %v2042_v34, %v2041_v0  ;;  %v2048_v40 = vshrl.u32 %v4639_v16, %v2033_v15 }
 0x2e2   : > { %v4105_v22 = vmin.u32 %v2188_v58, %v5899_v21  ;;  %v2034_v51 = vshrl.u32 %v4634_v63, %v2033_v15  ;;  %v2046_v32 = vor.u32 %v2045_v24, %v2044_v55  ;;  %v2209_v19 = vsel %vm2124_vm11, %v2208_v62, %v2184_v44 }
 0x2e3   : > { %v1895_v39 = vsel %vm1812_vm14, %v1894_v60, %v1893_v38  ;;  %v2049_v11 = vor.u32 %v2048_v40, %v2047_v30  ;;  %vm2050_vm13 = vcmp.lt.s32.totalorder %v2031_v27, 1  ;;  %vm2051_vm0 = vcmp.lt.s32.totalorder %v2031_v27, 2 }
 0x2e4   : > { %v1898_v53 = vsel %vm5826_vm15, %v5265_v10, %v1895_v39  ;;  %v2190_v28 = vclz %v4105_v22  ;;  %vm2053_vm3 = vcmp.lt.s32.totalorder %v2031_v27, 4  ;;  %vm2052_vm14 = vcmp.lt.s32.totalorder %v2031_v27, 3 }
 0x2e5   : > { %4494 = vcosq.f32 %v1898_v53  ;;  %v2055_v54 = vsel %vm2053_vm3, %v2043_v25, 2102212464  ;;  %v2058_v17 = vsel %vm2050_vm13, %v2037_v42, %v2040_v45  ;;  %v2054_v26 = vsel %vm2050_vm13, %v2034_v51, %v2037_v42 }
 0x2e6   : > { %4496 = vsinq.f32 %v1898_v53  ;;  %v4106_v23 = vadd.s32 4294967294, %v2190_v28  ;;  %v2059_v8 = vsel %vm2053_vm3, %v2046_v32, 920167782  ;;  %v2062_v36 = vsel %vm2050_vm13, %v2040_v45, %v2043_v25  ;;  %v5955_v28 = vpop.f32.mrb[6].mxu1 }
 0x2e7   : > { %v2056_v52 = vsel %vm2052_vm14, %v2040_v45, %v2055_v54  ;;  %v2060_v37 = vsel %vm2052_vm14, %v2043_v25, %v2059_v8  ;;  %v2063_v15 = vsel %vm2053_vm3, %v2049_v11, 1326507024  ;;  %vm2341_vm15 = vcmp.gt.s32.totalorder %v2340_v46, 0 }
 0x2e8   : > { %vm4107_vm4 = vcmp.lt.s32.totalorder %v4106_v23, 0  ;;  %v2211_v44 = vsel %vm5905_vm12, 0, %v2209_v19  ;;  %v2061_v43 = vsel %vm2051_vm0, %v2058_v17, %v2060_v37  ;;  %v2064_v20 = vsel %vm2052_vm14, %v2046_v32, %v2063_v15 }
 0x2e9   : > { %vm1906_vm1 = vcmp.eq.s32.totalorder %v5884_v1, 0  ;;  %v2193_v35 = vsel %vm4107_vm4, 0, %v4106_v23  ;;  %v2065_v59 = vsel %vm2051_vm0, %v2062_v36, %v2064_v20  ;;  %vm1905_vm2 = vcmp.lt.s32.totalorder %v5884_v1, 2 }
 0x2ea   : > { %v5930_v41 = vmul.u32.u64.low %v5887_v18, %v2061_v43  ;;  %v5931_v13 = vmul.u32.u64.high %v5887_v18, %v2061_v43, %v5930_v41  ;;  %v2194_v34 = vsub.s32 32, %v2193_v35  ;;  %v2198_v38 = vsub.s32 4294967266, %v2193_v35 }
 0x2eb   : > { %v2057_v61 = vsel %vm2051_vm0, %v2054_v26, %v2056_v52  ;;  %v2342_v24 = vsel %vm2341_vm15, %v2340_v46, 0  ;;  %vm1902_vm5 = vweird.f32 %v5265_v10  ;;  %vm1909_vm6 = vcmp.eq.s32.totalorder %v5884_v1, 2 }
 0x2ec   : > { %v5939_v62 = vmul.u32.u64.low %v5887_v18, %v2065_v59  ;;  %v5940_v33 = vmul.u32.u64.high %v5887_v18, %v2065_v59, %v5939_v62  ;;  %v2344_v0 = vand.u32 31, %v2342_v24  ;;  %v2195_v60 = vshll.u32 %v5899_v21, %v2193_v35 }
 0x2ed   : > { %v2196_v58 = vshrl.u32 %v5894_v48, %v2194_v34  ;;  %v2199_v42 = vadd.s32 127, %v2198_v38  ;;  %v2338_v55 = vor.u32 8388608, %v5891_v31  ;;  %v2215_v45 = vadd.s32 3, %v2211_v44 }
 0x2ee   : > { %v2073_v27 = vmul.u32 %v5887_v18, %v2057_v61  ;;  %v2076_v46 = vadd.s32 1, %v5931_v13  ;;  %v2345_v25 = vsub.s32 32, %v2344_v0  ;;  %v5947_v22 = vshrl.u32 %v2342_v24, 5 }
 0x2ef   : > { %v4495_v30 = vpop.eup %4494  ;;  %v2197_v40 = vor.u32 %v2196_v58, %v2195_v60  ;;  %v2200_v39 = vshll.u32 %v2199_v42, 23  ;;  %v2347_v51 = vshll.u32 %v4634_v63, %v2344_v0  ;;  %vm2075_vm8 = vc.u32 %v5940_v33, %v5930_v41 }
 0x2f0   : > { %v4497_v32 = vpop.eup %4496  ;;  %v1910_v21 = vxor.u32 2147483648, %v4495_v30  ;;  %v2350_v31 = vshll.u32 %v4635_v3, %v2344_v0  ;;  %v2356_v48 = vshll.u32 %v4637_v7, %v2344_v0  ;;  %v2077_v11 = vsel %vm2075_vm8, %v2076_v46, %v5931_v13 }
 0x2f1   : > { %v1907_v18 = vxor.u32 2147483648, %v4497_v32  ;;  %v2201_v53 = vor.u32 4788187, %v2200_v39  ;;  %v2204_v19 = vcvt.s32.f32 %v2197_v40  ;;  %v2078_v17 = vadd.s32 %v2077_v11, %v2073_v27 }
 0x2f2   : > { %v1911_v54 = vsel %vm1909_vm6, %v1910_v21, %v4497_v32  ;;  %v2348_v23 = vshrl.u32 %v4635_v3, %v2345_v25  ;;  %v2351_v26 = vshrl.u32 %v4636_v5, %v2345_v25  ;;  %vm2020_vm7 = vcmp.lt.s32.totalorder %v5409_v14, 0 }
 0x2f3   : > { %v1908_v8 = vsel %vm1906_vm1, %v4495_v30, %v1907_v18  ;;  %v2202_v36 = vand.u32 2147483647, %v2201_v53  ;;  %v2354_v52 = vshrl.u32 %v4637_v7, %v2345_v25  ;;  %v2357_v37 = vshrl.u32 %v4638_v9, %v2345_v25 }
 0x2f4   : > { %v1912_v15 = vsel %vm1905_vm2, %v1908_v8, %v1911_v54  ;;  %v2079_v44 = vadd.s32 536870912, %v2078_v17  ;;  %v2349_v43 = vor.u32 %v2348_v23, %v2347_v51  ;;  %v2353_v20 = vshll.u32 %v4636_v5, %v2344_v0 }
 0x2f5   : > { %v1913_v35 = vsel %vm1902_vm5, nan, %v1912_v15  ;;  %v2205_v59 = vmul.f32 %v2204_v19, %v2202_v36  ;;  %v2352_v13 = vor.u32 %v2351_v26, %v2350_v31  ;;  %v2358_v34 = vor.u32 %v2357_v37, %v2356_v48  ;;  %v6025_v37 = vpop.f32.mrb[7].mxu1 }
 0x2f6   : > { %3902 = vst [vmem:[%s5039_s30 + $0x60] sm:$0xff] %v1913_v35  ;;  %v2080_v38 = vshrl.u32 %v2079_v44, 30  ;;  %v2360_v61 = vshrl.u32 %v4639_v16, %v2345_v25  ;;  %v5973_v24 = vshll.u32 %v2338_v55, 8  ;;  %v2226_v62 = vand.u32 2147483647, %v5543_v2 }
 0x2f7   : > { %v2206_v1 = vxor.u32 2147483648, %v2205_v59  ;;  %v5976_v60 = vand.u32 3, %v2215_v45  ;;  %v2355_v58 = vor.u32 %v2354_v52, %v2353_v20  ;;  %v2359_v42 = vshll.u32 %v4638_v9, %v2344_v0 }
 0x2f8   : > { %v2081_v27 = vshll.u32 %v2080_v38, 30  ;;  %v2104_v10 = vsub.s32 4, %v2080_v38  ;;  %vm2362_vm9 = vcmp.lt.s32.totalorder %v5947_v22, 1  ;;  %vm2365_vm10 = vcmp.lt.s32.totalorder %v5947_v22, 4 }
 0x2f9   : > { %v2207_v46 = vsel %vm2124_vm11, %v2206_v1, %v2205_v59  ;;  %v2361_v30 = vor.u32 %v2360_v61, %v2359_v42  ;;  %v2370_v55 = vsel %vm2362_vm9, %v2349_v43, %v2352_v13  ;;  %v2371_v45 = vsel %vm2365_vm10, %v2358_v34, 920167782 }
 0x2fa   : > { %v2210_v0 = vsel %vm5905_vm12, %v5367_v4, %v2207_v46  ;;  %v5990_v40 = vsub.s32 %v2078_v17, %v2081_v27  ;;  %v2346_v39 = vshrl.u32 %v4634_v63, %v2345_v25  ;;  %vm2364_vm13 = vcmp.lt.s32.totalorder %v5947_v22, 3 }
 0x2fb   : > { %4498 = vcosq.f32 %v2210_v0  ;;  %vm2363_vm11 = vcmp.lt.s32.totalorder %v5947_v22, 2  ;;  %v2367_v51 = vsel %vm2365_vm10, %v2355_v58, 2102212464  ;;  %v2372_v32 = vsel %vm2364_vm13, %v2355_v58, %v2371_v45 }
 0x2fc   : > { %4500 = vsinq.f32 %v2210_v0  ;;  %v2084_v21 = vsub.s32 0, %v5990_v40  ;;  %v2105_v56 = vsel %vm2020_vm7, %v2104_v10, %v2080_v38  ;;  %v2373_v31 = vsel %vm2363_vm11, %v2370_v55, %v2372_v32 }
 0x2fd   : > { %v2374_v25 = vsel %vm2362_vm9, %v2352_v13, %v2355_v58  ;;  %v2375_v48 = vsel %vm2365_vm10, %v2361_v30, 1326507024  ;;  %v6007_v18 = vmul.u32.u64.low %v5973_v24, %v2373_v31  ;;  %v6008_v53 = vmul.u32.u64.high %v5973_v24, %v2373_v31, %v6007_v18 }
 0x2fe   : > { %v4101_v19 = vmin.u32 %v2084_v21, %v5990_v40  ;;  %v2366_v11 = vsel %vm2362_vm9, %v2346_v39, %v2349_v43  ;;  %v2368_v54 = vsel %vm2364_vm13, %v2352_v13, %v2367_v51  ;;  %v2376_v17 = vsel %vm2364_vm13, %v2358_v34, %v2375_v48 }
 0x2ff   : > { %vm6016_vm12 = vcmp.le.f32.partialorder %v2018_v57, 0.7853982  ;;  %v2377_v26 = vsel %vm2363_vm11, %v2374_v25, %v2376_v17  ;;  %v2229_v8 = vand.u32 2139095040, %v5543_v2  ;;  %v2369_v15 = vsel %vm2363_vm11, %v2366_v11, %v2368_v54 }
 0x300   : > { %v2086_v36 = vclz %v4101_v19  ;;  %v2107_v52 = vsel %vm6016_vm12, 0, %v2105_v56  ;;  %v6030_v44 = vmul.u32.u64.low %v5973_v24, %v2377_v26  ;;  %v6031_v57 = vmul.u32.u64.high %v5973_v24, %v2377_v26, %v6030_v44 }
 0x301   : > { %v2230_v43 = vshrl.u32 %v2229_v8, 23  ;;  %vm2214_vm0 = vweird.f32 %v5367_v4  ;;  %vm2217_vm3 = vcmp.lt.s32.totalorder %v5976_v60, 2  ;;  %v2233_v35 = vand.u32 8388607, %v2226_v62 }
 0x302   : > { %v4102_v20 = vadd.s32 4294967294, %v2086_v36  ;;  %vm2218_vm14 = vcmp.eq.s32.totalorder %v5976_v60, 0  ;;  %vm2221_vm15 = vcmp.eq.s32.totalorder %v5976_v60, 2  ;;  %v2388_v22 = vadd.s32 1, %v6008_v53 }
 0x303   : > { %v4108_v59 = vadd.s32 4294967169, %v2230_v43  ;;  %v2074_v13 = vadd.s32 %v5930_v41, %v5940_v33  ;;  %v2111_v34 = vadd.s32 3, %v2107_v52  ;;  %v2385_v38 = vmul.u32 %v5973_v24, %v2369_v15 }
 0x304   : > { %vm4103_vm4 = vcmp.lt.s32.totalorder %v4102_v20, 0  ;;  %vm2387_vm1 = vc.u32 %v6031_v57, %v6007_v18  ;;  %v2541_v42 = vand.u32 2139095040, %v5644_v49  ;;  %v2234_v55 = vor.u32 8388608, %v2233_v35 }
 0x305   : > { %v4499_v61 = vpop.eup %4498  ;;  %v2089_v1 = vsel %vm4103_vm4, 0, %v4102_v20  ;;  %v2236_v58 = vadd.s32 1, %v4108_v59  ;;  %v2389_v33 = vsel %vm2387_vm1, %v2388_v22, %v6008_v53  ;;  %v2538_v56 = vand.u32 2147483647, %v5644_v49 }
 0x306   : > { %v4501_v27 = vpop.eup %4500  ;;  %v2222_v10 = vxor.u32 2147483648, %v4499_v61  ;;  %v2090_v46 = vsub.s32 32, %v2089_v1  ;;  %v2094_v30 = vsub.s32 4294967266, %v2089_v1  ;;  %v2091_v41 = vshll.u32 %v5990_v40, %v2089_v1 }
 0x307   : > { %v2219_v45 = vxor.u32 2147483648, %v4501_v27  ;;  %vm2237_vm2 = vcmp.gt.s32.totalorder %v2236_v58, 0  ;;  %v2390_v51 = vadd.s32 %v2389_v33, %v2385_v38  ;;  %v2542_v31 = vshrl.u32 %v2541_v42, 23 }
 0x308   : > { %v2223_v24 = vsel %vm2221_vm15, %v2222_v10, %v4501_v27  ;;  %v2092_v0 = vshrl.u32 %v2074_v13, %v2090_v46  ;;  %v2095_v39 = vadd.s32 127, %v2094_v30  ;;  %v2238_v21 = vsel %vm2237_vm2, %v2236_v58, 0 }
 0x309   : > { %v2220_v32 = vsel %vm2218_vm14, %v4499_v61, %v2219_v45  ;;  %v2391_v53 = vadd.s32 536870912, %v2390_v51  ;;  %v2240_v11 = vand.u32 31, %v2238_v21  ;;  %v6058_v17 = vand.u32 3, %v2111_v34 }
 0x30a   : > { %v2224_v40 = vsel %vm2217_vm3, %v2220_v32, %v2223_v24  ;;  %v2093_v25 = vor.u32 %v2092_v0, %v2091_v41  ;;  %v2096_v48 = vshll.u32 %v2095_v39, 23  ;;  %vm2332_vm5 = vcmp.lt.s32.totalorder %v5506_v29, 0 }
 0x30b   : > { %v2225_v19 = vsel %vm2214_vm0, nan, %v2224_v40  ;;  %v2392_v26 = vshrl.u32 %v2391_v53, 30  ;;  %v2241_v8 = vsub.s32 32, %v2240_v11  ;;  %v6061_v36 = vshll.u32 %v2234_v55, 8 }
 0x30c   : > { %3905 = vst [vmem:[%s5039_s30 + $0x78] sm:$0xff] %v2225_v19  ;;  %v2097_v54 = vor.u32 4788187, %v2096_v48  ;;  %v4120_v52 = vadd.s32 4294967169, %v2542_v31  ;;  %v6065_v60 = vand.u32 8388607, %v2538_v56  ;;  %v2100_v44 = vcvt.s32.f32 %v2093_v25 }
 0x30d   : > { %v6069_v4 = vadd.s32 %v6007_v18, %v6031_v57  ;;  %v2393_v43 = vshll.u32 %v2392_v26, 30  ;;  %v2239_v20 = vshrl.u32 %v2238_v21, 5  ;;  %v2244_v35 = vshrl.u32 %v4635_v3, %v2241_v8 }
 0x30e   : > { %v2098_v15 = vand.u32 2147483647, %v2097_v54  ;;  %v2247_v22 = vshrl.u32 %v4636_v5, %v2241_v8  ;;  %v2250_v59 = vshrl.u32 %v4637_v7, %v2241_v8  ;;  %v2243_v38 = vshll.u32 %v4634_v63, %v2240_v11 }
 0x30f   : > { %v6074_v34 = vsub.s32 %v2390_v51, %v2393_v43  ;;  %v2253_v61 = vshrl.u32 %v4638_v9, %v2241_v8  ;;  %vm6080_vm6 = vcmp.le.f32.partialorder %v2330_v6, 0.7853982  ;;  %v2416_v57 = vsub.s32 4, %v2392_v26 }
 0x310   : > { %v2101_v13 = vmul.f32 %v2100_v44, %v2098_v15  ;;  %v2246_v1 = vshll.u32 %v4635_v3, %v2240_v11  ;;  %v2249_v58 = vshll.u32 %v4636_v5, %v2240_v11  ;;  %v2548_v42 = vadd.s32 1, %v4120_v52 }
 0x311   : > { %v2396_v10 = vsub.s32 0, %v6074_v34  ;;  %v2245_v46 = vor.u32 %v2244_v35, %v2243_v38  ;;  %v2252_v30 = vshll.u32 %v4637_v7, %v2240_v11  ;;  %v2255_v41 = vshll.u32 %v4638_v9, %v2240_v11 }
 0x312   : > { %v2102_v27 = vxor.u32 2147483648, %v2101_v13  ;;  %v2248_v55 = vor.u32 %v2247_v22, %v2246_v1  ;;  %v2251_v45 = vor.u32 %v2250_v59, %v2249_v58  ;;  %v2256_v6 = vshrl.u32 %v4639_v16, %v2241_v8 }
 0x313   : > { %v4113_v24 = vmin.u32 %v2396_v10, %v6074_v34  ;;  %v2242_v0 = vshrl.u32 %v4634_v63, %v2241_v8  ;;  %v2254_v39 = vor.u32 %v2253_v61, %v2252_v30  ;;  %v2417_v32 = vsel %vm2332_vm5, %v2416_v57, %v2392_v26 }
 0x314   : > { %v2103_v33 = vsel %vm2020_vm7, %v2102_v27, %v2101_v13  ;;  %v2257_v21 = vor.u32 %v2256_v6, %v2255_v41  ;;  %vm2258_vm8 = vcmp.lt.s32.totalorder %v2239_v20, 1  ;;  %vm2259_vm9 = vcmp.lt.s32.totalorder %v2239_v20, 2 }
 0x315   : > { %v2106_v51 = vsel %vm6016_vm12, %v5409_v14, %v2103_v33  ;;  %v2398_v31 = vclz %v4113_v24  ;;  %vm2261_vm10 = vcmp.lt.s32.totalorder %v2239_v20, 4  ;;  %vm2260_vm7 = vcmp.lt.s32.totalorder %v2239_v20, 3 }
 0x316   : > { %4502 = vcosq.f32 %v2106_v51  ;;  %v2263_v40 = vsel %vm2261_vm10, %v2251_v45, 2102212464  ;;  %v2266_v25 = vsel %vm2258_vm8, %v2245_v46, %v2248_v55  ;;  %v2262_v53 = vsel %vm2258_vm8, %v2242_v0, %v2245_v46 }
 0x317   : > { %4504 = vsinq.f32 %v2106_v51  ;;  %v4114_v48 = vadd.s32 4294967294, %v2398_v31  ;;  %v2267_v19 = vsel %vm2261_vm10, %v2254_v39, 920167782  ;;  %v2270_v11 = vsel %vm2258_vm8, %v2248_v55, %v2251_v45  ;;  %v6130_v31 = vpop.f32.mrb[8].mxu1 }
 0x318   : > { %v2264_v54 = vsel %vm2260_vm7, %v2248_v55, %v2263_v40  ;;  %v2268_v23 = vsel %vm2260_vm7, %v2251_v45, %v2267_v19  ;;  %v2271_v8 = vsel %vm2261_vm10, %v2257_v21, 1326507024  ;;  %vm2549_vm13 = vcmp.gt.s32.totalorder %v2548_v42, 0 }
 0x319   : > { %vm4115_vm11 = vcmp.lt.s32.totalorder %v4114_v48, 0  ;;  %v2419_v26 = vsel %vm6080_vm6, 0, %v2417_v32  ;;  %v2269_v52 = vsel %vm2259_vm9, %v2266_v25, %v2268_v23  ;;  %v2272_v15 = vsel %vm2260_vm7, %v2254_v39, %v2271_v8 }
 0x31a   : > { %vm2114_vm12 = vcmp.eq.s32.totalorder %v6058_v17, 0  ;;  %v2401_v44 = vsel %vm4115_vm11, 0, %v4114_v48  ;;  %v2273_v43 = vsel %vm2259_vm9, %v2270_v11, %v2272_v15  ;;  %vm2113_vm0 = vcmp.lt.s32.totalorder %v6058_v17, 2 }
 0x31b   : > { %v6105_v35 = vmul.u32.u64.low %v6061_v36, %v2269_v52  ;;  %v6106_v22 = vmul.u32.u64.high %v6061_v36, %v2269_v52, %v6105_v35  ;;  %v2402_v59 = vsub.s32 32, %v2401_v44  ;;  %v2406_v13 = vsub.s32 4294967266, %v2401_v44 }
 0x31c   : > { %v2265_v38 = vsel %vm2259_vm9, %v2262_v53, %v2264_v54  ;;  %v2550_v61 = vsel %vm2549_vm13, %v2548_v42, 0  ;;  %vm2110_vm3 = vweird.f32 %v5409_v14  ;;  %vm2117_vm14 = vcmp.eq.s32.totalorder %v6058_v17, 2 }
 0x31d   : > { %v6114_v57 = vmul.u32.u64.low %v6061_v36, %v2273_v43  ;;  %v6115_v1 = vmul.u32.u64.high %v6061_v36, %v2273_v43, %v6114_v57  ;;  %v2552_v58 = vand.u32 31, %v2550_v61  ;;  %v2403_v27 = vshll.u32 %v6074_v34, %v2401_v44 }
 0x31e   : > { %v2404_v10 = vshrl.u32 %v6069_v4, %v2402_v59  ;;  %v2407_v46 = vadd.s32 127, %v2406_v13  ;;  %v2546_v30 = vor.u32 8388608, %v6065_v60  ;;  %v2423_v55 = vadd.s32 3, %v2419_v26 }
 0x31f   : > { %v2281_v20 = vmul.u32 %v6061_v36, %v2265_v38  ;;  %v2284_v42 = vadd.s32 1, %v6106_v22  ;;  %v2553_v45 = vsub.s32 32, %v2552_v58  ;;  %v6122_v24 = vshrl.u32 %v2550_v61, 5 }
 0x320   : > { %v4503_v41 = vpop.eup %4502  ;;  %v2405_v6 = vor.u32 %v2404_v10, %v2403_v27  ;;  %v2408_v33 = vshll.u32 %v2407_v46, 23  ;;  %v2555_v0 = vshll.u32 %v4634_v63, %v2552_v58  ;;  %vm2283_vm15 = vc.u32 %v6115_v1, %v6105_v35 }
 0x321   : > { %v4505_v39 = vpop.eup %4504  ;;  %v2118_v34 = vxor.u32 2147483648, %v4503_v41  ;;  %v2558_v60 = vshll.u32 %v4635_v3, %v2552_v58  ;;  %v2564_v4 = vshll.u32 %v4637_v7, %v2552_v58  ;;  %v2285_v21 = vsel %vm2283_vm15, %v2284_v42, %v6106_v22 }
 0x322   : > { %v2115_v36 = vxor.u32 2147483648, %v4505_v39  ;;  %v2409_v51 = vor.u32 4788187, %v2408_v33  ;;  %v2412_v32 = vcvt.s32.f32 %v2405_v6  ;;  %v2286_v25 = vadd.s32 %v2285_v21, %v2281_v20 }
 0x323   : > { %v2119_v40 = vsel %vm2117_vm14, %v2118_v34, %v4505_v39  ;;  %v2556_v48 = vshrl.u32 %v4635_v3, %v2553_v45  ;;  %v2559_v53 = vshrl.u32 %v4636_v5, %v2553_v45  ;;  %vm2228_vm4 = vcmp.lt.s32.totalorder %v5543_v2, 0 }
 0x324   : > { %v2116_v19 = vsel %vm2114_vm12, %v4503_v41, %v2115_v36  ;;  %v2410_v11 = vand.u32 2147483647, %v2409_v51  ;;  %v2562_v54 = vshrl.u32 %v4637_v7, %v2553_v45  ;;  %v2565_v23 = vshrl.u32 %v4638_v9, %v2553_v45 }
 0x325   : > { %v2120_v8 = vsel %vm2113_vm0, %v2116_v19, %v2119_v40  ;;  %v2287_v26 = vadd.s32 536870912, %v2286_v25  ;;  %v2557_v52 = vor.u32 %v2556_v48, %v2555_v0  ;;  %v2561_v15 = vshll.u32 %v4636_v5, %v2552_v58 }
 0x326   : > { %v2121_v44 = vsel %vm2110_vm3, nan, %v2120_v8  ;;  %v2413_v43 = vmul.f32 %v2412_v32, %v2410_v11  ;;  %v2560_v22 = vor.u32 %v2559_v53, %v2558_v60  ;;  %v2566_v59 = vor.u32 %v2565_v23, %v2564_v4  ;;  %v6200_v23 = vpop.f32.mrb[9].mxu1 }
 0x327   : > { %3904 = vst [vmem:[%s5039_s30 + $0x70] sm:$0xff] %v2121_v44  ;;  %v2288_v13 = vshrl.u32 %v2287_v26, 30  ;;  %v2568_v38 = vshrl.u32 %v4639_v16, %v2553_v45  ;;  %v6148_v61 = vshll.u32 %v2546_v30, 8  ;;  %v2434_v57 = vand.u32 2147483647, %v5683_v12 }
 0x328   : > { %v2414_v17 = vxor.u32 2147483648, %v2413_v43  ;;  %v6151_v27 = vand.u32 3, %v2423_v55  ;;  %v2563_v10 = vor.u32 %v2562_v54, %v2561_v15  ;;  %v2567_v46 = vshll.u32 %v4638_v9, %v2552_v58 }
 0x329   : > { %v2289_v20 = vshll.u32 %v2288_v13, 30  ;;  %v2312_v14 = vsub.s32 4, %v2288_v13  ;;  %vm2570_vm1 = vcmp.lt.s32.totalorder %v6122_v24, 1  ;;  %vm2573_vm2 = vcmp.lt.s32.totalorder %v6122_v24, 4 }
 0x32a   : > { %v2415_v42 = vsel %vm2332_vm5, %v2414_v17, %v2413_v43  ;;  %v2569_v41 = vor.u32 %v2568_v38, %v2567_v46  ;;  %v2578_v30 = vsel %vm2570_vm1, %v2557_v52, %v2560_v22  ;;  %v2579_v55 = vsel %vm2573_vm2, %v2566_v59, 920167782 }
 0x32b   : > { %v2418_v58 = vsel %vm6080_vm6, %v5506_v29, %v2415_v42  ;;  %v6165_v6 = vsub.s32 %v2286_v25, %v2289_v20  ;;  %v2554_v33 = vshrl.u32 %v4634_v63, %v2553_v45  ;;  %vm2572_vm8 = vcmp.lt.s32.totalorder %v6122_v24, 3 }
 0x32c   : > { %4506 = vcosq.f32 %v2418_v58  ;;  %vm2571_vm5 = vcmp.lt.s32.totalorder %v6122_v24, 2  ;;  %v2575_v0 = vsel %vm2573_vm2, %v2563_v10, 2102212464  ;;  %v2580_v39 = vsel %vm2572_vm8, %v2563_v10, %v2579_v55 }
 0x32d   : > { %4508 = vsinq.f32 %v2418_v58  ;;  %v2292_v34 = vsub.s32 0, %v6165_v6  ;;  %v2313_v18 = vsel %vm2228_vm4, %v2312_v14, %v2288_v13  ;;  %v2581_v60 = vsel %vm2571_vm5, %v2578_v30, %v2580_v39 }
 0x32e   : > { %v2582_v45 = vsel %vm2570_vm1, %v2560_v22, %v2563_v10  ;;  %v2583_v4 = vsel %vm2573_vm2, %v2569_v41, 1326507024  ;;  %v6182_v36 = vmul.u32.u64.low %v6148_v61, %v2581_v60  ;;  %v6183_v51 = vmul.u32.u64.high %v6148_v61, %v2581_v60, %v6182_v36 }
 0x32f   : > { %v4109_v32 = vmin.u32 %v2292_v34, %v6165_v6  ;;  %v2574_v21 = vsel %vm2570_vm1, %v2554_v33, %v2557_v52  ;;  %v2576_v40 = vsel %vm2572_vm8, %v2560_v22, %v2575_v0  ;;  %v2584_v25 = vsel %vm2572_vm8, %v2566_v59, %v2583_v4 }
 0x330   : > { %vm6191_vm6 = vcmp.le.f32.partialorder %v2226_v62, 0.7853982  ;;  %v2585_v53 = vsel %vm2571_vm5, %v2582_v45, %v2584_v25  ;;  %v2437_v19 = vand.u32 2139095040, %v5683_v12  ;;  %v2577_v8 = vsel %vm2571_vm5, %v2574_v21, %v2576_v40 }
 0x331   : > { %v2294_v11 = vclz %v4109_v32  ;;  %v2315_v54 = vsel %vm6191_vm6, 0, %v2313_v18  ;;  %v6205_v26 = vmul.u32.u64.low %v6148_v61, %v2585_v53  ;;  %v6206_v62 = vmul.u32.u64.high %v6148_v61, %v2585_v53, %v6205_v26 }
 0x332   : > { %v2438_v52 = vshrl.u32 %v2437_v19, 23  ;;  %vm2422_vm9 = vweird.f32 %v5506_v29  ;;  %vm2425_vm10 = vcmp.lt.s32.totalorder %v6151_v27, 2  ;;  %v2441_v44 = vand.u32 8388607, %v2434_v57 }
 0x333   : > { %v4110_v15 = vadd.s32 4294967294, %v2294_v11  ;;  %vm2426_vm7 = vcmp.eq.s32.totalorder %v6151_v27, 0  ;;  %vm2429_vm13 = vcmp.eq.s32.totalorder %v6151_v27, 2  ;;  %v2596_v24 = vadd.s32 1, %v6183_v51 }
 0x334   : > { %v4116_v43 = vadd.s32 4294967169, %v2438_v52  ;;  %v2282_v22 = vadd.s32 %v6105_v35, %v6115_v1  ;;  %v2319_v59 = vadd.s32 3, %v2315_v54  ;;  %v2593_v13 = vmul.u32 %v6148_v61, %v2577_v8 }
 0x335   : > { %vm4111_vm11 = vcmp.lt.s32.totalorder %v4110_v15, 0  ;;  %vm2595_vm12 = vc.u32 %v6206_v62, %v6182_v36  ;;  %v2749_v46 = vand.u32 2139095040, %v5806_v47  ;;  %v2442_v30 = vor.u32 8388608, %v2441_v44 }
 0x336   : > { %v4507_v38 = vpop.eup %4506  ;;  %v2297_v17 = vsel %vm4111_vm11, 0, %v4110_v15  ;;  %v2444_v10 = vadd.s32 1, %v4116_v43  ;;  %v2597_v1 = vsel %vm2595_vm12, %v2596_v24, %v6183_v51  ;;  %v2746_v18 = vand.u32 2147483647, %v5806_v47 }
 0x337   : > { %v4509_v20 = vpop.eup %4508  ;;  %v2430_v14 = vxor.u32 2147483648, %v4507_v38  ;;  %v2298_v42 = vsub.s32 32, %v2297_v17  ;;  %v2302_v41 = vsub.s32 4294967266, %v2297_v17  ;;  %v2299_v35 = vshll.u32 %v6165_v6, %v2297_v17 }
 0x338   : > { %v2427_v55 = vxor.u32 2147483648, %v4509_v20  ;;  %vm2445_vm0 = vcmp.gt.s32.totalorder %v2444_v10, 0  ;;  %v2598_v0 = vadd.s32 %v2597_v1, %v2593_v13  ;;  %v2750_v60 = vshrl.u32 %v2749_v46, 23 }
 0x339   : > { %v2431_v61 = vsel %vm2429_vm13, %v2430_v14, %v4509_v20  ;;  %v2300_v58 = vshrl.u32 %v2282_v22, %v2298_v42  ;;  %v2303_v33 = vadd.s32 127, %v2302_v41  ;;  %v2446_v34 = vsel %vm2445_vm0, %v2444_v10, 0 }
 0x33a   : > { %v2428_v39 = vsel %vm2426_vm7, %v4507_v38, %v2427_v55  ;;  %v2599_v51 = vadd.s32 536870912, %v2598_v0  ;;  %v2448_v21 = vand.u32 31, %v2446_v34  ;;  %v6233_v25 = vand.u32 3, %v2319_v59 }
 0x33b   : > { %v2432_v6 = vsel %vm2425_vm10, %v2428_v39, %v2431_v61  ;;  %v2301_v45 = vor.u32 %v2300_v58, %v2299_v35  ;;  %v2304_v4 = vshll.u32 %v2303_v33, 23  ;;  %vm2540_vm3 = vcmp.lt.s32.totalorder %v5644_v49, 0 }
 0x33c   : > { %v2433_v32 = vsel %vm2422_vm9, nan, %v2432_v6  ;;  %v2600_v53 = vshrl.u32 %v2599_v51, 30  ;;  %v2449_v19 = vsub.s32 32, %v2448_v21  ;;  %v6236_v11 = vshll.u32 %v2442_v30, 8 }
 0x33d   : > { %3907 = vst [vmem:[%s5039_s30 + $0x88] sm:$0xff] %v2433_v32  ;;  %v2305_v40 = vor.u32 4788187, %v2304_v4  ;;  %v4128_v54 = vadd.s32 4294967169, %v2750_v60  ;;  %v6240_v27 = vand.u32 8388607, %v2746_v18  ;;  %v2308_v26 = vcvt.s32.f32 %v2301_v45 }
 0x33e   : > { %v6244_v29 = vadd.s32 %v6182_v36, %v6206_v62  ;;  %v2601_v52 = vshll.u32 %v2600_v53, 30  ;;  %v2447_v15 = vshrl.u32 %v2446_v34, 5  ;;  %v2452_v44 = vshrl.u32 %v4635_v3, %v2449_v19 }
 0x33f   : > { %v2306_v8 = vand.u32 2147483647, %v2305_v40  ;;  %v2455_v24 = vshrl.u32 %v4636_v5, %v2449_v19  ;;  %v2458_v43 = vshrl.u32 %v4637_v7, %v2449_v19  ;;  %v2451_v13 = vshll.u32 %v4634_v63, %v2448_v21 }
 0x340   : > { %v6249_v59 = vsub.s32 %v2598_v0, %v2601_v52  ;;  %v2461_v38 = vshrl.u32 %v4638_v9, %v2449_v19  ;;  %vm6255_vm14 = vcmp.le.f32.partialorder %v2538_v56, 0.7853982  ;;  %v2624_v62 = vsub.s32 4, %v2600_v53 }
 0x341   : > { %v2309_v22 = vmul.f32 %v2308_v26, %v2306_v8  ;;  %v2454_v17 = vshll.u32 %v4635_v3, %v2448_v21  ;;  %v2457_v10 = vshll.u32 %v4636_v5, %v2448_v21  ;;  %v2756_v46 = vadd.s32 1, %v4128_v54 }
 0x342   : > { %v2604_v14 = vsub.s32 0, %v6249_v59  ;;  %v2453_v42 = vor.u32 %v2452_v44, %v2451_v13  ;;  %v2460_v41 = vshll.u32 %v4637_v7, %v2448_v21  ;;  %v2463_v35 = vshll.u32 %v4638_v9, %v2448_v21 }
 0x343   : > { %v2310_v20 = vxor.u32 2147483648, %v2309_v22  ;;  %v2456_v30 = vor.u32 %v2455_v24, %v2454_v17  ;;  %v2459_v55 = vor.u32 %v2458_v43, %v2457_v10  ;;  %v2464_v56 = vshrl.u32 %v4639_v16, %v2449_v19 }
 0x344   : > { %v4121_v61 = vmin.u32 %v2604_v14, %v6249_v59  ;;  %v2450_v58 = vshrl.u32 %v4634_v63, %v2449_v19  ;;  %v2462_v33 = vor.u32 %v2461_v38, %v2460_v41  ;;  %v2625_v39 = vsel %vm2540_vm3, %v2624_v62, %v2600_v53 }
 0x345   : > { %v2311_v1 = vsel %vm2228_vm4, %v2310_v20, %v2309_v22  ;;  %v2465_v34 = vor.u32 %v2464_v56, %v2463_v35  ;;  %vm2466_vm15 = vcmp.lt.s32.totalorder %v2447_v15, 1  ;;  %vm2467_vm1 = vcmp.lt.s32.totalorder %v2447_v15, 2 }
 0x346   : > { %v2314_v0 = vsel %vm6191_vm6, %v5543_v2, %v2311_v1  ;;  %v2606_v60 = vclz %v4121_v61  ;;  %vm2469_vm2 = vcmp.lt.s32.totalorder %v2447_v15, 4  ;;  %vm2468_vm4 = vcmp.lt.s32.totalorder %v2447_v15, 3 }
 0x347   : > { %4510 = vcosq.f32 %v2314_v0  ;;  %v2471_v6 = vsel %vm2469_vm2, %v2459_v55, 2102212464  ;;  %v2474_v45 = vsel %vm2466_vm15, %v2453_v42, %v2456_v30  ;;  %v2470_v51 = vsel %vm2466_vm15, %v2450_v58, %v2453_v42 }
 0x348   : > { %4512 = vsinq.f32 %v2314_v0  ;;  %v4122_v4 = vadd.s32 4294967294, %v2606_v60  ;;  %v2475_v32 = vsel %vm2469_vm2, %v2462_v33, 920167782  ;;  %v2478_v21 = vsel %vm2466_vm15, %v2456_v30, %v2459_v55  ;;  %v6305_v60 = vpop.f32.mrb[10].mxu1 }
 0x349   : > { %v2472_v40 = vsel %vm2468_vm4, %v2456_v30, %v2471_v6  ;;  %v2476_v48 = vsel %vm2468_vm4, %v2459_v55, %v2475_v32  ;;  %v2479_v19 = vsel %vm2469_vm2, %v2465_v34, 1326507024  ;;  %vm2757_vm8 = vcmp.gt.s32.totalorder %v2756_v46, 0 }
 0x34a   : > { %vm4123_vm5 = vcmp.lt.s32.totalorder %v4122_v4, 0  ;;  %v2627_v53 = vsel %vm6255_vm14, 0, %v2625_v39  ;;  %v2477_v54 = vsel %vm2467_vm1, %v2474_v45, %v2476_v48  ;;  %v2480_v8 = vsel %vm2468_vm4, %v2462_v33, %v2479_v19 }
 0x34b   : > { %vm2322_vm6 = vcmp.eq.s32.totalorder %v6233_v25, 0  ;;  %v2609_v26 = vsel %vm4123_vm5, 0, %v4122_v4  ;;  %v2481_v52 = vsel %vm2467_vm1, %v2478_v21, %v2480_v8  ;;  %vm2321_vm9 = vcmp.lt.s32.totalorder %v6233_v25, 2 }
 0x34c   : > { %v6280_v44 = vmul.u32.u64.low %v6236_v11, %v2477_v54  ;;  %v6281_v24 = vmul.u32.u64.high %v6236_v11, %v2477_v54, %v6280_v44  ;;  %v2610_v43 = vsub.s32 32, %v2609_v26  ;;  %v2614_v22 = vsub.s32 4294967266, %v2609_v26 }
 0x34d   : > { %v2473_v13 = vsel %vm2467_vm1, %v2470_v51, %v2472_v40  ;;  %v2758_v38 = vsel %vm2757_vm8, %v2756_v46, 0  ;;  %vm2318_vm10 = vweird.f32 %v5543_v2  ;;  %vm2325_vm7 = vcmp.eq.s32.totalorder %v6233_v25, 2 }
 0x34e   : > { %v6289_v62 = vmul.u32.u64.low %v6236_v11, %v2481_v52  ;;  %v6290_v17 = vmul.u32.u64.high %v6236_v11, %v2481_v52, %v6289_v62  ;;  %v2760_v10 = vand.u32 31, %v2758_v38  ;;  %v2611_v20 = vshll.u32 %v6249_v59, %v2609_v26 }
 0x34f   : > { %v2612_v14 = vshrl.u32 %v6244_v29, %v2610_v43  ;;  %v2615_v42 = vadd.s32 127, %v2614_v22  ;;  %v2754_v41 = vor.u32 8388608, %v6240_v27  ;;  %v2631_v30 = vadd.s32 3, %v2627_v53 }
 0x350   : > { %v2489_v15 = vmul.u32 %v6236_v11, %v2473_v13  ;;  %v2492_v46 = vadd.s32 1, %v6281_v24  ;;  %v2761_v55 = vsub.s32 32, %v2760_v10  ;;  %v6297_v61 = vshrl.u32 %v2758_v38, 5 }
 0x351   : > { %v4511_v35 = vpop.eup %4510  ;;  %v2613_v56 = vor.u32 %v2612_v14, %v2611_v20  ;;  %v2616_v1 = vshll.u32 %v2615_v42, 23  ;;  %v2763_v58 = vshll.u32 %v4634_v63, %v2760_v10  ;;  %vm2491_vm13 = vc.u32 %v6290_v17, %v6280_v44 }
 0x352   : > { %v4513_v33 = vpop.eup %4512  ;;  %v2326_v59 = vxor.u32 2147483648, %v4511_v35  ;;  %v2766_v27 = vshll.u32 %v4635_v3, %v2760_v10  ;;  %v2772_v29 = vshll.u32 %v4637_v7, %v2760_v10  ;;  %v2493_v34 = vsel %vm2491_vm13, %v2492_v46, %v6281_v24 }
 0x353   : > { %v2323_v11 = vxor.u32 2147483648, %v4513_v33  ;;  %v2617_v0 = vor.u32 4788187, %v2616_v1  ;;  %v2620_v39 = vcvt.s32.f32 %v2613_v56  ;;  %v2494_v45 = vadd.s32 %v2493_v34, %v2489_v15 }
 0x354   : > { %v2327_v6 = vsel %vm2325_vm7, %v2326_v59, %v4513_v33  ;;  %v2764_v4 = vshrl.u32 %v4635_v3, %v2761_v55  ;;  %v2767_v51 = vshrl.u32 %v4636_v5, %v2761_v55  ;;  %vm2436_vm11 = vcmp.lt.s32.totalorder %v5683_v12, 0 }
 0x355   : > { %v2324_v32 = vsel %vm2322_vm6, %v4511_v35, %v2323_v11  ;;  %v2618_v21 = vand.u32 2147483647, %v2617_v0  ;;  %v2770_v40 = vshrl.u32 %v4637_v7, %v2761_v55  ;;  %v2773_v48 = vshrl.u32 %v4638_v9, %v2761_v55 }
 0x356   : > { %v2328_v19 = vsel %vm2321_vm9, %v2324_v32, %v2327_v6  ;;  %v2495_v53 = vadd.s32 536870912, %v2494_v45  ;;  %v2765_v54 = vor.u32 %v2764_v4, %v2763_v58  ;;  %v2769_v8 = vshll.u32 %v4636_v5, %v2760_v10 }
 0x357   : > { %v2329_v26 = vsel %vm2318_vm10, nan, %v2328_v19  ;;  %v2621_v52 = vmul.f32 %v2620_v39, %v2618_v21  ;;  %v2768_v24 = vor.u32 %v2767_v51, %v2766_v27  ;;  %v2774_v43 = vor.u32 %v2773_v48, %v2772_v29  ;;  %v6375_v48 = vpop.f32.mrb[11].mxu1 }
 0x358   : > { %3906 = vst [vmem:[%s5039_s30 + $0x80] sm:$0xff] %v2329_v26  ;;  %v2496_v22 = vshrl.u32 %v2495_v53, 30  ;;  %v2776_v13 = vshrl.u32 %v4639_v16, %v2761_v55  ;;  %v6323_v38 = vshll.u32 %v2754_v41, 8  ;;  %v2642_v62 = vand.u32 2147483647, %v5853_v50 }
 0x359   : > { %v2622_v25 = vxor.u32 2147483648, %v2621_v52  ;;  %v6326_v20 = vand.u32 3, %v2631_v30  ;;  %v2771_v14 = vor.u32 %v2770_v40, %v2769_v8  ;;  %v2775_v42 = vshll.u32 %v4638_v9, %v2760_v10 }
 0x35a   : > { %v2497_v15 = vshll.u32 %v2496_v22, 30  ;;  %v2520_v2 = vsub.s32 4, %v2496_v22  ;;  %vm2778_vm12 = vcmp.lt.s32.totalorder %v6297_v61, 1  ;;  %vm2781_vm0 = vcmp.lt.s32.totalorder %v6297_v61, 4 }
 0x35b   : > { %v2623_v46 = vsel %vm2540_vm3, %v2622_v25, %v2621_v52  ;;  %v2777_v35 = vor.u32 %v2776_v13, %v2775_v42  ;;  %v2786_v41 = vsel %vm2778_vm12, %v2765_v54, %v2768_v24  ;;  %v2787_v30 = vsel %vm2781_vm0, %v2774_v43, 920167782 }
 0x35c   : > { %v2626_v10 = vsel %vm6255_vm14, %v5644_v49, %v2623_v46  ;;  %v6340_v56 = vsub.s32 %v2494_v45, %v2497_v15  ;;  %v2762_v1 = vshrl.u32 %v4634_v63, %v2761_v55  ;;  %vm2780_vm15 = vcmp.lt.s32.totalorder %v6297_v61, 3 }
 0x35d   : > { %4514 = vcosq.f32 %v2626_v10  ;;  %vm2779_vm3 = vcmp.lt.s32.totalorder %v6297_v61, 2  ;;  %v2783_v58 = vsel %vm2781_vm0, %v2771_v14, 2102212464  ;;  %v2788_v33 = vsel %vm2780_vm15, %v2771_v14, %v2787_v30 }
 0x35e   : > { %4516 = vsinq.f32 %v2626_v10  ;;  %v2500_v59 = vsub.s32 0, %v6340_v56  ;;  %v2521_v36 = vsel %vm2436_vm11, %v2520_v2, %v2496_v22  ;;  %v2789_v27 = vsel %vm2779_vm3, %v2786_v41, %v2788_v33 }
 0x35f   : > { %v2790_v55 = vsel %vm2778_vm12, %v2768_v24, %v2771_v14  ;;  %v2791_v29 = vsel %vm2781_vm0, %v2777_v35, 1326507024  ;;  %v6357_v11 = vmul.u32.u64.low %v6323_v38, %v2789_v27  ;;  %v6358_v0 = vmul.u32.u64.high %v6323_v38, %v2789_v27, %v6357_v11 }
 0x360   : > { %v4117_v39 = vmin.u32 %v2500_v59, %v6340_v56  ;;  %v2782_v34 = vsel %vm2778_vm12, %v2762_v1, %v2765_v54  ;;  %v2784_v6 = vsel %vm2780_vm15, %v2768_v24, %v2783_v58  ;;  %v2792_v45 = vsel %vm2780_vm15, %v2774_v43, %v2791_v29 }
 0x361   : > { %vm6366_vm14 = vcmp.le.f32.partialorder %v2434_v57, 0.7853982  ;;  %v2793_v51 = vsel %vm2779_vm3, %v2790_v55, %v2792_v45  ;;  %v2645_v32 = vand.u32 2139095040, %v5853_v50  ;;  %v2785_v19 = vsel %vm2779_vm3, %v2782_v34, %v2784_v6 }
 0x362   : > { %v2502_v21 = vclz %v4117_v39  ;;  %v2523_v40 = vsel %vm6366_vm14, 0, %v2521_v36  ;;  %v6380_v53 = vmul.u32.u64.low %v6323_v38, %v2793_v51  ;;  %v6381_v57 = vmul.u32.u64.high %v6323_v38, %v2793_v51, %v6380_v53 }
 0x363   : > { %v2646_v54 = vshrl.u32 %v2645_v32, 23  ;;  %vm2630_vm1 = vweird.f32 %v5644_v49  ;;  %vm2633_vm2 = vcmp.lt.s32.totalorder %v6326_v20, 2  ;;  %v2649_v26 = vand.u32 8388607, %v2642_v62 }
 0x364   : > { %v4118_v8 = vadd.s32 4294967294, %v2502_v21  ;;  %vm2634_vm4 = vcmp.eq.s32.totalorder %v6326_v20, 0  ;;  %vm2637_vm8 = vcmp.eq.s32.totalorder %v6326_v20, 2  ;;  %v2804_v61 = vadd.s32 1, %v6358_v0 }
 0x365   : > { %v4124_v52 = vadd.s32 4294967169, %v2646_v54  ;;  %v2490_v24 = vadd.s32 %v6280_v44, %v6290_v17  ;;  %v2527_v43 = vadd.s32 3, %v2523_v40  ;;  %v2801_v22 = vmul.u32 %v6323_v38, %v2785_v19 }
 0x366   : > { %vm4119_vm5 = vcmp.lt.s32.totalorder %v4118_v8, 0  ;;  %vm2803_vm6 = vc.u32 %v6381_v57, %v6357_v11  ;;  %v2957_v42 = vand.u32 2139095040, %v5955_v28  ;;  %v2650_v41 = vor.u32 8388608, %v2649_v26 }
 0x367   : > { %v4515_v13 = vpop.eup %4514  ;;  %v2505_v25 = vsel %vm4119_vm5, 0, %v4118_v8  ;;  %v2652_v14 = vadd.s32 1, %v4124_v52  ;;  %v2805_v17 = vsel %vm2803_vm6, %v2804_v61, %v6358_v0  ;;  %v2954_v36 = vand.u32 2147483647, %v5955_v28 }
 0x368   : > { %v4517_v15 = vpop.eup %4516  ;;  %v2638_v2 = vxor.u32 2147483648, %v4515_v13  ;;  %v2506_v46 = vsub.s32 32, %v2505_v25  ;;  %v2510_v35 = vsub.s32 4294967266, %v2505_v25  ;;  %v2507_v44 = vshll.u32 %v6340_v56, %v2505_v25 }
 0x369   : > { %v2635_v30 = vxor.u32 2147483648, %v4517_v15  ;;  %vm2653_vm9 = vcmp.gt.s32.totalorder %v2652_v14, 0  ;;  %v2806_v58 = vadd.s32 %v2805_v17, %v2801_v22  ;;  %v2958_v27 = vshrl.u32 %v2957_v42, 23 }
 0x36a   : > { %v2639_v38 = vsel %vm2637_vm8, %v2638_v2, %v4517_v15  ;;  %v2508_v10 = vshrl.u32 %v2490_v24, %v2506_v46  ;;  %v2511_v1 = vadd.s32 127, %v2510_v35  ;;  %v2654_v59 = vsel %vm2653_vm9, %v2652_v14, 0 }
 0x36b   : > { %v2636_v33 = vsel %vm2634_vm4, %v4515_v13, %v2635_v30  ;;  %v2807_v0 = vadd.s32 536870912, %v2806_v58  ;;  %v2656_v34 = vand.u32 31, %v2654_v59  ;;  %v6408_v45 = vand.u32 3, %v2527_v43 }
 0x36c   : > { %v2640_v56 = vsel %vm2633_vm2, %v2636_v33, %v2639_v38  ;;  %v2509_v55 = vor.u32 %v2508_v10, %v2507_v44  ;;  %v2512_v29 = vshll.u32 %v2511_v1, 23  ;;  %vm2748_vm10 = vcmp.lt.s32.totalorder %v5806_v47, 0 }
 0x36d   : > { %v2641_v39 = vsel %vm2630_vm1, nan, %v2640_v56  ;;  %v2808_v51 = vshrl.u32 %v2807_v0, 30  ;;  %v2657_v32 = vsub.s32 32, %v2656_v34  ;;  %v6411_v21 = vshll.u32 %v2650_v41, 8 }
 0x36e   : > { %3909 = vst [vmem:[%s5039_s30 + $0x98] sm:$0xff] %v2641_v39  ;;  %v2513_v6 = vor.u32 4788187, %v2512_v29  ;;  %v4136_v40 = vadd.s32 4294967169, %v2958_v27  ;;  %v6415_v20 = vand.u32 8388607, %v2954_v36  ;;  %v2516_v53 = vcvt.s32.f32 %v2509_v55 }
 0x36f   : > { %v6419_v49 = vadd.s32 %v6357_v11, %v6381_v57  ;;  %v2809_v54 = vshll.u32 %v2808_v51, 30  ;;  %v2655_v8 = vshrl.u32 %v2654_v59, 5  ;;  %v2660_v26 = vshrl.u32 %v4635_v3, %v2657_v32 }
 0x370   : > { %v2514_v19 = vand.u32 2147483647, %v2513_v6  ;;  %v2663_v61 = vshrl.u32 %v4636_v5, %v2657_v32  ;;  %v2666_v52 = vshrl.u32 %v4637_v7, %v2657_v32  ;;  %v2659_v22 = vshll.u32 %v4634_v63, %v2656_v34 }
 0x371   : > { %v6424_v43 = vsub.s32 %v2806_v58, %v2809_v54  ;;  %v2669_v13 = vshrl.u32 %v4638_v9, %v2657_v32  ;;  %vm6430_vm7 = vcmp.le.f32.partialorder %v2746_v18, 0.7853982  ;;  %v2832_v57 = vsub.s32 4, %v2808_v51 }
 0x372   : > { %v2517_v24 = vmul.f32 %v2516_v53, %v2514_v19  ;;  %v2662_v25 = vshll.u32 %v4635_v3, %v2656_v34  ;;  %v2665_v14 = vshll.u32 %v4636_v5, %v2656_v34  ;;  %v2964_v42 = vadd.s32 1, %v4136_v40 }
 0x373   : > { %v2812_v2 = vsub.s32 0, %v6424_v43  ;;  %v2661_v46 = vor.u32 %v2660_v26, %v2659_v22  ;;  %v2668_v35 = vshll.u32 %v4637_v7, %v2656_v34  ;;  %v2671_v44 = vshll.u32 %v4638_v9, %v2656_v34 }
 0x374   : > { %v2518_v15 = vxor.u32 2147483648, %v2517_v24  ;;  %v2664_v41 = vor.u32 %v2663_v61, %v2662_v25  ;;  %v2667_v30 = vor.u32 %v2666_v52, %v2665_v14  ;;  %v2672_v18 = vshrl.u32 %v4639_v16, %v2657_v32 }
 0x375   : > { %v4129_v38 = vmin.u32 %v2812_v2, %v6424_v43  ;;  %v2658_v10 = vshrl.u32 %v4634_v63, %v2657_v32  ;;  %v2670_v1 = vor.u32 %v2669_v13, %v2668_v35  ;;  %v2833_v33 = vsel %vm2748_vm10, %v2832_v57, %v2808_v51 }
 0x376   : > { %v2519_v17 = vsel %vm2436_vm11, %v2518_v15, %v2517_v24  ;;  %v2673_v59 = vor.u32 %v2672_v18, %v2671_v44  ;;  %vm2674_vm13 = vcmp.lt.s32.totalorder %v2655_v8, 1  ;;  %vm2675_vm12 = vcmp.lt.s32.totalorder %v2655_v8, 2 }
 0x377   : > { %v2522_v58 = vsel %vm6366_vm14, %v5683_v12, %v2519_v17  ;;  %v2814_v27 = vclz %v4129_v38  ;;  %vm2677_vm0 = vcmp.lt.s32.totalorder %v2655_v8, 4  ;;  %vm2676_vm11 = vcmp.lt.s32.totalorder %v2655_v8, 3 }
 0x378   : > { %4518 = vcosq.f32 %v2522_v58  ;;  %v2679_v56 = vsel %vm2677_vm0, %v2667_v30, 2102212464  ;;  %v2682_v55 = vsel %vm2674_vm13, %v2661_v46, %v2664_v41  ;;  %v2678_v0 = vsel %vm2674_vm13, %v2658_v10, %v2661_v46 }
 0x379   : > { %4520 = vsinq.f32 %v2522_v58  ;;  %v4130_v29 = vadd.s32 4294967294, %v2814_v27  ;;  %v2683_v39 = vsel %vm2677_vm0, %v2670_v1, 920167782  ;;  %v2686_v34 = vsel %vm2674_vm13, %v2664_v41, %v2667_v30  ;;  %v6480_v27 = vpop.f32.mrb[12].mxu1 }
 0x37a   : > { %v2680_v6 = vsel %vm2676_vm11, %v2664_v41, %v2679_v56  ;;  %v2684_v4 = vsel %vm2676_vm11, %v2667_v30, %v2683_v39  ;;  %v2687_v32 = vsel %vm2677_vm0, %v2673_v59, 1326507024  ;;  %vm2965_vm15 = vcmp.gt.s32.totalorder %v2964_v42, 0 }
 0x37b   : > { %vm4131_vm3 = vcmp.lt.s32.totalorder %v4130_v29, 0  ;;  %v2835_v51 = vsel %vm6430_vm7, 0, %v2833_v33  ;;  %v2685_v40 = vsel %vm2675_vm12, %v2682_v55, %v2684_v4  ;;  %v2688_v19 = vsel %vm2676_vm11, %v2670_v1, %v2687_v32 }
 0x37c   : > { %vm2530_vm14 = vcmp.eq.s32.totalorder %v6408_v45, 0  ;;  %v2817_v53 = vsel %vm4131_vm3, 0, %v4130_v29  ;;  %v2689_v54 = vsel %vm2675_vm12, %v2686_v34, %v2688_v19  ;;  %vm2529_vm1 = vcmp.lt.s32.totalorder %v6408_v45, 2 }
 0x37d   : > { %v6455_v26 = vmul.u32.u64.low %v6411_v21, %v2685_v40  ;;  %v6456_v61 = vmul.u32.u64.high %v6411_v21, %v2685_v40, %v6455_v26  ;;  %v2818_v52 = vsub.s32 32, %v2817_v53  ;;  %v2822_v24 = vsub.s32 4294967266, %v2817_v53 }
 0x37e   : > { %v2681_v22 = vsel %vm2675_vm12, %v2678_v0, %v2680_v6  ;;  %v2966_v13 = vsel %vm2965_vm15, %v2964_v42, 0  ;;  %vm2526_vm2 = vweird.f32 %v5683_v12  ;;  %vm2533_vm4 = vcmp.eq.s32.totalorder %v6408_v45, 2 }
 0x37f   : > { %v6464_v57 = vmul.u32.u64.low %v6411_v21, %v2689_v54  ;;  %v6465_v25 = vmul.u32.u64.high %v6411_v21, %v2689_v54, %v6464_v57  ;;  %v2968_v14 = vand.u32 31, %v2966_v13  ;;  %v2819_v15 = vshll.u32 %v6424_v43, %v2817_v53 }
 0x380   : > { %v2820_v2 = vshrl.u32 %v6419_v49, %v2818_v52  ;;  %v2823_v46 = vadd.s32 127, %v2822_v24  ;;  %v2962_v35 = vor.u32 8388608, %v6415_v20  ;;  %v2839_v41 = vadd.s32 3, %v2835_v51 }
 0x381   : > { %v2697_v8 = vmul.u32 %v6411_v21, %v2681_v22  ;;  %v2700_v42 = vadd.s32 1, %v6456_v61  ;;  %v2969_v30 = vsub.s32 32, %v2968_v14  ;;  %v6472_v38 = vshrl.u32 %v2966_v13, 5 }
 0x382   : > { %v4519_v44 = vpop.eup %4518  ;;  %v2821_v18 = vor.u32 %v2820_v2, %v2819_v15  ;;  %v2824_v17 = vshll.u32 %v2823_v46, 23  ;;  %v2971_v10 = vshll.u32 %v4634_v63, %v2968_v14  ;;  %vm2699_vm8 = vc.u32 %v6465_v25, %v6455_v26 }
 0x383   : > { %v4521_v1 = vpop.eup %4520  ;;  %v2534_v43 = vxor.u32 2147483648, %v4519_v44  ;;  %v2974_v20 = vshll.u32 %v4635_v3, %v2968_v14  ;;  %v2980_v49 = vshll.u32 %v4637_v7, %v2968_v14  ;;  %v2701_v59 = vsel %vm2699_vm8, %v2700_v42, %v6456_v61 }
 0x384   : > { %v2531_v21 = vxor.u32 2147483648, %v4521_v1  ;;  %v2825_v58 = vor.u32 4788187, %v2824_v17  ;;  %v2828_v33 = vcvt.s32.f32 %v2821_v18  ;;  %v2702_v55 = vadd.s32 %v2701_v59, %v2697_v8 }
 0x385   : > { %v2535_v56 = vsel %vm2533_vm4, %v2534_v43, %v4521_v1  ;;  %v2972_v29 = vshrl.u32 %v4635_v3, %v2969_v30  ;;  %v2975_v0 = vshrl.u32 %v4636_v5, %v2969_v30  ;;  %vm2644_vm5 = vcmp.lt.s32.totalorder %v5853_v50, 0 }
 0x386   : > { %v2532_v39 = vsel %vm2530_vm14, %v4519_v44, %v2531_v21  ;;  %v2826_v34 = vand.u32 2147483647, %v2825_v58  ;;  %v2978_v6 = vshrl.u32 %v4637_v7, %v2969_v30  ;;  %v2981_v4 = vshrl.u32 %v4638_v9, %v2969_v30 }
 0x387   : > { %v2536_v32 = vsel %vm2529_vm1, %v2532_v39, %v2535_v56  ;;  %v2703_v51 = vadd.s32 536870912, %v2702_v55  ;;  %v2973_v40 = vor.u32 %v2972_v29, %v2971_v10  ;;  %v2977_v19 = vshll.u32 %v4636_v5, %v2968_v14 }
 0x388   : > { %v2537_v53 = vsel %vm2526_vm2, nan, %v2536_v32  ;;  %v2829_v54 = vmul.f32 %v2828_v33, %v2826_v34  ;;  %v2976_v61 = vor.u32 %v2975_v0, %v2974_v20  ;;  %v2982_v52 = vor.u32 %v2981_v4, %v2980_v49  ;;  %v6550_v4 = vpop.f32.mrb[13].mxu1 }
 0x389   : > { %3908 = vst [vmem:[%s5039_s30 + $0x90] sm:$0xff] %v2537_v53  ;;  %v2704_v24 = vshrl.u32 %v2703_v51, 30  ;;  %v2984_v22 = vshrl.u32 %v4639_v16, %v2969_v30  ;;  %v6498_v13 = vshll.u32 %v2962_v35, 8  ;;  %v2850_v57 = vand.u32 2147483647, %v6025_v37 }
 0x38a   : > { %v2830_v45 = vxor.u32 2147483648, %v2829_v54  ;;  %v6501_v15 = vand.u32 3, %v2839_v41  ;;  %v2979_v2 = vor.u32 %v2978_v6, %v2977_v19  ;;  %v2983_v46 = vshll.u32 %v4638_v9, %v2968_v14 }
 0x38b   : > { %v2705_v8 = vshll.u32 %v2704_v24, 30  ;;  %v2728_v12 = vsub.s32 4, %v2704_v24  ;;  %vm2986_vm6 = vcmp.lt.s32.totalorder %v6472_v38, 1  ;;  %vm2989_vm9 = vcmp.lt.s32.totalorder %v6472_v38, 4 }
 0x38c   : > { %v2831_v42 = vsel %vm2748_vm10, %v2830_v45, %v2829_v54  ;;  %v2985_v44 = vor.u32 %v2984_v22, %v2983_v46  ;;  %v2994_v35 = vsel %vm2986_vm6, %v2973_v40, %v2976_v61  ;;  %v2995_v41 = vsel %vm2989_vm9, %v2982_v52, 920167782 }
 0x38d   : > { %v2834_v14 = vsel %vm6430_vm7, %v5806_v47, %v2831_v42  ;;  %v6515_v18 = vsub.s32 %v2702_v55, %v2705_v8  ;;  %v2970_v17 = vshrl.u32 %v4634_v63, %v2969_v30  ;;  %vm2988_vm13 = vcmp.lt.s32.totalorder %v6472_v38, 3 }
 0x38e   : > { %4522 = vcosq.f32 %v2834_v14  ;;  %vm2987_vm10 = vcmp.lt.s32.totalorder %v6472_v38, 2  ;;  %v2991_v10 = vsel %vm2989_vm9, %v2979_v2, 2102212464  ;;  %v2996_v1 = vsel %vm2988_vm13, %v2979_v2, %v2995_v41 }
 0x38f   : > { %4524 = vsinq.f32 %v2834_v14  ;;  %v2708_v43 = vsub.s32 0, %v6515_v18  ;;  %v2729_v11 = vsel %vm2644_vm5, %v2728_v12, %v2704_v24  ;;  %v2997_v20 = vsel %vm2987_vm10, %v2994_v35, %v2996_v1 }
 0x390   : > { %v2998_v30 = vsel %vm2986_vm6, %v2976_v61, %v2979_v2  ;;  %v2999_v49 = vsel %vm2989_vm9, %v2985_v44, 1326507024  ;;  %v6532_v21 = vmul.u32.u64.low %v6498_v13, %v2997_v20  ;;  %v6533_v58 = vmul.u32.u64.high %v6498_v13, %v2997_v20, %v6532_v21 }
 0x391   : > { %v4125_v33 = vmin.u32 %v2708_v43, %v6515_v18  ;;  %v2990_v59 = vsel %vm2986_vm6, %v2970_v17, %v2973_v40  ;;  %v2992_v56 = vsel %vm2988_vm13, %v2976_v61, %v2991_v10  ;;  %v3000_v55 = vsel %vm2988_vm13, %v2982_v52, %v2999_v49 }
 0x392   : > { %vm6541_vm7 = vcmp.le.f32.partialorder %v2642_v62, 0.7853982  ;;  %v3001_v0 = vsel %vm2987_vm10, %v2998_v30, %v3000_v55  ;;  %v2853_v39 = vand.u32 2139095040, %v6025_v37  ;;  %v2993_v32 = vsel %vm2987_vm10, %v2990_v59, %v2992_v56 }
 0x393   : > { %v2710_v34 = vclz %v4125_v33  ;;  %v2731_v6 = vsel %vm6541_vm7, 0, %v2729_v11  ;;  %v6555_v51 = vmul.u32.u64.low %v6498_v13, %v3001_v0  ;;  %v6556_v62 = vmul.u32.u64.high %v6498_v13, %v3001_v0, %v6555_v51 }
 0x394   : > { %v2854_v40 = vshrl.u32 %v2853_v39, 23  ;;  %vm2838_vm12 = vweird.f32 %v5806_v47  ;;  %vm2841_vm0 = vcmp.lt.s32.totalorder %v6501_v15, 2  ;;  %v2857_v53 = vand.u32 8388607, %v2850_v57 }
 0x395   : > { %v4126_v19 = vadd.s32 4294967294, %v2710_v34  ;;  %vm2842_vm11 = vcmp.eq.s32.totalorder %v6501_v15, 0  ;;  %vm2845_vm15 = vcmp.eq.s32.totalorder %v6501_v15, 2  ;;  %v3012_v38 = vadd.s32 1, %v6533_v58 }
 0x396   : > { %v4132_v54 = vadd.s32 4294967169, %v2854_v40  ;;  %v2698_v61 = vadd.s32 %v6455_v26, %v6465_v25  ;;  %v2735_v52 = vadd.s32 3, %v2731_v6  ;;  %v3009_v24 = vmul.u32 %v6498_v13, %v2993_v32 }
 0x397   : > { %vm4127_vm3 = vcmp.lt.s32.totalorder %v4126_v19, 0  ;;  %vm3011_vm14 = vc.u32 %v6556_v62, %v6532_v21  ;;  %v3165_v46 = vand.u32 2139095040, %v6130_v31  ;;  %v2858_v35 = vor.u32 8388608, %v2857_v53 }
 0x398   : > { %v4523_v22 = vpop.eup %4522  ;;  %v2713_v45 = vsel %vm4127_vm3, 0, %v4126_v19  ;;  %v2860_v2 = vadd.s32 1, %v4132_v54  ;;  %v3013_v25 = vsel %vm3011_vm14, %v3012_v38, %v6533_v58  ;;  %v3162_v11 = vand.u32 2147483647, %v6130_v31 }
 0x399   : > { %v4525_v8 = vpop.eup %4524  ;;  %v2846_v12 = vxor.u32 2147483648, %v4523_v22  ;;  %v2714_v42 = vsub.s32 32, %v2713_v45  ;;  %v2718_v44 = vsub.s32 4294967266, %v2713_v45  ;;  %v2715_v26 = vshll.u32 %v6515_v18, %v2713_v45 }
 0x39a   : > { %v2843_v41 = vxor.u32 2147483648, %v4525_v8  ;;  %vm2861_vm1 = vcmp.gt.s32.totalorder %v2860_v2, 0  ;;  %v3014_v10 = vadd.s32 %v3013_v25, %v3009_v24  ;;  %v3166_v20 = vshrl.u32 %v3165_v46, 23 }
 0x39b   : > { %v2847_v13 = vsel %vm2845_vm15, %v2846_v12, %v4525_v8  ;;  %v2716_v14 = vshrl.u32 %v2698_v61, %v2714_v42  ;;  %v2719_v17 = vadd.s32 127, %v2718_v44  ;;  %v2862_v43 = vsel %vm2861_vm1, %v2860_v2, 0 }
 0x39c   : > { %v2844_v1 = vsel %vm2842_vm11, %v4523_v22, %v2843_v41  ;;  %v3015_v58 = vadd.s32 536870912, %v3014_v10  ;;  %v2864_v59 = vand.u32 31, %v2862_v43  ;;  %v6583_v55 = vand.u32 3, %v2735_v52 }
 0x39d   : > { %v2848_v18 = vsel %vm2841_vm0, %v2844_v1, %v2847_v13  ;;  %v2717_v30 = vor.u32 %v2716_v14, %v2715_v26  ;;  %v2720_v49 = vshll.u32 %v2719_v17, 23  ;;  %vm2956_vm2 = vcmp.lt.s32.totalorder %v5955_v28, 0 }
 0x39e   : > { %v2849_v33 = vsel %vm2838_vm12, nan, %v2848_v18  ;;  %v3016_v0 = vshrl.u32 %v3015_v58, 30  ;;  %v2865_v39 = vsub.s32 32, %v2864_v59  ;;  %v6586_v34 = vshll.u32 %v2858_v35, 8 }
 0x39f   : > { %3911 = vst [vmem:[%s5039_s30 + $0xa8] sm:$0xff] %v2849_v33  ;;  %v2721_v56 = vor.u32 4788187, %v2720_v49  ;;  %v4144_v6 = vadd.s32 4294967169, %v3166_v20  ;;  %v6590_v15 = vand.u32 8388607, %v3162_v11  ;;  %v2724_v51 = vcvt.s32.f32 %v2717_v30 }
 0x3a0   : > { %v6594_v47 = vadd.s32 %v6532_v21, %v6556_v62  ;;  %v3017_v40 = vshll.u32 %v3016_v0, 30  ;;  %v2863_v19 = vshrl.u32 %v2862_v43, 5  ;;  %v2868_v53 = vshrl.u32 %v4635_v3, %v2865_v39 }
 0x3a1   : > { %v2722_v32 = vand.u32 2147483647, %v2721_v56  ;;  %v2871_v38 = vshrl.u32 %v4636_v5, %v2865_v39  ;;  %v2874_v54 = vshrl.u32 %v4637_v7, %v2865_v39  ;;  %v2867_v24 = vshll.u32 %v4634_v63, %v2864_v59 }
 0x3a2   : > { %v6599_v52 = vsub.s32 %v3014_v10, %v3017_v40  ;;  %v2877_v22 = vshrl.u32 %v4638_v9, %v2865_v39  ;;  %vm6605_vm4 = vcmp.le.f32.partialorder %v2954_v36, 0.7853982  ;;  %v3040_v62 = vsub.s32 4, %v3016_v0 }
 0x3a3   : > { %v2725_v61 = vmul.f32 %v2724_v51, %v2722_v32  ;;  %v2870_v45 = vshll.u32 %v4635_v3, %v2864_v59  ;;  %v2873_v2 = vshll.u32 %v4636_v5, %v2864_v59  ;;  %v3172_v46 = vadd.s32 1, %v4144_v6 }
 0x3a4   : > { %v3020_v12 = vsub.s32 0, %v6599_v52  ;;  %v2869_v42 = vor.u32 %v2868_v53, %v2867_v24  ;;  %v2876_v44 = vshll.u32 %v4637_v7, %v2864_v59  ;;  %v2879_v26 = vshll.u32 %v4638_v9, %v2864_v59 }
 0x3a5   : > { %v2726_v8 = vxor.u32 2147483648, %v2725_v61  ;;  %v2872_v35 = vor.u32 %v2871_v38, %v2870_v45  ;;  %v2875_v41 = vor.u32 %v2874_v54, %v2873_v2  ;;  %v2880_v36 = vshrl.u32 %v4639_v16, %v2865_v39 }
 0x3a6   : > { %v4137_v13 = vmin.u32 %v3020_v12, %v6599_v52  ;;  %v2866_v14 = vshrl.u32 %v4634_v63, %v2865_v39  ;;  %v2878_v17 = vor.u32 %v2877_v22, %v2876_v44  ;;  %v3041_v1 = vsel %vm2956_vm2, %v3040_v62, %v3016_v0 }
 0x3a7   : > { %v2727_v25 = vsel %vm2644_vm5, %v2726_v8, %v2725_v61  ;;  %v2881_v43 = vor.u32 %v2880_v36, %v2879_v26  ;;  %vm2882_vm8 = vcmp.lt.s32.totalorder %v2863_v19, 1  ;;  %vm2883_vm6 = vcmp.lt.s32.totalorder %v2863_v19, 2 }
 0x3a8   : > { %v2730_v10 = vsel %vm6541_vm7, %v5853_v50, %v2727_v25  ;;  %v3022_v20 = vclz %v4137_v13  ;;  %vm2885_vm9 = vcmp.lt.s32.totalorder %v2863_v19, 4  ;;  %vm2884_vm5 = vcmp.lt.s32.totalorder %v2863_v19, 3 }
 0x3a9   : > { %4526 = vcosq.f32 %v2730_v10  ;;  %v2887_v18 = vsel %vm2885_vm9, %v2875_v41, 2102212464  ;;  %v2890_v30 = vsel %vm2882_vm8, %v2869_v42, %v2872_v35  ;;  %v2886_v58 = vsel %vm2882_vm8, %v2866_v14, %v2869_v42 }
 0x3aa   : > { %4528 = vsinq.f32 %v2730_v10  ;;  %v4138_v49 = vadd.s32 4294967294, %v3022_v20  ;;  %v2891_v33 = vsel %vm2885_vm9, %v2878_v17, 920167782  ;;  %v2894_v59 = vsel %vm2882_vm8, %v2872_v35, %v2875_v41  ;;  %v6655_v20 = vpop.f32.mrb[14].mxu1 }
 0x3ab   : > { %v2888_v56 = vsel %vm2884_vm5, %v2872_v35, %v2887_v18  ;;  %v2892_v29 = vsel %vm2884_vm5, %v2875_v41, %v2891_v33  ;;  %v2895_v39 = vsel %vm2885_vm9, %v2881_v43, 1326507024  ;;  %vm3173_vm13 = vcmp.gt.s32.totalorder %v3172_v46, 0 }
 0x3ac   : > { %vm4139_vm10 = vcmp.lt.s32.totalorder %v4138_v49, 0  ;;  %v3043_v0 = vsel %vm6605_vm4, 0, %v3041_v1  ;;  %v2893_v6 = vsel %vm2883_vm6, %v2890_v30, %v2892_v29  ;;  %v2896_v32 = vsel %vm2884_vm5, %v2878_v17, %v2895_v39 }
 0x3ad   : > { %vm2738_vm7 = vcmp.eq.s32.totalorder %v6583_v55, 0  ;;  %v3025_v51 = vsel %vm4139_vm10, 0, %v4138_v49  ;;  %v2897_v40 = vsel %vm2883_vm6, %v2894_v59, %v2896_v32  ;;  %vm2737_vm12 = vcmp.lt.s32.totalorder %v6583_v55, 2 }
 0x3ae   : > { %v6630_v53 = vmul.u32.u64.low %v6586_v34, %v2893_v6  ;;  %v6631_v38 = vmul.u32.u64.high %v6586_v34, %v2893_v6, %v6630_v53  ;;  %v3026_v54 = vsub.s32 32, %v3025_v51  ;;  %v3030_v61 = vsub.s32 4294967266, %v3025_v51 }
 0x3af   : > { %v2889_v24 = vsel %vm2883_vm6, %v2886_v58, %v2888_v56  ;;  %v3174_v22 = vsel %vm3173_vm13, %v3172_v46, 0  ;;  %vm2734_vm0 = vweird.f32 %v5853_v50  ;;  %vm2741_vm11 = vcmp.eq.s32.totalorder %v6583_v55, 2 }
 0x3b0   : > { %v6639_v62 = vmul.u32.u64.low %v6586_v34, %v2897_v40  ;;  %v6640_v45 = vmul.u32.u64.high %v6586_v34, %v2897_v40, %v6639_v62  ;;  %v3176_v2 = vand.u32 31, %v3174_v22  ;;  %v3027_v8 = vshll.u32 %v6599_v52, %v3025_v51 }
 0x3b1   : > { %v3028_v12 = vshrl.u32 %v6594_v47, %v3026_v54  ;;  %v3031_v42 = vadd.s32 127, %v3030_v61  ;;  %v3170_v44 = vor.u32 8388608, %v6590_v15  ;;  %v3047_v35 = vadd.s32 3, %v3043_v0 }
 0x3b2   : > { %v2905_v19 = vmul.u32 %v6586_v34, %v2889_v24  ;;  %v2908_v46 = vadd.s32 1, %v6631_v38  ;;  %v3177_v41 = vsub.s32 32, %v3176_v2  ;;  %v6647_v13 = vshrl.u32 %v3174_v22, 5 }
 0x3b3   : > { %v4527_v26 = vpop.eup %4526  ;;  %v3029_v36 = vor.u32 %v3028_v12, %v3027_v8  ;;  %v3032_v25 = vshll.u32 %v3031_v42, 23  ;;  %v3179_v14 = vshll.u32 %v4634_v63, %v3176_v2  ;;  %vm2907_vm15 = vc.u32 %v6640_v45, %v6630_v53 }
 0x3b4   : > { %v4529_v17 = vpop.eup %4528  ;;  %v2742_v52 = vxor.u32 2147483648, %v4527_v26  ;;  %v3182_v15 = vshll.u32 %v4635_v3, %v3176_v2  ;;  %v3188_v47 = vshll.u32 %v4637_v7, %v3176_v2  ;;  %v2909_v43 = vsel %vm2907_vm15, %v2908_v46, %v6631_v38 }
 0x3b5   : > { %v2739_v34 = vxor.u32 2147483648, %v4529_v17  ;;  %v3033_v10 = vor.u32 4788187, %v3032_v25  ;;  %v3036_v1 = vcvt.s32.f32 %v3029_v36  ;;  %v2910_v30 = vadd.s32 %v2909_v43, %v2905_v19 }
 0x3b6   : > { %v2743_v18 = vsel %vm2741_vm11, %v2742_v52, %v4529_v17  ;;  %v3180_v49 = vshrl.u32 %v4635_v3, %v3177_v41  ;;  %v3183_v58 = vshrl.u32 %v4636_v5, %v3177_v41  ;;  %vm2852_vm3 = vcmp.lt.s32.totalorder %v6025_v37, 0 }
 0x3b7   : > { %v2740_v33 = vsel %vm2738_vm7, %v4527_v26, %v2739_v34  ;;  %v3034_v59 = vand.u32 2147483647, %v3033_v10  ;;  %v3186_v56 = vshrl.u32 %v4637_v7, %v3177_v41  ;;  %v3189_v29 = vshrl.u32 %v4638_v9, %v3177_v41 }
 0x3b8   : > { %v2744_v39 = vsel %vm2737_vm12, %v2740_v33, %v2743_v18  ;;  %v2911_v0 = vadd.s32 536870912, %v2910_v30  ;;  %v3181_v6 = vor.u32 %v3180_v49, %v3179_v14  ;;  %v3185_v32 = vshll.u32 %v4636_v5, %v3176_v2 }
 0x3b9   : > { %v2745_v51 = vsel %vm2734_vm0, nan, %v2744_v39  ;;  %v3037_v40 = vmul.f32 %v3036_v1, %v3034_v59  ;;  %v3184_v38 = vor.u32 %v3183_v58, %v3182_v15  ;;  %v3190_v54 = vor.u32 %v3189_v29, %v3188_v47  ;;  %v6725_v29 = vpop.f32.mrb[15].mxu1 }
 0x3ba   : > { %3910 = vst [vmem:[%s5039_s30 + $0xa0] sm:$0xff] %v2745_v51  ;;  %v2912_v61 = vshrl.u32 %v2911_v0, 30  ;;  %v3192_v24 = vshrl.u32 %v4639_v16, %v3177_v41  ;;  %v6673_v22 = vshll.u32 %v3170_v44, 8  ;;  %v3058_v62 = vand.u32 2147483647, %v6200_v23 }
 0x3bb   : > { %v3038_v55 = vxor.u32 2147483648, %v3037_v40  ;;  %v6676_v8 = vand.u32 3, %v3047_v35  ;;  %v3187_v12 = vor.u32 %v3186_v56, %v3185_v32  ;;  %v3191_v42 = vshll.u32 %v4638_v9, %v3176_v2 }
 0x3bc   : > { %v2913_v19 = vshll.u32 %v2912_v61, 30  ;;  %v2936_v50 = vsub.s32 4, %v2912_v61  ;;  %vm3194_vm14 = vcmp.lt.s32.totalorder %v6647_v13, 1  ;;  %vm3197_vm1 = vcmp.lt.s32.totalorder %v6647_v13, 4 }
 0x3bd   : > { %v3039_v46 = vsel %vm2956_vm2, %v3038_v55, %v3037_v40  ;;  %v3193_v26 = vor.u32 %v3192_v24, %v3191_v42  ;;  %v3202_v44 = vsel %vm3194_vm14, %v3181_v6, %v3184_v38  ;;  %v3203_v35 = vsel %vm3197_vm1, %v3190_v54, 920167782 }
 0x3be   : > { %v3042_v2 = vsel %vm6605_vm4, %v5955_v28, %v3039_v46  ;;  %v6690_v36 = vsub.s32 %v2910_v30, %v2913_v19  ;;  %v3178_v25 = vshrl.u32 %v4634_v63, %v3177_v41  ;;  %vm3196_vm8 = vcmp.lt.s32.totalorder %v6647_v13, 3 }
 0x3bf   : > { %4530 = vcosq.f32 %v3042_v2  ;;  %vm3195_vm2 = vcmp.lt.s32.totalorder %v6647_v13, 2  ;;  %v3199_v14 = vsel %vm3197_vm1, %v3187_v12, 2102212464  ;;  %v3204_v17 = vsel %vm3196_vm8, %v3187_v12, %v3203_v35 }
 0x3c0   : > { %4532 = vsinq.f32 %v3042_v2  ;;  %v2916_v52 = vsub.s32 0, %v6690_v36  ;;  %v2937_v21 = vsel %vm2852_vm3, %v2936_v50, %v2912_v61  ;;  %v3205_v15 = vsel %vm3195_vm2, %v3202_v44, %v3204_v17 }
 0x3c1   : > { %v3206_v41 = vsel %vm3194_vm14, %v3184_v38, %v3187_v12  ;;  %v3207_v47 = vsel %vm3197_vm1, %v3193_v26, 1326507024  ;;  %v6707_v34 = vmul.u32.u64.low %v6673_v22, %v3205_v15  ;;  %v6708_v10 = vmul.u32.u64.high %v6673_v22, %v3205_v15, %v6707_v34 }
 0x3c2   : > { %v4133_v1 = vmin.u32 %v2916_v52, %v6690_v36  ;;  %v3198_v43 = vsel %vm3194_vm14, %v3178_v25, %v3181_v6  ;;  %v3200_v18 = vsel %vm3196_vm8, %v3184_v38, %v3199_v14  ;;  %v3208_v30 = vsel %vm3196_vm8, %v3190_v54, %v3207_v47 }
 0x3c3   : > { %vm6716_vm4 = vcmp.le.f32.partialorder %v2850_v57, 0.7853982  ;;  %v3209_v58 = vsel %vm3195_vm2, %v3206_v41, %v3208_v30  ;;  %v3061_v33 = vand.u32 2139095040, %v6200_v23  ;;  %v3201_v39 = vsel %vm3195_vm2, %v3198_v43, %v3200_v18 }
 0x3c4   : > { %v2918_v59 = vclz %v4133_v1  ;;  %v2939_v56 = vsel %vm6716_vm4, 0, %v2937_v21  ;;  %v6730_v0 = vmul.u32.u64.low %v6673_v22, %v3209_v58  ;;  %v6731_v57 = vmul.u32.u64.high %v6673_v22, %v3209_v58, %v6730_v0 }
 0x3c5   : > { %v3062_v6 = vshrl.u32 %v3061_v33, 23  ;;  %vm3046_vm6 = vweird.f32 %v5955_v28  ;;  %vm3049_vm9 = vcmp.lt.s32.totalorder %v6676_v8, 2  ;;  %v3065_v51 = vand.u32 8388607, %v3058_v62 }
 0x3c6   : > { %v4134_v32 = vadd.s32 4294967294, %v2918_v59  ;;  %vm3050_vm5 = vcmp.eq.s32.totalorder %v6676_v8, 0  ;;  %vm3053_vm13 = vcmp.eq.s32.totalorder %v6676_v8, 2  ;;  %v3220_v13 = vadd.s32 1, %v6708_v10 }
 0x3c7   : > { %v4140_v40 = vadd.s32 4294967169, %v3062_v6  ;;  %v2906_v38 = vadd.s32 %v6630_v53, %v6640_v45  ;;  %v2943_v54 = vadd.s32 3, %v2939_v56  ;;  %v3217_v61 = vmul.u32 %v6673_v22, %v3201_v39 }
 0x3c8   : > { %vm4135_vm10 = vcmp.lt.s32.totalorder %v4134_v32, 0  ;;  %vm3219_vm7 = vc.u32 %v6731_v57, %v6707_v34  ;;  %v3373_v42 = vand.u32 2139095040, %v6305_v60  ;;  %v3066_v44 = vor.u32 8388608, %v3065_v51 }
 0x3c9   : > { %v4531_v24 = vpop.eup %4530  ;;  %v2921_v55 = vsel %vm4135_vm10, 0, %v4134_v32  ;;  %v3068_v12 = vadd.s32 1, %v4140_v40  ;;  %v3221_v45 = vsel %vm3219_vm7, %v3220_v13, %v6708_v10  ;;  %v3370_v21 = vand.u32 2147483647, %v6305_v60 }
 0x3ca   : > { %v4533_v19 = vpop.eup %4532  ;;  %v3054_v50 = vxor.u32 2147483648, %v4531_v24  ;;  %v2922_v46 = vsub.s32 32, %v2921_v55  ;;  %v2926_v26 = vsub.s32 4294967266, %v2921_v55  ;;  %v2923_v53 = vshll.u32 %v6690_v36, %v2921_v55 }
 0x3cb   : > { %v3051_v35 = vxor.u32 2147483648, %v4533_v19  ;;  %vm3069_vm12 = vcmp.gt.s32.totalorder %v3068_v12, 0  ;;  %v3222_v14 = vadd.s32 %v3221_v45, %v3217_v61  ;;  %v3374_v15 = vshrl.u32 %v3373_v42, 23 }
 0x3cc   : > { %v3055_v22 = vsel %vm3053_vm13, %v3054_v50, %v4533_v19  ;;  %v2924_v2 = vshrl.u32 %v2906_v38, %v2922_v46  ;;  %v2927_v25 = vadd.s32 127, %v2926_v26  ;;  %v3070_v52 = vsel %vm3069_vm12, %v3068_v12, 0 }
 0x3cd   : > { %v3052_v17 = vsel %vm3050_vm5, %v4531_v24, %v3051_v35  ;;  %v3223_v10 = vadd.s32 536870912, %v3222_v14  ;;  %v3072_v43 = vand.u32 31, %v3070_v52  ;;  %v6758_v30 = vand.u32 3, %v2943_v54 }
 0x3ce   : > { %v3056_v36 = vsel %vm3049_vm9, %v3052_v17, %v3055_v22  ;;  %v2925_v41 = vor.u32 %v2924_v2, %v2923_v53  ;;  %v2928_v47 = vshll.u32 %v2927_v25, 23  ;;  %vm3164_vm0 = vcmp.lt.s32.totalorder %v6130_v31, 0 }
 0x3cf   : > { %v3057_v1 = vsel %vm3046_vm6, nan, %v3056_v36  ;;  %v3224_v58 = vshrl.u32 %v3223_v10, 30  ;;  %v3073_v33 = vsub.s32 32, %v3072_v43  ;;  %v6761_v59 = vshll.u32 %v3066_v44, 8 }
 0x3d0   : > { %3913 = vst [vmem:[%s5039_s30 + $0xb8] sm:$0xff] %v3057_v1  ;;  %v2929_v18 = vor.u32 4788187, %v2928_v47  ;;  %v4152_v56 = vadd.s32 4294967169, %v3374_v15  ;;  %v6765_v8 = vand.u32 8388607, %v3370_v21  ;;  %v2932_v0 = vcvt.s32.f32 %v2925_v41 }
 0x3d1   : > { %v6769_v28 = vadd.s32 %v6707_v34, %v6731_v57  ;;  %v3225_v6 = vshll.u32 %v3224_v58, 30  ;;  %v3071_v32 = vshrl.u32 %v3070_v52, 5  ;;  %v3076_v51 = vshrl.u32 %v4635_v3, %v3073_v33 }
 0x3d2   : > { %v2930_v39 = vand.u32 2147483647, %v2929_v18  ;;  %v3079_v13 = vshrl.u32 %v4636_v5, %v3073_v33  ;;  %v3082_v40 = vshrl.u32 %v4637_v7, %v3073_v33  ;;  %v3075_v61 = vshll.u32 %v4634_v63, %v3072_v43 }
 0x3d3   : > { %v6774_v54 = vsub.s32 %v3222_v14, %v3225_v6  ;;  %v3085_v24 = vshrl.u32 %v4638_v9, %v3073_v33  ;;  %vm6780_vm11 = vcmp.le.f32.partialorder %v3162_v11, 0.7853982  ;;  %v3248_v57 = vsub.s32 4, %v3224_v58 }
 0x3d4   : > { %v2933_v38 = vmul.f32 %v2932_v0, %v2930_v39  ;;  %v3078_v55 = vshll.u32 %v4635_v3, %v3072_v43  ;;  %v3081_v12 = vshll.u32 %v4636_v5, %v3072_v43  ;;  %v3380_v42 = vadd.s32 1, %v4152_v56 }
 0x3d5   : > { %v3228_v50 = vsub.s32 0, %v6774_v54  ;;  %v3077_v46 = vor.u32 %v3076_v51, %v3075_v61  ;;  %v3084_v26 = vshll.u32 %v4637_v7, %v3072_v43  ;;  %v3087_v53 = vshll.u32 %v4638_v9, %v3072_v43 }
 0x3d6   : > { %v2934_v19 = vxor.u32 2147483648, %v2933_v38  ;;  %v3080_v44 = vor.u32 %v3079_v13, %v3078_v55  ;;  %v3083_v35 = vor.u32 %v3082_v40, %v3081_v12  ;;  %v3088_v11 = vshrl.u32 %v4639_v16, %v3073_v33 }
 0x3d7   : > { %v4145_v22 = vmin.u32 %v3228_v50, %v6774_v54  ;;  %v3074_v2 = vshrl.u32 %v4634_v63, %v3073_v33  ;;  %v3086_v25 = vor.u32 %v3085_v24, %v3084_v26  ;;  %v3249_v17 = vsel %vm3164_vm0, %v3248_v57, %v3224_v58 }
 0x3d8   : > { %v2935_v45 = vsel %vm2852_vm3, %v2934_v19, %v2933_v38  ;;  %v3089_v52 = vor.u32 %v3088_v11, %v3087_v53  ;;  %vm3090_vm15 = vcmp.lt.s32.totalorder %v3071_v32, 1  ;;  %vm3091_vm14 = vcmp.lt.s32.totalorder %v3071_v32, 2 }
 0x3d9   : > { %v2938_v14 = vsel %vm6716_vm4, %v6025_v37, %v2935_v45  ;;  %v3230_v15 = vclz %v4145_v22  ;;  %vm3093_vm1 = vcmp.lt.s32.totalorder %v3071_v32, 4  ;;  %vm3092_vm3 = vcmp.lt.s32.totalorder %v3071_v32, 3 }
 0x3da   : > { %4534 = vcosq.f32 %v2938_v14  ;;  %v3095_v36 = vsel %vm3093_vm1, %v3083_v35, 2102212464  ;;  %v3098_v41 = vsel %vm3090_vm15, %v3077_v46, %v3080_v44  ;;  %v3094_v10 = vsel %vm3090_vm15, %v3074_v2, %v3077_v46 }
 0x3db   : > { %4536 = vsinq.f32 %v2938_v14  ;;  %v4146_v47 = vadd.s32 4294967294, %v3230_v15  ;;  %v3099_v1 = vsel %vm3093_vm1, %v3086_v25, 920167782  ;;  %v3102_v43 = vsel %vm3090_vm15, %v3080_v44, %v3083_v35 }
 0x3dc   : > { %v3096_v18 = vsel %vm3092_vm3, %v3080_v44, %v3095_v36  ;;  %v3100_v49 = vsel %vm3092_vm3, %v3083_v35, %v3099_v1  ;;  %v3103_v33 = vsel %vm3093_vm1, %v3089_v52, 1326507024  ;;  %vm3381_vm8 = vcmp.gt.s32.totalorder %v3380_v42, 0 }
 0x3dd   : > { %vm4147_vm2 = vcmp.lt.s32.totalorder %v4146_v47, 0  ;;  %v3251_v58 = vsel %vm6780_vm11, 0, %v3249_v17  ;;  %v3101_v56 = vsel %vm3091_vm14, %v3098_v41, %v3100_v49  ;;  %v3104_v39 = vsel %vm3092_vm3, %v3086_v25, %v3103_v33 }
 0x3de   : > { %vm2946_vm4 = vcmp.eq.s32.totalorder %v6758_v30, 0  ;;  %v3233_v0 = vsel %vm4147_vm2, 0, %v4146_v47  ;;  %v3105_v6 = vsel %vm3091_vm14, %v3102_v43, %v3104_v39  ;;  %vm2945_vm6 = vcmp.lt.s32.totalorder %v6758_v30, 2 }
 0x3df   : > { %v6805_v51 = vmul.u32.u64.low %v6761_v59, %v3101_v56  ;;  %v6806_v13 = vmul.u32.u64.high %v6761_v59, %v3101_v56, %v6805_v51  ;;  %v3234_v40 = vsub.s32 32, %v3233_v0  ;;  %v3238_v38 = vsub.s32 4294967266, %v3233_v0 }
 0x3e0   : > { %v3097_v61 = vsel %vm3091_vm14, %v3094_v10, %v3096_v18  ;;  %v3382_v24 = vsel %vm3381_vm8, %v3380_v42, 0  ;;  %vm2942_vm9 = vweird.f32 %v6025_v37  ;;  %vm2949_vm5 = vcmp.eq.s32.totalorder %v6758_v30, 2 }
 0x3e1   : > { %v6814_v57 = vmul.u32.u64.low %v6761_v59, %v3105_v6  ;;  %v6815_v55 = vmul.u32.u64.high %v6761_v59, %v3105_v6, %v6814_v57  ;;  %v3384_v12 = vand.u32 31, %v3382_v24  ;;  %v3235_v19 = vshll.u32 %v6774_v54, %v3233_v0 }
 0x3e2   : > { %v3236_v50 = vshrl.u32 %v6769_v28, %v3234_v40  ;;  %v3239_v46 = vadd.s32 127, %v3238_v38  ;;  %v3378_v26 = vor.u32 8388608, %v6765_v8  ;;  %v3255_v44 = vadd.s32 3, %v3251_v58 }
 0x3e3   : > { %v3113_v32 = vmul.u32 %v6761_v59, %v3097_v61  ;;  %v3116_v42 = vadd.s32 1, %v6806_v13  ;;  %v3385_v35 = vsub.s32 32, %v3384_v12  ;;  %v6822_v22 = vshrl.u32 %v3382_v24, 5 }
 0x3e4   : > { %v4535_v53 = vpop.eup %4534  ;;  %v3237_v11 = vor.u32 %v3236_v50, %v3235_v19  ;;  %v3240_v45 = vshll.u32 %v3239_v46, 23  ;;  %v3387_v2 = vshll.u32 %v4634_v63, %v3384_v12  ;;  %vm3115_vm13 = vc.u32 %v6815_v55, %v6805_v51 }
 0x3e5   : > { %v4537_v25 = vpop.eup %4536  ;;  %v2950_v54 = vxor.u32 2147483648, %v4535_v53  ;;  %v3390_v8 = vshll.u32 %v4635_v3, %v3384_v12  ;;  %v3396_v28 = vshll.u32 %v4637_v7, %v3384_v12  ;;  %v3117_v52 = vsel %vm3115_vm13, %v3116_v42, %v6806_v13 }
 0x3e6   : > { %v2947_v59 = vxor.u32 2147483648, %v4537_v25  ;;  %v3241_v14 = vor.u32 4788187, %v3240_v45  ;;  %v3244_v17 = vcvt.s32.f32 %v3237_v11  ;;  %v3118_v36 = vadd.s32 %v3117_v52, %v3113_v32 }
 0x3e7   : > { %v2951_v15 = vsel %vm2949_vm5, %v2950_v54, %v4537_v25  ;;  %v3388_v41 = vshrl.u32 %v4635_v3, %v3385_v35  ;;  %v3391_v47 = vshrl.u32 %v4636_v5, %v3385_v35  ;;  %vm3060_vm10 = vcmp.lt.s32.totalorder %v6200_v23, 0 }
 0x3e8   : > { %v2948_v10 = vsel %vm2946_vm4, %v4535_v53, %v2947_v59  ;;  %v3242_v1 = vand.u32 2147483647, %v3241_v14  ;;  %v3394_v43 = vshrl.u32 %v4637_v7, %v3385_v35  ;;  %v3397_v18 = vshrl.u32 %v4638_v9, %v3385_v35 }
 0x3e9   : > { %v2952_v49 = vsel %vm2945_vm6, %v2948_v10, %v2951_v15  ;;  %v3119_v33 = vadd.s32 536870912, %v3118_v36  ;;  %v3389_v58 = vor.u32 %v3388_v41, %v3387_v2  ;;  %v3393_v56 = vshll.u32 %v4636_v5, %v3384_v12 }
 0x3ea   : > { %v2953_v39 = vsel %vm2942_vm9, nan, %v2952_v49  ;;  %v3245_v0 = vmul.f32 %v3244_v17, %v3242_v1  ;;  %v3392_v6 = vor.u32 %v3391_v47, %v3390_v8  ;;  %v3398_v13 = vor.u32 %v3397_v18, %v3396_v28 }
 0x3eb   : > { %3912 = vst [vmem:[%s5039_s30 + $0xb0] sm:$0xff] %v2953_v39  ;;  %v3120_v40 = vshrl.u32 %v3119_v33, 30  ;;  %v3400_v38 = vshrl.u32 %v4639_v16, %v3385_v35  ;;  %v6846_v61 = vshll.u32 %v3378_v26, 8  ;;  %v3266_v24 = vand.u32 2147483647, %v6375_v48 }
 0x3ec   : > { %v3246_v30 = vxor.u32 2147483648, %v3245_v0  ;;  %v6849_v57 = vand.u32 3, %v3255_v44  ;;  %v3395_v19 = vor.u32 %v3394_v43, %v3393_v56  ;;  %v3399_v50 = vshll.u32 %v4638_v9, %v3384_v12 }
 0x3ed   : > { %v3121_v46 = vshll.u32 %v3120_v40, 30  ;;  %v3144_v37 = vsub.s32 4, %v3120_v40  ;;  %vm3402_vm7 = vcmp.lt.s32.totalorder %v6822_v22, 1  ;;  %vm3405_vm12 = vcmp.lt.s32.totalorder %v6822_v22, 4 }
 0x3ee   : > { %v3247_v32 = vsel %vm3164_vm0, %v3246_v30, %v3245_v0  ;;  %v3401_v42 = vor.u32 %v3400_v38, %v3399_v50  ;;  %v3410_v26 = vsel %vm3402_vm7, %v3389_v58, %v3392_v6  ;;  %v3411_v44 = vsel %vm3405_vm12, %v3398_v13, 920167782 }
 0x3ef   : > { %v3250_v12 = vsel %vm6780_vm11, %v6130_v31, %v3247_v32  ;;  %v6863_v53 = vsub.s32 %v3118_v36, %v3121_v46  ;;  %v3386_v11 = vshrl.u32 %v4634_v63, %v3385_v35  ;;  %vm3404_vm15 = vcmp.lt.s32.totalorder %v6822_v22, 3 }
 0x3f0   : > { %4538 = vcosq.f32 %v3250_v12  ;;  %vm3403_vm0 = vcmp.lt.s32.totalorder %v6822_v22, 2  ;;  %v3407_v45 = vsel %vm3405_vm12, %v3395_v19, 2102212464  ;;  %v3412_v2 = vsel %vm3404_vm15, %v3395_v19, %v3411_v44 }
 0x3f1   : > { %4540 = vsinq.f32 %v3250_v12  ;;  %v3124_v25 = vsub.s32 0, %v6863_v53  ;;  %v3145_v34 = vsel %vm3060_vm10, %v3144_v37, %v3120_v40  ;;  %v3413_v54 = vsel %vm3403_vm0, %v3410_v26, %v3412_v2 }
 0x3f2   : > { %v3414_v35 = vsel %vm3402_vm7, %v3392_v6, %v3395_v19  ;;  %v3415_v8 = vsel %vm3405_vm12, %v3401_v42, 1326507024  ;;  %v6880_v28 = vmul.u32.u64.low %v6846_v61, %v3413_v54  ;;  %v6881_v59 = vmul.u32.u64.high %v6846_v61, %v3413_v54, %v6880_v28 }
 0x3f3   : > { %v4141_v14 = vmin.u32 %v3124_v25, %v6863_v53  ;;  %v3406_v17 = vsel %vm3402_vm7, %v3386_v11, %v3389_v58  ;;  %v3408_v52 = vsel %vm3404_vm15, %v3392_v6, %v3407_v45  ;;  %v3416_v15 = vsel %vm3404_vm15, %v3398_v13, %v3415_v8 }
 0x3f4   : > { %vm6889_vm11 = vcmp.le.f32.partialorder %v3058_v62, 0.7853982  ;;  %v3417_v41 = vsel %vm3403_vm0, %v3414_v35, %v3416_v15  ;;  %v3269_v47 = vand.u32 2139095040, %v6375_v48  ;;  %v3409_v43 = vsel %vm3403_vm0, %v3406_v17, %v3408_v52 }
 0x3f5   : > { %v3126_v10 = vclz %v4141_v14  ;;  %v3147_v1 = vsel %vm6889_vm11, 0, %v3145_v34  ;;  %v6901_v18 = vmul.u32.u64.low %v6846_v61, %v3417_v41  ;;  %v6902_v49 = vmul.u32.u64.high %v6846_v61, %v3417_v41, %v6901_v18 }
 0x3f6   : > { %v3270_v62 = vshrl.u32 %v3269_v47, 23  ;;  %vm3254_vm14 = vweird.f32 %v6130_v31  ;;  %vm3257_vm1 = vcmp.lt.s32.totalorder %v6849_v57, 2  ;;  %v3273_v58 = vand.u32 8388607, %v3266_v24 }
 0x3f7   : > { %v4142_v33 = vadd.s32 4294967294, %v3126_v10  ;;  %vm3258_vm3 = vcmp.eq.s32.totalorder %v6849_v57, 0  ;;  %vm3261_vm8 = vcmp.eq.s32.totalorder %v6849_v57, 2  ;;  %v3428_v22 = vadd.s32 1, %v6881_v59 }
 0x3f8   : > { %v4148_v56 = vadd.s32 4294967169, %v3270_v62  ;;  %v3114_v39 = vadd.s32 %v6805_v51, %v6815_v55  ;;  %v3151_v0 = vadd.s32 3, %v3147_v1  ;;  %v3425_v6 = vmul.u32 %v6846_v61, %v3409_v43 }
 0x3f9   : > { %vm4143_vm2 = vcmp.lt.s32.totalorder %v4142_v33, 0  ;;  %vm3427_vm4 = vc.u32 %v6902_v49, %v6880_v28  ;;  %v3581_v30 = vand.u32 2139095040, %v6480_v27  ;;  %v3274_v32 = vor.u32 8388608, %v3273_v58 }
 0x3fa   : > { %v4539_v13 = vpop.eup %4538  ;;  %v3129_v40 = vsel %vm4143_vm2, 0, %v4142_v33  ;;  %v3276_v38 = vadd.s32 1, %v4148_v56  ;;  %v3429_v55 = vsel %vm3427_vm4, %v3428_v22, %v6881_v59  ;;  %v3578_v2 = vand.u32 2147483647, %v6480_v27 }
 0x3fb   : > { %v4541_v19 = vpop.eup %4540  ;;  %v3262_v50 = vxor.u32 2147483648, %v4539_v13  ;;  %v3130_v46 = vsub.s32 32, %v3129_v40  ;;  %v3134_v37 = vsub.s32 4294967266, %v3129_v40  ;;  %v3131_v51 = vshll.u32 %v6863_v53, %v3129_v40 }
 0x3fc   : > { %v3259_v42 = vxor.u32 2147483648, %v4541_v19  ;;  %vm3277_vm6 = vcmp.gt.s32.totalorder %v3276_v38, 0  ;;  %v3430_v12 = vadd.s32 %v3429_v55, %v3425_v6  ;;  %v3582_v25 = vshrl.u32 %v3581_v30, 23 }
 0x3fd   : > { %v3263_v61 = vsel %vm3261_vm8, %v3262_v50, %v4541_v19  ;;  %v3132_v26 = vshrl.u32 %v3114_v39, %v3130_v46  ;;  %v3135_v44 = vadd.s32 127, %v3134_v37  ;;  %v3278_v45 = vsel %vm3277_vm6, %v3276_v38, 0 }
 0x3fe   : > { %v3260_v11 = vsel %vm3258_vm3, %v4539_v13, %v3259_v42  ;;  %v3431_v35 = vadd.s32 536870912, %v3430_v12  ;;  %v3280_v59 = vand.u32 31, %v3278_v45  ;;  %v6929_v17 = vand.u32 3, %v3151_v0 }
 0x3ff   : > { %v3264_v53 = vsel %vm3257_vm1, %v3260_v11, %v3263_v61  ;;  %v3133_v34 = vor.u32 %v3132_v26, %v3131_v51  ;;  %v3136_v54 = vshll.u32 %v3135_v44, 23  ;;  %vm3372_vm9 = vcmp.lt.s32.totalorder %v6305_v60, 0 }
 0x400   : > { %v3265_v8 = vsel %vm3254_vm14, nan, %v3264_v53  ;;  %v3432_v52 = vshrl.u32 %v3431_v35, 30  ;;  %v3281_v15 = vsub.s32 32, %v3280_v59  ;;  %v6932_v41 = vshll.u32 %v3274_v32, 8 }
 0x401   : > { %3915 = vst [vmem:[%s5039_s30 + $0xc8] sm:$0xff] %v3265_v8  ;;  %v3137_v14 = vor.u32 4788187, %v3136_v54  ;;  %v4160_v47 = vadd.s32 4294967169, %v3582_v25  ;;  %v6936_v57 = vand.u32 8388607, %v3578_v2  ;;  %v3140_v1 = vcvt.s32.f32 %v3133_v34 }
 0x402   : > { %v6940_v31 = vadd.s32 %v6880_v28, %v6902_v49  ;;  %v3433_v43 = vshll.u32 %v3432_v52, 30  ;;  %v3279_v18 = vshrl.u32 %v3278_v45, 5  ;;  %v3284_v62 = vshrl.u32 %v4635_v3, %v3281_v15 }
 0x403   : > { %v3138_v10 = vand.u32 2147483647, %v3137_v14  ;;  %v3287_v33 = vshrl.u32 %v4636_v5, %v3281_v15  ;;  %v3290_v58 = vshrl.u32 %v4637_v7, %v3281_v15  ;;  %v3283_v39 = vshll.u32 %v4634_v63, %v3280_v59 }
 0x404   : > { %v6945_v56 = vsub.s32 %v3430_v12, %v3433_v43  ;;  %v3293_v0 = vshrl.u32 %v4638_v9, %v3281_v15  ;;  %vm6951_vm5 = vcmp.le.f32.partialorder %v3370_v21, 0.7853982  ;;  %v3456_v49 = vsub.s32 4, %v3432_v52 }
 0x405   : > { %v3141_v22 = vmul.f32 %v3140_v1, %v3138_v10  ;;  %v3286_v6 = vshll.u32 %v4635_v3, %v3280_v59  ;;  %v3289_v13 = vshll.u32 %v4636_v5, %v3280_v59  ;;  %v3588_v40 = vadd.s32 1, %v4160_v47 }
 0x406   : > { %v3436_v30 = vsub.s32 0, %v6945_v56  ;;  %v3285_v19 = vor.u32 %v3284_v62, %v3283_v39  ;;  %v3292_v50 = vshll.u32 %v4637_v7, %v3280_v59  ;;  %v3295_v32 = vshll.u32 %v4638_v9, %v3280_v59 }
 0x407   : > { %v3142_v38 = vxor.u32 2147483648, %v3141_v22  ;;  %v3288_v46 = vor.u32 %v3287_v33, %v3286_v6  ;;  %v3291_v37 = vor.u32 %v3290_v58, %v3289_v13  ;;  %v3296_v21 = vshrl.u32 %v4639_v16, %v3281_v15 }
 0x408   : > { %v4153_v51 = vmin.u32 %v3436_v30, %v6945_v56  ;;  %v3282_v55 = vshrl.u32 %v4634_v63, %v3281_v15  ;;  %v3294_v61 = vor.u32 %v3293_v0, %v3292_v50  ;;  %v3457_v44 = vsel %vm3372_vm9, %v3456_v49, %v3432_v52 }
 0x409   : > { %v3143_v42 = vsel %vm3060_vm10, %v3142_v38, %v3141_v22  ;;  %v3297_v12 = vor.u32 %v3296_v21, %v3295_v32  ;;  %vm3298_vm13 = vcmp.lt.s32.totalorder %v3279_v18, 1  ;;  %vm3299_vm7 = vcmp.lt.s32.totalorder %v3279_v18, 2 }
 0x40a   : > { %v3146_v26 = vsel %vm6889_vm11, %v6200_v23, %v3143_v42  ;;  %v3438_v11 = vclz %v4153_v51  ;;  %vm3301_vm12 = vcmp.lt.s32.totalorder %v3279_v18, 4  ;;  %vm3300_vm10 = vcmp.lt.s32.totalorder %v3279_v18, 3 }
 0x40b   : > { %4542 = vcosq.f32 %v3146_v26  ;;  %v3303_v45 = vsel %vm3301_vm12, %v3291_v37, 2102212464  ;;  %v3306_v25 = vsel %vm3298_vm13, %v3285_v19, %v3288_v46  ;;  %v3302_v34 = vsel %vm3298_vm13, %v3282_v55, %v3285_v19 }
 0x40c   : > { %4544 = vsinq.f32 %v3146_v26  ;;  %v4154_v53 = vadd.s32 4294967294, %v3438_v11  ;;  %v3307_v54 = vsel %vm3301_vm12, %v3294_v61, 920167782  ;;  %v3310_v35 = vsel %vm3298_vm13, %v3288_v46, %v3291_v37 }
 0x40d   : > { %v3304_v8 = vsel %vm3300_vm10, %v3288_v46, %v3303_v45  ;;  %v3308_v36 = vsel %vm3300_vm10, %v3291_v37, %v3307_v54  ;;  %v3311_v59 = vsel %vm3301_vm12, %v3297_v12, 1326507024  ;;  %vm3589_vm15 = vcmp.gt.s32.totalorder %v3588_v40, 0 }
 0x40e   : > { %vm4155_vm0 = vcmp.lt.s32.totalorder %v4154_v53, 0  ;;  %v3459_v14 = vsel %vm6951_vm5, 0, %v3457_v44  ;;  %v3309_v52 = vsel %vm3299_vm7, %v3306_v25, %v3308_v36  ;;  %v3312_v15 = vsel %vm3300_vm10, %v3294_v61, %v3311_v59 }
 0x40f   : > { %vm3154_vm11 = vcmp.eq.s32.totalorder %v6929_v17, 0  ;;  %v3441_v47 = vsel %vm4155_vm0, 0, %v4154_v53  ;;  %v3313_v10 = vsel %vm3299_vm7, %v3310_v35, %v3312_v15  ;;  %vm3153_vm14 = vcmp.lt.s32.totalorder %v6929_v17, 2 }
 0x410   : > { %v6976_v1 = vmul.u32.u64.low %v6932_v41, %v3309_v52  ;;  %v6977_v43 = vmul.u32.u64.high %v6932_v41, %v3309_v52, %v6976_v1  ;;  %v3442_v62 = vsub.s32 32, %v3441_v47  ;;  %v3446_v33 = vsub.s32 4294967266, %v3441_v47 }
 0x411   : > { %v3305_v58 = vsel %vm3299_vm7, %v3302_v34, %v3304_v8  ;;  %v3590_v22 = vsel %vm3589_vm15, %v3588_v40, 0  ;;  %vm3150_vm1 = vweird.f32 %v6200_v23  ;;  %vm3157_vm3 = vcmp.eq.s32.totalorder %v6929_v17, 2 }
 0x412   : > { %v6985_v39 = vmul.u32.u64.low %v6932_v41, %v3313_v10  ;;  %v6986_v0 = vmul.u32.u64.high %v6932_v41, %v3313_v10, %v6985_v39  ;;  %v3592_v49 = vand.u32 31, %v3590_v22  ;;  %v3443_v6 = vshll.u32 %v6945_v56, %v3441_v47 }
 0x413   : > { %v3444_v13 = vshrl.u32 %v6940_v31, %v3442_v62  ;;  %v3447_v38 = vadd.s32 127, %v3446_v33  ;;  %v3586_v30 = vor.u32 8388608, %v6936_v57  ;;  %v3463_v19 = vadd.s32 3, %v3459_v14 }
 0x414   : > { %v3321_v18 = vmul.u32 %v6932_v41, %v3305_v58  ;;  %v3324_v40 = vadd.s32 1, %v6977_v43  ;;  %v3593_v50 = vsub.s32 32, %v3592_v49  ;;  %v6993_v21 = vshrl.u32 %v3590_v22, 5 }
 0x415   : > { %v4543_v46 = vpop.eup %4542  ;;  %v3445_v37 = vor.u32 %v3444_v13, %v3443_v6  ;;  %v3448_v32 = vshll.u32 %v3447_v38, 23  ;;  %v3595_v42 = vshll.u32 %v4634_v63, %v3592_v49  ;;  %vm3323_vm8 = vc.u32 %v6986_v0, %v6976_v1 }
 0x416   : > { %v4545_v51 = vpop.eup %4544  ;;  %v3158_v56 = vxor.u32 2147483648, %v4543_v46  ;;  %v3598_v57 = vshll.u32 %v4635_v3, %v3592_v49  ;;  %v3604_v31 = vshll.u32 %v4637_v7, %v3592_v49  ;;  %v3325_v26 = vsel %vm3323_vm8, %v3324_v40, %v6977_v43 }
 0x417   : > { %v3155_v41 = vxor.u32 2147483648, %v4545_v51  ;;  %v3449_v55 = vor.u32 4788187, %v3448_v32  ;;  %v3452_v61 = vcvt.s32.f32 %v3445_v37  ;;  %v3326_v12 = vadd.s32 %v3325_v26, %v3321_v18 }
 0x418   : > { %v3159_v44 = vsel %vm3157_vm3, %v3158_v56, %v4545_v51  ;;  %v3596_v11 = vshrl.u32 %v4635_v3, %v3593_v50  ;;  %v3599_v45 = vshrl.u32 %v4636_v5, %v3593_v50  ;;  %v3602_v34 = vshrl.u32 %v4637_v7, %v3593_v50 }
 0x419   : > { %v3156_v25 = vsel %vm3154_vm11, %v4543_v46, %v3155_v41  ;;  %v3450_v53 = vand.u32 2147483647, %v3449_v55  ;;  %v3605_v54 = vshrl.u32 %v4638_v9, %v3593_v50  ;;  %v3327_v8 = vadd.s32 536870912, %v3326_v12 }
 0x41a   : > { %v3160_v35 = vsel %vm3153_vm14, %v3156_v25, %v3159_v44  ;;  %v3597_v36 = vor.u32 %v3596_v11, %v3595_v42  ;;  %v3601_v59 = vshll.u32 %v4636_v5, %v3592_v49  ;;  %v3600_v15 = vor.u32 %v3599_v45, %v3598_v57 }
 0x41b   : > { %v3161_v14 = vsel %vm3150_vm1, nan, %v3160_v35  ;;  %v3453_v52 = vmul.f32 %v3452_v61, %v3450_v53  ;;  %v3606_v47 = vor.u32 %v3605_v54, %v3604_v31  ;;  %v3328_v10 = vshrl.u32 %v3327_v8, 30 }
 0x41c   : > { %3914 = vst [vmem:[%s5039_s30 + $0xc0] sm:$0xff] %v3161_v14  ;;  %v3608_v43 = vshrl.u32 %v4639_v16, %v3593_v50  ;;  %v3603_v33 = vor.u32 %v3602_v34, %v3601_v59  ;;  %v3607_v58 = vshll.u32 %v4638_v9, %v3592_v49  ;;  %v7017_v17 = vshll.u32 %v3586_v30, 8 }
 0x41d   : > { %v3454_v62 = vxor.u32 2147483648, %v3453_v52  ;;  %v7019_v22 = vand.u32 3, %v3463_v19  ;;  %v3329_v39 = vshll.u32 %v3328_v10, 30  ;;  %vm3610_vm2 = vcmp.lt.s32.totalorder %v6993_v21, 1 }
 0x41e   : > { %vm3613_vm4 = vcmp.lt.s32.totalorder %v6993_v21, 4  ;;  %v3609_v6 = vor.u32 %v3608_v43, %v3607_v58  ;;  %v3618_v13 = vsel %vm3610_vm2, %v3597_v36, %v3600_v15  ;;  %v3594_v19 = vshrl.u32 %v4634_v63, %v3593_v50 }
 0x41f   : > { %v3455_v23 = vsel %vm3372_vm9, %v3454_v62, %v3453_v52  ;;  %v3619_v38 = vsel %vm3613_vm4, %v3606_v47, 920167782  ;;  %v7032_v30 = vsub.s32 %v3326_v12, %v3329_v39  ;;  %vm3612_vm6 = vcmp.lt.s32.totalorder %v6993_v21, 3 }
 0x420   : > { %v3458_v49 = vsel %vm6951_vm5, %v6305_v60, %v3455_v23  ;;  %vm3611_vm9 = vcmp.lt.s32.totalorder %v6993_v21, 2  ;;  %v3615_v18 = vsel %vm3613_vm4, %v3603_v33, 2102212464  ;;  %v3620_v40 = vsel %vm3612_vm6, %v3603_v33, %v3619_v38 }
 0x421   : > { %4546 = vcosq.f32 %v3458_v49  ;;  %v3332_v46 = vsub.s32 0, %v7032_v30  ;;  %v3352_v37 = vsub.s32 4, %v3328_v10  ;;  %v3621_v28 = vsel %vm3611_vm9, %v3618_v13, %v3620_v40 }
 0x422   : > { %4548 = vsinq.f32 %v3458_v49  ;;  %v3622_v32 = vsel %vm3610_vm2, %v3600_v15, %v3603_v33  ;;  %v3623_v50 = vsel %vm3613_vm4, %v3609_v6, 1326507024  ;;  %v3614_v57 = vsel %vm3610_vm2, %v3594_v19, %v3597_v36 }
 0x423   : > { %v7047_v42 = vmul.u32.u64.low %v7017_v17, %v3621_v28  ;;  %v7048_v51 = vmul.u32.u64.high %v7017_v17, %v3621_v28, %v7047_v42  ;;  %v4149_v56 = vmin.u32 %v3332_v46, %v7032_v30  ;;  %v3616_v31 = vsel %vm3612_vm6, %v3600_v15, %v3615_v18 }
 0x424   : > { %v3624_v41 = vsel %vm3612_vm6, %v3606_v47, %v3623_v50  ;;  %vm3268_vm5 = vcmp.lt.s32.totalorder %v6375_v48, 0  ;;  %v3477_v61 = vand.u32 2139095040, %v6550_v4  ;;  %v3474_v12 = vand.u32 2147483647, %v6550_v4 }
 0x425   : > { %v3625_v55 = vsel %vm3611_vm9, %v3622_v32, %v3624_v41  ;;  %v3334_v26 = vclz %v4149_v56  ;;  %v3353_v44 = vsel %vm3268_vm5, %v3352_v37, %v3328_v10  ;;  %v3617_v11 = vsel %vm3611_vm9, %v3614_v57, %v3616_v31 }
 0x426   : > { %v7064_v45 = vmul.u32.u64.low %v7017_v17, %v3625_v55  ;;  %v7065_v25 = vmul.u32.u64.high %v7017_v17, %v3625_v55, %v7064_v45  ;;  %v3478_v53 = vshrl.u32 %v3477_v61, 23  ;;  %vm3462_vm13 = vweird.f32 %v6305_v60 }
 0x427   : > { %vm3465_vm7 = vcmp.lt.s32.totalorder %v7019_v22, 2  ;;  %vm7071_vm12 = vcmp.le.f32.partialorder %v3266_v24, 0.7853982  ;;  %v4150_v54 = vadd.s32 4294967294, %v3334_v26  ;;  %vm3466_vm10 = vcmp.eq.s32.totalorder %v7019_v22, 0 }
 0x428   : > { %vm3469_vm15 = vcmp.eq.s32.totalorder %v7019_v22, 2  ;;  %v3636_v21 = vadd.s32 1, %v7048_v51  ;;  %v4156_v35 = vadd.s32 4294967169, %v3478_v53  ;;  %v3322_v8 = vadd.s32 %v6976_v1, %v6986_v0 }
 0x429   : > { %vm4151_vm0 = vcmp.lt.s32.totalorder %v4150_v54, 0  ;;  %v3355_v36 = vsel %vm7071_vm12, 0, %v3353_v44  ;;  %v3633_v24 = vmul.u32 %v7017_v17, %v3617_v11  ;;  %vm3635_vm11 = vc.u32 %v7065_v25, %v7047_v42 }
 0x42a   : > { %v3337_v14 = vsel %vm4151_vm0, 0, %v4150_v54  ;;  %v3481_v52 = vand.u32 8388607, %v3474_v12  ;;  %v3484_v15 = vadd.s32 1, %v4156_v35  ;;  %v3789_v1 = vand.u32 2139095040, %v6655_v20 }
 0x42b   : > { %v4547_v59 = vpop.eup %4546  ;;  %v3338_v43 = vsub.s32 32, %v3337_v14  ;;  %v3342_v62 = vsub.s32 4294967266, %v3337_v14  ;;  %v3339_v33 = vshll.u32 %v7032_v30, %v3337_v14  ;;  %v3637_v58 = vsel %vm3635_vm11, %v3636_v21, %v7048_v51 }
 0x42c   : > { %v4549_v47 = vpop.eup %4548  ;;  %v3470_v10 = vxor.u32 2147483648, %v4547_v59  ;;  %vm3485_vm14 = vcmp.gt.s32.totalorder %v3484_v15, 0  ;;  %v3638_v6 = vadd.s32 %v3637_v58, %v3633_v24  ;;  %v3359_v38 = vadd.s32 3, %v3355_v36 }
 0x42d   : > { %v3467_v0 = vxor.u32 2147483648, %v4549_v47  ;;  %v3340_v39 = vshrl.u32 %v3322_v8, %v3338_v43  ;;  %v3343_v23 = vadd.s32 127, %v3342_v62  ;;  %v3482_v49 = vor.u32 8388608, %v3481_v52 }
 0x42e   : > { %v3471_v17 = vsel %vm3469_vm15, %v3470_v10, %v4549_v47  ;;  %v3486_v19 = vsel %vm3485_vm14, %v3484_v15, 0  ;;  %v3639_v46 = vadd.s32 536870912, %v3638_v6  ;;  %v3790_v32 = vshrl.u32 %v3789_v1, 23 }
 0x42f   : > { %v3468_v13 = vsel %vm3466_vm10, %v4547_v59, %v3467_v0  ;;  %v3341_v30 = vor.u32 %v3340_v39, %v3339_v33  ;;  %v3344_v40 = vshll.u32 %v3343_v23, 23  ;;  %v3488_v28 = vand.u32 31, %v3486_v19 }
 0x430   : > { %v3472_v18 = vsel %vm3465_vm7, %v3468_v13, %v3471_v17  ;;  %v7099_v51 = vshrl.u32 %v3639_v46, 30  ;;  %v7101_v56 = vand.u32 3, %v3359_v38  ;;  %v3786_v31 = vand.u32 2147483647, %v6655_v20 }
 0x431   : > { %v3473_v37 = vsel %vm3462_vm13, nan, %v3472_v18  ;;  %v3345_v50 = vor.u32 4788187, %v3344_v40  ;;  %v3489_v57 = vsub.s32 32, %v3488_v28  ;;  %v3348_v22 = vcvt.s32.f32 %v3341_v30 }
 0x432   : > { %3917 = vst [vmem:[%s5039_s30 + $0xd8] sm:$0xff] %v3473_v37  ;;  %v3641_v55 = vshll.u32 %v7099_v51, 30  ;;  %v7105_v61 = vshll.u32 %v3482_v49, 8  ;;  %v4168_v11 = vadd.s32 4294967169, %v3790_v32  ;;  %v3491_v54 = vshll.u32 %v4634_v63, %v3488_v28 }
 0x433   : > { %v3346_v41 = vand.u32 2147483647, %v3345_v50  ;;  %v3492_v60 = vshrl.u32 %v4635_v3, %v3489_v57  ;;  %v3495_v26 = vshrl.u32 %v4636_v5, %v3489_v57  ;;  %v3498_v44 = vshrl.u32 %v4637_v7, %v3489_v57 }
 0x434   : > { %v7110_v53 = vsub.s32 %v3638_v6, %v3641_v55  ;;  %v3501_v21 = vshrl.u32 %v4638_v9, %v3489_v57  ;;  %v3634_v35 = vadd.s32 %v7047_v42, %v7065_v25  ;;  %v3487_v8 = vshrl.u32 %v3486_v19, 5 }
 0x435   : > { %v3349_v45 = vmul.f32 %v3348_v22, %v3346_v41  ;;  %v3494_v36 = vshll.u32 %v4635_v3, %v3488_v28  ;;  %v3497_v24 = vshll.u32 %v4636_v5, %v3488_v28  ;;  %v3493_v52 = vor.u32 %v3492_v60, %v3491_v54 }
 0x436   : > { %v3644_v14 = vsub.s32 0, %v7110_v53  ;;  %v3500_v15 = vshll.u32 %v4637_v7, %v3488_v28  ;;  %v3503_v43 = vshll.u32 %v4638_v9, %v3488_v28  ;;  %v3504_v62 = vshrl.u32 %v4639_v16, %v3489_v57 }
 0x437   : > { %v3350_v59 = vxor.u32 2147483648, %v3349_v45  ;;  %v3496_v47 = vor.u32 %v3495_v26, %v3494_v36  ;;  %v3499_v10 = vor.u32 %v3498_v44, %v3497_v24  ;;  %v3796_v0 = vadd.s32 1, %v4168_v11 }
 0x438   : > { %v4161_v25 = vmin.u32 %v3644_v14, %v7110_v53  ;;  %v3502_v1 = vor.u32 %v3501_v21, %v3500_v15  ;;  %v3490_v58 = vshrl.u32 %v4634_v63, %v3489_v57  ;;  %v3505_v17 = vor.u32 %v3504_v62, %v3503_v43 }
 0x439   : > { %v3351_v42 = vsel %vm3268_vm5, %v3350_v59, %v3349_v45  ;;  %vm3506_vm1 = vcmp.lt.s32.totalorder %v3487_v8, 1  ;;  %vm3580_vm3 = vcmp.lt.s32.totalorder %v6480_v27, 0  ;;  %vm3507_vm8 = vcmp.lt.s32.totalorder %v3487_v8, 2 }
 0x43a   : > { %v3354_v33 = vsel %vm7071_vm12, %v6375_v48, %v3351_v42  ;;  %v3646_v39 = vclz %v4161_v25  ;;  %vm3509_vm2 = vcmp.lt.s32.totalorder %v3487_v8, 4  ;;  %vm3508_vm4 = vcmp.lt.s32.totalorder %v3487_v8, 3 }
 0x43b   : > { %4550 = vcosq.f32 %v3354_v33  ;;  %v3511_v23 = vsel %vm3509_vm2, %v3499_v10, 2102212464  ;;  %v3514_v6 = vsel %vm3506_vm1, %v3493_v52, %v3496_v47  ;;  %v3510_v38 = vsel %vm3506_vm1, %v3490_v58, %v3493_v52 }
 0x43c   : > { %4552 = vsinq.f32 %v3354_v33  ;;  %v4162_v13 = vadd.s32 4294967294, %v3646_v39  ;;  %v3515_v49 = vsel %vm3509_vm2, %v3502_v1, 920167782  ;;  %v3518_v19 = vsel %vm3506_vm1, %v3496_v47, %v3499_v10 }
 0x43d   : > { %v3512_v34 = vsel %vm3508_vm4, %v3496_v47, %v3511_v23  ;;  %v3516_v18 = vsel %vm3508_vm4, %v3499_v10, %v3515_v49  ;;  %v3519_v30 = vsel %vm3509_vm2, %v3505_v17, 1326507024  ;;  %vm3797_vm6 = vcmp.gt.s32.totalorder %v3796_v0, 0 }
 0x43e   : > { %vm4163_vm9 = vcmp.lt.s32.totalorder %v4162_v13, 0  ;;  %v3664_v40 = vsub.s32 4, %v7099_v51  ;;  %v3517_v46 = vsel %vm3507_vm8, %v3514_v6, %v3516_v18  ;;  %v3520_v37 = vsel %vm3508_vm4, %v3502_v1, %v3519_v30 }
 0x43f   : > { %vm3362_vm5 = vcmp.eq.s32.totalorder %v7101_v56, 0  ;;  %v3649_v28 = vsel %vm4163_vm9, 0, %v4162_v13  ;;  %v3521_v32 = vsel %vm3507_vm8, %v3518_v19, %v3520_v37  ;;  %vm3361_vm13 = vcmp.lt.s32.totalorder %v7101_v56, 2 }
 0x440   : > { %v7135_v50 = vmul.u32.u64.low %v7105_v61, %v3517_v46  ;;  %v7136_v57 = vmul.u32.u64.high %v7105_v61, %v3517_v46, %v7135_v50  ;;  %v3650_v41 = vsub.s32 32, %v3649_v28  ;;  %v3654_v22 = vsub.s32 4294967266, %v3649_v28 }
 0x441   : > { %v3513_v55 = vsel %vm3507_vm8, %v3510_v38, %v3512_v34  ;;  %v3798_v60 = vsel %vm3797_vm6, %v3796_v0, 0  ;;  %vm3358_vm7 = vweird.f32 %v6375_v48  ;;  %vm3365_vm12 = vcmp.eq.s32.totalorder %v7101_v56, 2 }
 0x442   : > { %v7144_v26 = vmul.u32.u64.low %v7105_v61, %v3521_v32  ;;  %v7145_v44 = vmul.u32.u64.high %v7105_v61, %v3521_v32, %v7144_v26  ;;  %v3800_v11 = vand.u32 31, %v3798_v60  ;;  %v3651_v45 = vshll.u32 %v7110_v53, %v3649_v28 }
 0x443   : > { %v3652_v54 = vshrl.u32 %v3634_v35, %v3650_v41  ;;  %v3655_v21 = vadd.s32 127, %v3654_v22  ;;  %v3793_v36 = vand.u32 8388607, %v3786_v31  ;;  %v3665_v8 = vsel %vm3580_vm3, %v3664_v40, %v7099_v51 }
 0x444   : > { %v3529_v24 = vmul.u32 %v7105_v61, %v3513_v55  ;;  %v3532_v59 = vadd.s32 1, %v7136_v57  ;;  %v7155_v14 = vsub.s32 32, %v3800_v11  ;;  %v7157_v10 = vshrl.u32 %v3798_v60, 5 }
 0x445   : > { %v4551_v52 = vpop.eup %4550  ;;  %v3653_v15 = vor.u32 %v3652_v54, %v3651_v45  ;;  %v3656_v47 = vshll.u32 %v3655_v21, 23  ;;  %v3803_v53 = vshll.u32 %v4634_v63, %v3800_v11  ;;  %vm3531_vm10 = vc.u32 %v7145_v44, %v7135_v50 }
 0x446   : > { %v4553_v35 = vpop.eup %4552  ;;  %v3366_v43 = vxor.u32 2147483648, %v4551_v52  ;;  %v3806_v51 = vshll.u32 %v4635_v3, %v3800_v11  ;;  %v3812_v61 = vshll.u32 %v4637_v7, %v3800_v11  ;;  %v3533_v1 = vsel %vm3531_vm10, %v3532_v59, %v7136_v57 }
 0x447   : > { %v3363_v62 = vxor.u32 2147483648, %v4553_v35  ;;  %v3657_v42 = vor.u32 4788187, %v3656_v47  ;;  %v3660_v25 = vcvt.s32.f32 %v3653_v15  ;;  %v3534_v33 = vadd.s32 %v3533_v1, %v3529_v24 }
 0x448   : > { %v3367_v0 = vsel %vm3365_vm12, %v3366_v43, %v4553_v35  ;;  %v3804_v58 = vshrl.u32 %v4635_v3, %v7155_v14  ;;  %v3807_v17 = vshrl.u32 %v4636_v5, %v7155_v14  ;;  %v3810_v6 = vshrl.u32 %v4637_v7, %v7155_v14 }
 0x449   : > { %v3364_v39 = vsel %vm3362_vm5, %v4551_v52, %v3363_v62  ;;  %v3658_v23 = vand.u32 2147483647, %v3657_v42  ;;  %v3813_v13 = vshrl.u32 %v4638_v9, %v7155_v14  ;;  %v3535_v49 = vadd.s32 536870912, %v3534_v33 }
 0x44a   : > { %v3368_v38 = vsel %vm3361_vm13, %v3364_v39, %v3367_v0  ;;  %v3805_v19 = vor.u32 %v3804_v58, %v3803_v53  ;;  %v3809_v34 = vshll.u32 %v4636_v5, %v3800_v11  ;;  %v3808_v40 = vor.u32 %v3807_v17, %v3806_v51 }
 0x44b   : > { %v3369_v18 = vsel %vm3358_vm7, nan, %v3368_v38  ;;  %v3661_v30 = vmul.f32 %v3660_v25, %v3658_v23  ;;  %v3814_v46 = vor.u32 %v3813_v13, %v3812_v61  ;;  %v7183_v37 = vshrl.u32 %v3535_v49, 30 }
 0x44c   : > { %3916 = vst [vmem:[%s5039_s30 + $0xd0] sm:$0xff] %v3369_v18  ;;  %v3794_v28 = vor.u32 8388608, %v3793_v36  ;;  %v3816_v32 = vshrl.u32 %v4639_v16, %v7155_v14  ;;  %vm7189_vm15 = vcmp.le.f32.partialorder %v3578_v2, 0.7853982  ;;  %v3811_v41 = vor.u32 %v3810_v6, %v3809_v34 }
 0x44d   : > { %v3662_v57 = vxor.u32 2147483648, %v3661_v30  ;;  %v3815_v48 = vshll.u32 %v4638_v9, %v3800_v11  ;;  %v3667_v22 = vsel %vm7189_vm15, 0, %v3665_v8  ;;  %v3537_v55 = vshll.u32 %v7183_v37, 30 }
 0x44e   : > { %vm3818_vm0 = vcmp.lt.s32.totalorder %v7157_v10, 1  ;;  %vm3821_vm11 = vcmp.lt.s32.totalorder %v7157_v10, 4  ;;  %vm3820_vm14 = vcmp.lt.s32.totalorder %v7157_v10, 3  ;;  %v3834_v21 = vshll.u32 %v3794_v28, 8 }
 0x44f   : > { %v3663_v60 = vsel %vm3580_vm3, %v3662_v57, %v3661_v30  ;;  %v3817_v2 = vor.u32 %v3816_v32, %v3815_v48  ;;  %v3826_v26 = vsel %vm3818_vm0, %v3805_v19, %v3808_v40  ;;  %v3827_v45 = vsel %vm3821_vm11, %v3814_v46, 920167782 }
 0x450   : > { %v3666_v11 = vsel %vm7189_vm15, %v6480_v27, %v3663_v60  ;;  %v3538_v54 = vsub.s32 %v3534_v33, %v3537_v55  ;;  %v3671_v36 = vadd.s32 3, %v3667_v22  ;;  %vm3819_vm1 = vcmp.lt.s32.totalorder %v7157_v10, 2 }
 0x451   : > { %4554 = vcosq.f32 %v3666_v11  ;;  %v3828_v8 = vsel %vm3820_vm14, %v3811_v41, %v3827_v45  ;;  %v3823_v59 = vsel %vm3821_vm11, %v3811_v41, 2102212464  ;;  %v3830_v15 = vsel %vm3818_vm0, %v3808_v40, %v3811_v41 }
 0x452   : > { %4556 = vsinq.f32 %v3666_v11  ;;  %v3540_v24 = vsub.s32 0, %v3538_v54  ;;  %v3829_v52 = vsel %vm3819_vm1, %v3826_v26, %v3828_v8  ;;  %v3831_v47 = vsel %vm3821_vm11, %v3817_v2, 1326507024 }
 0x453   : > { %v7220_v53 = vmul.u32.u64.low %v3834_v21, %v3829_v52  ;;  %v7221_v35 = vmul.u32.u64.high %v3834_v21, %v3829_v52, %v7220_v53  ;;  %v3802_v51 = vshrl.u32 %v4634_v63, %v7155_v14  ;;  %v3832_v61 = vsel %vm3820_vm14, %v3814_v46, %v3831_v47 }
 0x454   : > { %v4157_v43 = vmin.u32 %v3540_v24, %v3538_v54  ;;  %v3833_v62 = vsel %vm3819_vm1, %v3830_v15, %v3832_v61  ;;  %v3685_v42 = vand.u32 2139095040, %v6725_v29  ;;  %v3672_v25 = vand.u32 3, %v3671_v36 }
 0x455   : > { %v3822_v0 = vsel %vm3818_vm0, %v3802_v51, %v3805_v19  ;;  %v3824_v33 = vsel %vm3820_vm14, %v3808_v40, %v3823_v59  ;;  %v7235_v58 = vmul.u32.u64.low %v3834_v21, %v3833_v62  ;;  %v7236_v17 = vmul.u32.u64.high %v3834_v21, %v3833_v62, %v7235_v58 }
 0x456   : > { %v3542_v1 = vclz %v4157_v43  ;;  %v3686_v14 = vshrl.u32 %v3685_v42, 23  ;;  %vm3670_vm3 = vweird.f32 %v6480_v27  ;;  %v3825_v23 = vsel %vm3819_vm1, %v3822_v0, %v3824_v33 }
 0x457   : > { %v3844_v6 = vadd.s32 1, %v7221_v35  ;;  %vm3674_vm8 = vcmp.eq.s32.totalorder %v3672_v25, 0  ;;  %vm3677_vm2 = vcmp.eq.s32.totalorder %v3672_v25, 2  ;;  %v3530_v38 = vadd.s32 %v7135_v50, %v7145_v44 }
 0x458   : > { %v4158_v39 = vadd.s32 4294967294, %v3542_v1  ;;  %v4164_v13 = vadd.s32 4294967169, %v3686_v14  ;;  %v3560_v34 = vsub.s32 4, %v7183_v37  ;;  %vm3843_vm6 = vc.u32 %v7236_v17, %v7220_v53 }
 0x459   : > { %v3841_v28 = vmul.u32 %v3834_v21, %v3825_v23  ;;  %v3845_v57 = vsel %vm3843_vm6, %v3844_v6, %v7221_v35  ;;  %vm3673_vm5 = vcmp.lt.s32.totalorder %v3672_v25, 2  ;;  %v3682_v55 = vand.u32 2147483647, %v6725_v29 }
 0x45a   : > { %vm4159_vm4 = vcmp.lt.s32.totalorder %v4158_v39, 0  ;;  %v3692_v18 = vadd.s32 1, %v4164_v13  ;;  %vm3476_vm13 = vcmp.lt.s32.totalorder %v6550_v4, 0  ;;  %vm7264_vm7 = vcmp.le.f32.partialorder %v3474_v12, 0.7853982 }
 0x45b   : > { %v4555_v49 = vpop.eup %4554  ;;  %v3545_v19 = vsel %vm4159_vm4, 0, %v4158_v39  ;;  %v3846_v48 = vadd.s32 %v3845_v57, %v3841_v28  ;;  %v3561_v8 = vsel %vm3476_vm13, %v3560_v34, %v7183_v37  ;;  %v3689_v59 = vand.u32 8388607, %v3682_v55 }
 0x45c   : > { %v4557_v30 = vpop.eup %4556  ;;  %v3678_v10 = vxor.u32 2147483648, %v4555_v49  ;;  %v3546_v40 = vsub.s32 32, %v3545_v19  ;;  %v3550_v46 = vsub.s32 4294967266, %v3545_v19  ;;  %v3547_v56 = vshll.u32 %v3538_v54, %v3545_v19 }
 0x45d   : > { %v3675_v32 = vxor.u32 2147483648, %v4557_v30  ;;  %vm3693_vm9 = vcmp.gt.s32.totalorder %v3692_v18, 0  ;;  %v3847_v11 = vadd.s32 536870912, %v3846_v48  ;;  %v3563_v43 = vsel %vm7264_vm7, 0, %v3561_v8 }
 0x45e   : > { %v3679_v50 = vsel %vm3677_vm2, %v3678_v10, %v4557_v30  ;;  %v3548_v44 = vshrl.u32 %v3530_v38, %v3546_v40  ;;  %v3551_v41 = vadd.s32 127, %v3550_v46  ;;  %v3694_v60 = vsel %vm3693_vm9, %v3692_v18, 0 }
 0x45f   : > { %v3676_v22 = vsel %vm3674_vm8, %v4555_v49, %v3675_v32  ;;  %v3696_v21 = vand.u32 31, %v3694_v60  ;;  %v7258_v24 = vshrl.u32 %v3847_v11, 30  ;;  %v3690_v1 = vor.u32 8388608, %v3689_v59 }
 0x460   : > { %v3680_v2 = vsel %vm3673_vm5, %v3676_v22, %v3679_v50  ;;  %v3549_v26 = vor.u32 %v3548_v44, %v3547_v56  ;;  %v3552_v45 = vshll.u32 %v3551_v41, 23  ;;  %v3695_v0 = vshrl.u32 %v3694_v60, 5 }
 0x461   : > { %v3681_v54 = vsel %vm3670_vm3, nan, %v3680_v2  ;;  %v3697_v52 = vsub.s32 32, %v3696_v21  ;;  %v3849_v35 = vshll.u32 %v7258_v24, 30  ;;  %v3699_v12 = vshll.u32 %v4634_v63, %v3696_v21 }
 0x462   : > { %3919 = vst [vmem:[%s5039_s30 + $0xe8] sm:$0xff] %v3681_v54  ;;  %v3553_v36 = vor.u32 4788187, %v3552_v45  ;;  %v3556_v47 = vcvt.s32.f32 %v3549_v26  ;;  %v3702_v33 = vshll.u32 %v4635_v3, %v3696_v21  ;;  %v3705_v58 = vshll.u32 %v4636_v5, %v3696_v21 }
 0x463   : > { %v3700_v37 = vshrl.u32 %v4635_v3, %v3697_v52  ;;  %v3703_v51 = vshrl.u32 %v4636_v5, %v3697_v52  ;;  %v3706_v61 = vshrl.u32 %v4637_v7, %v3697_v52  ;;  %v3850_v42 = vsub.s32 %v3846_v48, %v3849_v35 }
 0x464   : > { %v3554_v15 = vand.u32 2147483647, %v3553_v36  ;;  %v3709_v25 = vshrl.u32 %v4638_v9, %v3697_v52  ;;  %v3708_v6 = vshll.u32 %v4637_v7, %v3696_v21  ;;  %v3711_v49 = vshll.u32 %v4638_v9, %v3696_v21 }
 0x465   : > { %v3852_v39 = vsub.s32 0, %v3850_v42  ;;  %v3701_v23 = vor.u32 %v3700_v37, %v3699_v12  ;;  %v3704_v13 = vor.u32 %v3703_v51, %v3702_v33  ;;  %v3707_v38 = vor.u32 %v3706_v61, %v3705_v58 }
 0x466   : > { %v3557_v62 = vmul.f32 %v3556_v47, %v3554_v15  ;;  %v3712_v19 = vshrl.u32 %v4639_v16, %v3697_v52  ;;  %v3710_v30 = vor.u32 %v3709_v25, %v3708_v6  ;;  %v3567_v5 = vadd.s32 3, %v3563_v43 }
 0x467   : > { %v4169_v18 = vmin.u32 %v3852_v39, %v3850_v42  ;;  %v3730_v40 = vshll.u32 %v3690_v1, 8  ;;  %vm3714_vm12 = vcmp.lt.s32.totalorder %v3695_v0, 1  ;;  %vm3717_vm10 = vcmp.lt.s32.totalorder %v3695_v0, 4 }
 0x468   : > { %v3558_v14 = vxor.u32 2147483648, %v3557_v62  ;;  %v3713_v10 = vor.u32 %v3712_v19, %v3711_v49  ;;  %v3698_v9 = vshrl.u32 %v4634_v63, %v3697_v52  ;;  %v3719_v16 = vsel %vm3717_vm10, %v3707_v38, 2102212464 }
 0x469   : > { %v3854_v7 = vclz %v4169_v18  ;;  %v3722_v46 = vsel %vm3714_vm12, %v3701_v23, %v3704_v13  ;;  %vm3716_vm15 = vcmp.lt.s32.totalorder %v3695_v0, 3  ;;  %v3723_v32 = vsel %vm3717_vm10, %v3710_v30, 920167782 }
 0x46a   : > { %v3559_v34 = vsel %vm3476_vm13, %v3558_v14, %v3557_v62  ;;  %v3726_v56 = vsel %vm3714_vm12, %v3704_v13, %v3707_v38  ;;  %vm3715_vm0 = vcmp.lt.s32.totalorder %v3695_v0, 2  ;;  %v3718_v57 = vsel %vm3714_vm12, %v3698_v9, %v3701_v23 }
 0x46b   : > { %v3562_v3 = vsel %vm7264_vm7, %v6550_v4, %v3559_v34  ;;  %v4170_v28 = vadd.s32 4294967294, %v3854_v7  ;;  %v3724_v50 = vsel %vm3716_vm15, %v3707_v38, %v3723_v32  ;;  %v3727_v44 = vsel %vm3717_vm10, %v3713_v10, 1326507024 }
 0x46c   : > { %4558 = vcosq.f32 %v3562_v3  ;;  %v3720_v41 = vsel %vm3716_vm15, %v3704_v13, %v3719_v16  ;;  %v3725_v48 = vsel %vm3715_vm0, %v3722_v46, %v3724_v50  ;;  %v3728_v22 = vsel %vm3716_vm15, %v3710_v30, %v3727_v44 }
 0x46d   : > { %4560 = vsinq.f32 %v3562_v3  ;;  %vm4171_vm11 = vcmp.lt.s32.totalorder %v4170_v28, 0  ;;  %v3729_v2 = vsel %vm3715_vm0, %v3726_v56, %v3728_v22  ;;  %v3842_v45 = vadd.s32 %v7220_v53, %v7236_v17 }
 0x46e   : > { %v3857_v60 = vsel %vm4171_vm11, 0, %v4170_v28  ;;  %v7289_v26 = vmul.u32.u64.low %v3730_v40, %v3725_v48  ;;  %v7290_v63 = vmul.u32.u64.high %v3730_v40, %v3725_v48, %v7289_v26  ;;  %v3568_v21 = vand.u32 3, %v3567_v5 }
 0x46f   : > { %v3858_v11 = vsub.s32 32, %v3857_v60  ;;  %v3862_v54 = vsub.s32 4294967266, %v3857_v60  ;;  %v7294_v36 = vmul.u32.u64.low %v3730_v40, %v3729_v2  ;;  %v7295_v8 = vmul.u32.u64.high %v3730_v40, %v3729_v2, %v7294_v36 }
 0x470   : > { %v3859_v59 = vshll.u32 %v3850_v42, %v3857_v60  ;;  %v3721_v15 = vsel %vm3715_vm0, %v3718_v57, %v3720_v41  ;;  %v3740_v47 = vadd.s32 1, %v7290_v63  ;;  %vm3573_vm1 = vcmp.eq.s32.totalorder %v3568_v21, 2 }
 0x471   : > { %v3860_v52 = vshrl.u32 %v3842_v45, %v3858_v11  ;;  %v3863_v27 = vadd.s32 127, %v3862_v54  ;;  %v3737_v62 = vmul.u32 %v3730_v40, %v3721_v15  ;;  %vm3739_vm14 = vc.u32 %v7295_v8, %v7289_v26 }
 0x472   : > { %v3741_v42 = vsel %vm3739_vm14, %v3740_v47, %v7290_v63  ;;  %vm3570_vm3 = vcmp.eq.s32.totalorder %v3568_v21, 0  ;;  %vm3569_vm8 = vcmp.lt.s32.totalorder %v3568_v21, 2  ;;  %vm3566_vm2 = vweird.f32 %v6550_v4 }
 0x473   : > { %v3861_v43 = vor.u32 %v3860_v52, %v3859_v59  ;;  %v3864_v37 = vshll.u32 %v3863_v27, 23  ;;  %v3742_v25 = vadd.s32 %v3741_v42, %v3737_v62  ;;  %v3872_v6 = vsub.s32 4, %v7258_v24 }
 0x474   : > { %vm3788_vm4 = vcmp.lt.s32.totalorder %v6655_v20, 0  ;;  %vm3787_vm6 = vcmp.le.f32.partialorder %v3786_v31, 0.7853982  ;;  %v3738_v32 = vadd.s32 %v7289_v26, %v7295_v8  ;;  %vm3878_vm12 = vweird.f32 %v6655_v20 }
 0x475   : > { %v3865_v17 = vor.u32 4788187, %v3864_v37  ;;  %v3868_v33 = vcvt.s32.f32 %v3861_v43  ;;  %v3743_v14 = vadd.s32 536870912, %v3742_v25  ;;  %v3873_v34 = vsel %vm3788_vm4, %v3872_v6, %v7258_v24 }
 0x476   : > { %v4559_v35 = vpop.eup %4558  ;;  %v3875_v30 = vsel %vm3787_vm6, 0, %v3873_v34  ;;  %vm3684_vm10 = vcmp.lt.s32.totalorder %v6725_v29, 0  ;;  %vm3683_vm15 = vcmp.le.f32.partialorder %v3682_v55, 0.7853982 }
 0x477   : > { %v4561_v51 = vpop.eup %4560  ;;  %v3574_v61 = vxor.u32 2147483648, %v4559_v35  ;;  %v3866_v0 = vand.u32 2147483647, %v3865_v17  ;;  %v3744_v13 = vshrl.u32 %v3743_v14, 30  ;;  %v3879_v10 = vadd.s32 3, %v3875_v30 }
 0x478   : > { %v3571_v53 = vxor.u32 2147483648, %v4561_v51 }
 0x479   : > { %v3575_v12 = vsel %vm3573_vm1, %v3574_v61, %v4561_v51  ;;  %v3869_v23 = vmul.f32 %v3868_v33, %v3866_v0  ;;  %v3745_v49 = vshll.u32 %v3744_v13, 30  ;;  %v3880_v9 = vand.u32 3, %v3879_v10 }
 0x47a   : > { %v3572_v1 = vsel %vm3570_vm3, %v4559_v35, %v3571_v53  ;;  %v3768_v36 = vsub.s32 4, %v3744_v13  ;;  %vm3774_vm1 = vweird.f32 %v6725_v29 }
 0x47b   : > { %v3576_v58 = vsel %vm3569_vm8, %v3572_v1, %v3575_v12  ;;  %v3870_v38 = vxor.u32 2147483648, %v3869_v23  ;;  %v3746_v18 = vsub.s32 %v3742_v25, %v3745_v49  ;;  %vm3882_vm5 = vcmp.eq.s32.totalorder %v3880_v9, 0 }
 0x47c   : > { %v3577_v39 = vsel %vm3566_vm2, nan, %v3576_v58  ;;  %vm3885_vm13 = vcmp.eq.s32.totalorder %v3880_v9, 2  ;;  %vm3881_vm7 = vcmp.lt.s32.totalorder %v3880_v9, 2  ;;  %v3769_v52 = vsel %vm3684_vm10, %v3768_v36, %v3744_v13 }
 0x47d   : > { %3918 = vst [vmem:[%s5039_s30 + $0xe0] sm:$0xff] %v3577_v39  ;;  %v3871_v19 = vsel %vm3788_vm4, %v3870_v38, %v3869_v23  ;;  %v3748_v3 = vsub.s32 0, %v3746_v18  ;;  %v3771_v27 = vsel %vm3683_vm15, 0, %v3769_v52 }
 0x47e   : > { %v3874_v4 = vsel %vm3787_vm6, %v6655_v20, %v3871_v19  ;;  %v3775_v15 = vadd.s32 3, %v3771_v27 }
 0x47f   : > { %4562 = vcosq.f32 %v3874_v4  ;;  %v4165_v5 = vmin.u32 %v3748_v3, %v3746_v18 }
 0x480   : > { %4564 = vsinq.f32 %v3874_v4  ;;  %v3776_v47 = vand.u32 3, %v3775_v15 }
 0x481   : > { %v3750_v40 = vclz %v4165_v5 }
 0x482   : > { %vm3781_vm0 = vcmp.eq.s32.totalorder %v3776_v47, 2  ;;  %vm3778_vm11 = vcmp.eq.s32.totalorder %v3776_v47, 0  ;;  %vm3777_vm14 = vcmp.lt.s32.totalorder %v3776_v47, 2 }
 0x483   : > { %v4166_v7 = vadd.s32 4294967294, %v3750_v40 }
 0x485   : > { %vm4167_vm9 = vcmp.lt.s32.totalorder %v4166_v7, 0 }
 0x486   : > { %v3753_v46 = vsel %vm4167_vm9, 0, %v4166_v7 }
 0x487   : > { %v3754_v24 = vsub.s32 32, %v3753_v46  ;;  %v3758_v56 = vsub.s32 4294967266, %v3753_v46  ;;  %v3755_v44 = vshll.u32 %v3746_v18, %v3753_v46 }
 0x489   : > { %v4563_v16 = vpop.eup %4562  ;;  %v3756_v41 = vshrl.u32 %v3738_v32, %v3754_v24  ;;  %v3759_v48 = vadd.s32 127, %v3758_v56 }
 0x48a   : > { %v4565_v28 = vpop.eup %4564  ;;  %v3886_v31 = vxor.u32 2147483648, %v4563_v16 }
 0x48b   : > { %v3883_v57 = vxor.u32 2147483648, %v4565_v28  ;;  %v3757_v2 = vor.u32 %v3756_v41, %v3755_v44  ;;  %v3760_v63 = vshll.u32 %v3759_v48, 23 }
 0x48c   : > { %v3887_v50 = vsel %vm3885_vm13, %v3886_v31, %v4565_v28 }
 0x48d   : > { %v3884_v22 = vsel %vm3882_vm5, %v4563_v16, %v3883_v57  ;;  %v3761_v26 = vor.u32 4788187, %v3760_v63  ;;  %v3764_v54 = vcvt.s32.f32 %v3757_v2 }
 0x48e   : > { %v3888_v60 = vsel %vm3881_vm7, %v3884_v22, %v3887_v50 }
 0x48f   : > { %v3889_v45 = vsel %vm3878_vm12, nan, %v3888_v60  ;;  %v3762_v11 = vand.u32 2147483647, %v3761_v26 }
 0x490   : > { %3921 = vst [vmem:[%s5039_s30 + $0xf8] sm:$0xff] %v3889_v45 }
 0x491   : > { %v3765_v21 = vmul.f32 %v3764_v54, %v3762_v11 }
 0x493   : > { %v3766_v8 = vxor.u32 2147483648, %v3765_v21 }
 0x495   : > { %v3767_v59 = vsel %vm3684_vm10, %v3766_v8, %v3765_v21 }
 0x496   : > { %v3770_v20 = vsel %vm3683_vm15, %v6725_v29, %v3767_v59 }
 0x497   : > { %4566 = vcosq.f32 %v3770_v20 }
 0x498   : > { %4568 = vsinq.f32 %v3770_v20 }
 0x4a1   : > { %v4567_v35 = vpop.eup %4566 }
 0x4a2   : > { %v4569_v43 = vpop.eup %4568  ;;  %v3782_v37 = vxor.u32 2147483648, %v4567_v35  ;;  %3929 = sbr.rel (!%p4696_p5) target bundleno = 1221 (0x4c5), region = 32 }
 0x4a3   : > { %v3779_v51 = vxor.u32 2147483648, %v4569_v43 }
 0x4a4   : > { %v3783_v61 = vsel %vm3781_vm0, %v3782_v37, %v4569_v43 }
 0x4a5   : > { %v3780_v55 = vsel %vm3778_vm11, %v4567_v35, %v3779_v51 }
 0x4a6   : > { %v3784_v62 = vsel %vm3777_vm14, %v3780_v55, %v3783_v61 }
 0x4a7   : > { %v3785_v53 = vsel %vm3774_vm1, nan, %v3784_v62 }
 0x4a8   : > { %3920 = vst [vmem:[%s5039_s30 + $0xf0] sm:$0xff] %v3785_v53 }
 0x4a9   : > { %s7453_s5 = smov (!%p3932_p11, %s3931_s5), 32 }
 0x4aa   : > { %s7325_s6 = sshll.u32 %s7453_s5, 7 }
 0x4ab   : > { %s3936_s7 = ssub.s32 4096, %s7325_s6 }
 0x4ac   : > { %3937 = vsyncadd %s7320_s3, %s3936_s7  ;;  %p4175_p12 = scmp.ne.s32.totalorder %s7325_s6, 0  ;;  %s4181_s8 = sshll.u32 %s4679_s13, 12 }
 0x4ad   : > { %s7334_s17 = scalar_lea.hbm %s7383_s2, %s4181_s8  ;;  %s3942_s19 = sshll.u32 %s5039_s30, 4  ;;  %s7337_s19 = int_to_ptr.vmem [resolvable:$true] %s3942_s19 }
 0x4ae   : > { %s4570_s21 = scalar_lea.vmem %s7337_s19, %s7325_s6  ;;  %s4640_s22 = smov [#allocation2]  }
 0x4af   : > { %p4571_p13 = scmp.ne.s32.totalorder %s7337_s19, %s4570_s21  ;;  %s4574_s23 = sshll.u32 %s4640_s22, 4  ;;  %s4575_s23 = int_to_ptr.vmem [resolvable:$false] %s4574_s23 }
 0x4b0   : > { %s4576_s13 = scalar_lea.vmem %s4575_s23, 8192  ;;  %p4577_p2 = scmp.lt.s32.totalorder %s7337_s19, %s4575_s23 }
 0x4b1   : > { %p4572_p0 = pnand %p4571_p13, %p4175_p12  ;;  %p4578_p3 = scmp.lt.s32.totalorder %s4576_s13, %s4570_s21 }
 0x4b3   : > { %p4573_p1 = pneg %p4572_p0  ;;  %p4579_p4 = por %p4578_p3, %p4577_p2 }
 0x4b5   : > { %p4580_p5 = pnand %p4579_p4, %p4573_p1 }
 0x4b7   : > { %4583 = shalt.err (!%p4580_p5)
}
 0x4b8   : > { %s4584_s24 = scalar_lea.hbm %s7334_s17, %s7325_s6  ;;  %s4588_s27 = scalar_lea.hbm %s7383_s2, 4864 }
 0x4b9   : > { %p4585_p7 = scmp.ne.s32.totalorder %s7334_s17, %s4584_s24  ;;  %p4589_p10 = scmp.lt.u32.totalorder %s7334_s17, %s7383_s2 }
 0x4ba   : > { %p4590_p11 = scmp.lt.u32.totalorder %s4588_s27, %s4584_s24  ;;  %p4592_p0 = scmp.lt.u32.totalorder %s4584_s24, %s7334_s17 }
 0x4bb   : > { %p4586_p8 = pnand %p4585_p7, %p4175_p12 }
 0x4bc   : > { %p4591_p13 = por %p4590_p11, %p4589_p10 }
 0x4bd   : > { %p4587_p9 = pneg %p4586_p8 }
 0x4be   : > { %p4593_p1 = por %p4592_p0, %p4591_p13 }
 0x4c0   : > { %p4594_p2 = pnand %p4593_p1, %p4587_p9 }
 0x4c2   : > { %4597 = shalt.err (!%p4594_p2)
}
 0x4c3   : > { %s4641_s30 = smov 128   ;;  %s4642_s4 = smov 8  }
 0x4c4   : > { %3948 = dma.vmem_to_hbm [thread:$0]  (%p4175_p12), %s7337_s19, %s7325_s6, %s7334_s17, %s7320_s3, %s4641_s30, %s4641_s30, %s4642_s4  }
 0x4c5 PF: > { %p4400_p3 = scmp.ge.s32.totalorder %s4632_s12, 2  ;;  %s3957_s5 = sand.u32 1, %s4620_s9  }
 0x4c6   : > { %s3958_s7 = scalar_lea.sflag [#allocation3], %s3957_s5 }
 0x4c7   : > { %p4397_p4 = pnand %p4400_p3, %p4700_p6 }
 0x4c9   : > { %4615 = dma.done.wait (!%p4397_p4), %s3958_s7, 4096  }
 0x4ca   : > { %4617 = vsyncadd (!%p4397_p4), %s3958_s7, 4294963200  ;;  %p12_p5 = scmp.ge.s32.totalorder %s4683_s15, 4   ;;  %s7446_s9 = smov %s4624_s10 }
 0x4cb   : > { %s7447_s10 = smov %s4628_s11  ;;  %s7448_s11 = smov %s4694_s18 }
 0x4cc   : > { %s7449_s12 = smov %s4683_s15  ;;  %14 = sbr.rel (!%p12_p5) target bundleno = 3 (0x3), region = 63 }
 0x4d3   :  { %3963 = vsyncpa [#allocation3], 1 }
 0x4d4   :  { %3965 = vsyncpa [#allocation3 + $0x1], 1 }

</bundles_post_ra>
